<compile_context>
chip_gen: v5e
topology: v5e:2x2
jax: 0.10.0
libtpu: 0.0.40
codegen_flags: <defaults>
</compile_context>

<pallas_src>
import functools

import jax
import jax.numpy as jnp
from jax.experimental import pallas as pl
from jax.experimental.pallas import tpu as pltpu


def _round_up(x, m):
    return (x + m - 1) // m * m


# ------------------------- fused QRNN-layer Pallas kernel ---------------------

def _make_qrnn_kernel(out_ch, cin_p, wp2, s_out, w_valid, has_res, direct_out):
    """One grid step == one output depth slice of one sample:
       im2col-in-VMEM -> one MXU GEMM -> relu/sigmoid gates -> f-pool step
       h_d = f*h_{d-1} + (1-f)*z   (+ optional fused 1x1x1 residual)."""

    def kernel(*refs):
        it = iter(refs)
        xm_ref, x0_ref, xp_ref = next(it), next(it), next(it)   # depth taps d, d+1, d+2
        w_ref, b_ref = next(it), next(it)
        if has_res:
            xr_ref, wr_ref, br_ref = next(it), next(it), next(it)
        if direct_out:
            next(it)                      # aliased zero-init output buffer (never read)
        o_ref = next(it)
        stack_ref, h_ref = next(it), next(it)

        # reset recurrent state at the first depth step of each sample
        @pl.when(pl.program_id(1) == 0)
        def _():
            h_ref[...] = jnp.zeros_like(h_ref)

        # --- in-VMEM im2col: stack the 27 shifted taps on sublanes ------------
        slabs = (xm_ref, x0_ref, xp_ref)
        for kd in range(3):
            slab = slabs[kd][0, 0]                       # (cin_p, S_alloc) bf16
            for kh in range(3):
                for kw in range(3):
                    r0 = (kh * 3 + kw) * 3 * cin_p + kd * cin_p
                    off = kh * wp2 + kw                  # static lane shift
                    stack_ref[r0:r0 + cin_p, :] = slab[:, off:off + s_out]

        # --- 3x3x3 conv == ONE MXU GEMM, f32 accumulation ---------------------
        gates = jnp.dot(w_ref[...], stack_ref[...],
                        preferred_element_type=jnp.float32) + b_ref[...]

        # --- fused gate nonlinearities + directional f-pool recurrence --------
        z = jax.nn.relu(gates[:out_ch])
        f = jax.nn.sigmoid(gates[out_ch:])
        h = z + f * (h_ref[...] - z)                     # == f*h_prev + (1-f)*z
        h_ref[...] = h

        if has_res:
            # fused 1x1x1 residual conv (on the ORIGINAL input) + bias
            x_c = xr_ref[0, 0][:, wp2 + 1:wp2 + 1 + s_out]       # center tap
            h = h + (jnp.dot(wr_ref[...], x_c,
                             preferred_element_type=jnp.float32) + br_ref[...])

        if direct_out:
            # Write straight into the NEXT layer's zero-halo'd padded layout:
            # junk columns (w >= W) land exactly on that layout's column halo,
            # so mask them to 0; write the whole slab so row/col halos are zero.
            col = jax.lax.broadcasted_iota(jnp.int32, (1, s_out), 1) % wp2
            h_m = jnp.where(col < w_valid, h, 0.0).astype(o_ref.dtype)
            o_ref[...] = jnp.zeros_like(o_ref)
            o_ref[0, 0, :out_ch, wp2 + 1:wp2 + 1 + s_out] = h_m
        else:
            o_ref[0, 0] = h.astype(o_ref.dtype)

    return kernel


def qrnn_layer(x_pad, w_gemm, b, out_ch, wp2, s_out, w_valid, reverse, out_dtype,
               direct_out=False, cout_p=None, x_res=None, w_res=None, b_res=None):
    """x_pad:  (N, D+2, cin_p, S_alloc) bf16 -- 1-voxel halo, flattened (H+2,W+2) spatial
       w_gemm: (2*out_ch, 27*cin_p) bf16     -- GEMM K ordered (kh, kw, kd, c)
       b:      (2*out_ch, 1) f32
       direct_out=False -> (N, D, out_ch, s_out)           (interior layout)
       direct_out=True  -> (N, D+2, cout_p, S_alloc) bf16  (next layer's halo'd input)"""
    N, Dp2, cin_p, S_alloc = x_pad.shape
    D = Dp2 - 2
    has_res = x_res is not None

    def didx(d):                           # output-depth index in recurrence order
        return (D - 1 - d) if reverse else d

    def slab_spec(kd):
        return pl.BlockSpec((1, 1, cin_p, S_alloc),
                            lambda n, d, kd=kd: (n, didx(d) + kd, 0, 0))

    in_specs = [slab_spec(0), slab_spec(1), slab_spec(2),
                pl.BlockSpec(w_gemm.shape, lambda n, d: (0, 0)),
                pl.BlockSpec(b.shape, lambda n, d: (0, 0))]
    args = [x_pad, x_pad, x_pad, w_gemm, b]
    if has_res:
        in_specs += [
            pl.BlockSpec((1, 1, x_res.shape[2], x_res.shape[3]),
                         lambda n, d: (n, didx(d) + 1, 0, 0)),
            pl.BlockSpec(w_res.shape, lambda n, d: (0, 0)),
            pl.BlockSpec(b_res.shape, lambda n, d: (0, 0)),
        ]
        args += [x_res, w_res, b_res]

    if direct_out:
        # Zero-initialized destination buffer, aliased to the output: interior depth
        # slabs are overwritten in place by the kernel; the depth-halo slabs (never
        # visited by the grid) stay zero, giving conv2's input directly.
        out_shape = jax.ShapeDtypeStruct((N, Dp2, cout_p, S_alloc), out_dtype)
        out_spec = pl.BlockSpec((1, 1, cout_p, S_alloc),
                                lambda n, d: (n, didx(d) + 1, 0, 0))
        args.append(jnp.zeros((N, Dp2, cout_p, S_alloc), out_dtype))
        in_specs.append(pl.BlockSpec(memory_space=pl.ANY))
        io_alias = {len(args) - 1: 0}
    else:
        out_shape = jax.ShapeDtypeStruct((N, D, out_ch, s_out), out_dtype)
        out_spec = pl.BlockSpec((1, 1, out_ch, s_out),
                                lambda n, d: (n, didx(d), 0, 0))
        io_alias = {}

    return pl.pallas_call(
        _make_qrnn_kernel(out_ch, cin_p, wp2, s_out, w_valid, has_res, direct_out),
        out_shape=out_shape,
        grid_spec=pltpu.PrefetchScalarGridSpec(
            num_scalar_prefetch=0,
            grid=(N, D),
            in_specs=in_specs,
            out_specs=out_spec,
            scratch_shapes=[pltpu.VMEM((27 * cin_p, s_out), jnp.bfloat16),  # im2col
                            pltpu.VMEM((out_ch, s_out), jnp.float32)],      # h state
        ),
        compiler_params=pltpu.CompilerParams(
            dimension_semantics=("parallel", "arbitrary")),
        input_output_aliases=io_alias,
    )(*args)


# ------------------------------ wrapper (glue) --------------------------------

def _pad_flat(v, c_pad, s_alloc):
    """v: (N, D, C, H, W) -> (N, D+2, c_pad, s_alloc) bf16 with a 1-voxel zero halo,
    spatial flattened row-major over the padded (H+2, W+2) grid."""
    N, D, C, H, W = v.shape
    v = jnp.pad(v, ((0, 0), (1, 1), (0, c_pad - C), (1, 1), (1, 1)))
    v = v.reshape(N, D + 2, c_pad, (H + 2) * (W + 2))
    v = jnp.pad(v, ((0, 0), (0, 0), (0, 0), (0, s_alloc - (H + 2) * (W + 2))))
    return v.astype(jnp.bfloat16)


def _pack_gate_w(w, c_pad):
    """torch Conv3d weight (O, I, 3, 3, 3) -> (O, 27*c_pad) bf16 with the GEMM
    K dimension ordered (kh, kw, kd, c) to match the in-kernel im2col stack."""
    O, I = w.shape[0], w.shape[1]
    wt = jnp.transpose(w, (0, 3, 4, 2, 1))                       # (O, kh, kw, kd, I)
    wt = jnp.pad(wt, ((0, 0), (0, 0), (0, 0), (0, 0), (0, c_pad - I)))
    return wt.reshape(O, 27 * c_pad).astype(jnp.bfloat16)


def conv_block_forward(x, params, reverse=False):
    """x: (N, in_ch, D, H, W) float32 (PyTorch NCDHW). Returns (N, out_ch, D, H, W)."""
    N, Cin, D, H, W = x.shape
    out_ch = params["w_res"].shape[0]
    wp2 = W + 2
    s_out = H * wp2                                   # flat output grid (2 junk cols/row)
    s_alloc = _round_up((H + 2) * wp2 + 2, 128)       # +2 so all tap slices stay in-bounds
    cin_p = _round_up(Cin, 8)
    cmid_p = _round_up(out_ch, 8)

    x_cl = jnp.transpose(x.astype(jnp.float32), (0, 2, 1, 3, 4))   # (N, D, Cin, H, W)
    x_flat = _pad_flat(x_cl, cin_p, s_alloc)                       # halo'd bf16 input

    w1 = _pack_gate_w(params["w1"], cin_p)
    b1 = params["b1"].reshape(2 * out_ch, 1).astype(jnp.float32)
    w2 = _pack_gate_w(params["w2"], cmid_p)
    b2 = params["b2"].reshape(2 * out_ch, 1).astype(jnp.float32)
    w_res = jnp.pad(params["w_res"].reshape(out_ch, Cin),
                    ((0, 0), (0, cin_p - Cin))).astype(jnp.bfloat16)
    b_res = params["b_res"].reshape(out_ch, 1).astype(jnp.float32)

    # conv1 (QRNN, direction = reverse): writes straight into conv2's halo'd layout.
    h1_flat = qrnn_layer(x_flat, w1, b1, out_ch, wp2, s_out, W, reverse,
                         jnp.bfloat16, direct_out=True, cout_p=cmid_p)

    # conv2 (QRNN, direction = not reverse) with the 1x1x1 residual conv on x fused in.
    out = qrnn_layer(h1_flat, w2, b2, out_ch, wp2, s_out, W, not reverse,
                     jnp.float32, x_res=x_flat, w_res=w_res, b_res=b_res)

    out = out.reshape(N, D, out_ch, H, wp2)[..., :W]               # drop junk columns
    return jnp.transpose(out, (0, 2, 1, 3, 4))                     # back to NCDHW


# ----------------------------- params & reference ----------------------------

def init_params(key, in_ch, out_ch):
    k1, k2, k3 = jax.random.split(key, 3)
    s = 0.1
    return dict(
        # QRNN gate convs: bn=False path -> no bias (kept as zero-bias params)
        w1=s * jax.random.normal(k1, (2 * out_ch, in_ch, 3, 3, 3), jnp.float32),
        b1=jnp.zeros((2 * out_ch,), jnp.float32),
        w2=s * jax.random.normal(k2, (2 * out_ch, out_ch, 3, 3, 3), jnp.float32),
        b2=jnp.zeros((2 * out_ch,), jnp.float32),
        # conv_residual: 1x1x1 conv with bias=True
        w_res=s * jax.random.normal(k3, (out_ch, in_ch, 1, 1, 1), jnp.float32),
        b_res=0.01 * jnp.arange(out_ch, dtype=jnp.float32),
    )


def _conv3d_ref(x, w, b, pad):
    out = jax.lax.conv_general_dilated(
        x, w, window_strides=(1, 1, 1), padding=[(pad, pad)] * 3,
        dimension_numbers=("NCDHW", "OIDHW", "NCDHW"),
        precision=jax.lax.Precision.HIGHEST)
    return out + b[None, :, None, None, None]


def _qrnn_ref(x, w, b, out_ch, reverse):
    gates = _conv3d_ref(x, w, b, pad=1)
    z = jax.nn.relu(gates[:, :out_ch])
    f = jax.nn.sigmoid(gates[:, out_ch:])
    zt, ft = jnp.moveaxis(z, 2, 0), jnp.moveaxis(f, 2, 0)
    if reverse:
        zt, ft = zt[::-1], ft[::-1]

    def step(h, zf):
        zd, fd = zf
        h = fd * h + (1.0 - fd) * zd
        return h, h

    _, hs = jax.lax.scan(step, jnp.zeros_like(zt[0]), (zt, ft))
    if reverse:
        hs = hs[::-1]
    return jnp.moveaxis(hs, 0, 2)


def conv_block_ref(x, params, reverse=False):
    out_ch = params["w_res"].shape[0]
    h1 = _qrnn_ref(x, params["w1"], params["b1"], out_ch, reverse)
    h2 = _qrnn_ref(h1, params["w2"], params["b2"], out_ch, not reverse)
    return h2 + _conv3d_ref(x, params["w_res"], params["b_res"], pad=0)


# ----------------------------------- main ------------------------------------

if __name__ == "__main__":
    key = jax.random.PRNGKey(0)
    kx, kp = jax.random.split(key)
    N, in_ch, out_ch, D, H, W = 2, 4, 8, 8, 16, 16
    x = jax.random.normal(kx, (N, in_ch, D, H, W), jnp.float32)
    params = init_params(kp, in_ch, out_ch)

    for rev in (False, True):
        fwd = jax.jit(functools.partial(conv_block_forward, reverse=rev))
        out = jax.block_until_ready(fwd(x, params))
        assert out.shape == (N, out_ch, D, H, W), out.shape
        ref = conv_block_ref(x, params, reverse=rev)
        err = float(jnp.max(jnp.abs(out - ref)))
        # bf16 MXU inputs with f32 accumulation vs f32 reference: expect ~1e-2 max abs.
        assert err < 5e-2, f"reverse={rev}: max abs error {err}"

    print("KERNEL_OK")
</pallas_src>

<mosaic_0001>
module attributes {stable_mosaic.version = 11 : i64} {
  func.func @kernel(%arg0: i32, %arg1: i32, %arg2: memref<1x1x8x384xbf16, #tpu.memory_space<vmem>>, %arg3: memref<1x1x8x384xbf16, #tpu.memory_space<vmem>>, %arg4: memref<1x1x8x384xbf16, #tpu.memory_space<vmem>>, %arg5: memref<16x216xbf16, #tpu.memory_space<vmem>>, %arg6: memref<16x1xf32, #tpu.memory_space<vmem>>, %arg7: memref<2x10x8x384xbf16, #tpu.memory_space<any>>, %arg8: memref<1x1x8x384xbf16, #tpu.memory_space<vmem>>, %arg9: memref<216x288xbf16, #tpu.memory_space<vmem>>, %arg10: memref<8x288xf32, #tpu.memory_space<vmem>>) attributes {dimension_semantics = [#tpu.dimension_semantics<parallel>, #tpu.dimension_semantics<arbitrary>], iteration_bounds = array<i64: 2, 8>, scalar_prefetch = 0 : i64, scratch_operands = 2 : i64, tpu.core_type = #tpu.core_type<tc>, window_params = [{transform_indices = @transform_0, window_bounds = array<i64: 1, 1, 8, 384>}, {transform_indices = @transform_1, window_bounds = array<i64: 1, 1, 8, 384>}, {transform_indices = @transform_2, window_bounds = array<i64: 1, 1, 8, 384>}, {pipeline_mode = #tpu.pipeline_mode<synchronous>, transform_indices = @transform_3, window_bounds = array<i64: 16, 216>}, {pipeline_mode = #tpu.pipeline_mode<synchronous>, transform_indices = @transform_4, window_bounds = array<i64: 16, 1>}, {}, {transform_indices = @transform_6, window_bounds = array<i64: 1, 1, 8, 384>}]} {
    %c0_i32 = arith.constant 0 : i32
    %0 = arith.cmpi eq, %arg1, %c0_i32 : i32
    %1 = arith.extui %0 : i1 to i32
    %c0_i32_0 = arith.constant 0 : i32
    %2 = arith.cmpi ne, %1, %c0_i32_0 : i32
    scf.if %2 {
      %cst_65 = arith.constant 0.000000e+00 : f32
      %112 = vector.broadcast %cst_65 : f32 to vector<8x288xf32>
      %c0_66 = arith.constant 0 : index
      %c0_67 = arith.constant 0 : index
      %113 = vector.load %arg10[%c0_66, %c0_67] : memref<8x288xf32, #tpu.memory_space<vmem>>, vector<8x288xf32>
      tpu.vector_store %arg10[%c0_66, %c0_67], %112 {strides = array<i32>} : memref<8x288xf32, #tpu.memory_space<vmem>>, vector<8x288xf32>,
    } else {
    }
    %c0 = arith.constant 0 : index
    %c0_1 = arith.constant 0 : index
    %c0_2 = arith.constant 0 : index
    %c0_3 = arith.constant 0 : index
    %3 = vector.load %arg2[%c0, %c0_1, %c0_2, %c0_3] : memref<1x1x8x384xbf16, #tpu.memory_space<vmem>>, vector<1x1x8x384xbf16>
    %4 = vector.shape_cast %3 : vector<1x1x8x384xbf16> to vector<8x384xbf16>
    %5 = vector.extract_strided_slice %4 {offsets = [0, 0], sizes = [8, 288], strides = [1, 1]} : vector<8x384xbf16> to vector<8x288xbf16>
    %c0_4 = arith.constant 0 : index
    %c0_5 = arith.constant 0 : index
    %6 = vector.load %arg9[%c0_4, %c0_5] : memref<216x288xbf16, #tpu.memory_space<vmem>>, vector<8x288xbf16>
    tpu.vector_store %arg9[%c0_4, %c0_5], %5 {strides = array<i32>} : memref<216x288xbf16, #tpu.memory_space<vmem>>, vector<8x288xbf16>,
    %7 = vector.extract_strided_slice %4 {offsets = [0, 1], sizes = [8, 288], strides = [1, 1]} : vector<8x384xbf16> to vector<8x288xbf16>
    %c24 = arith.constant 24 : index
    %c0_6 = arith.constant 0 : index
    %8 = vector.load %arg9[%c24, %c0_6] : memref<216x288xbf16, #tpu.memory_space<vmem>>, vector<8x288xbf16>
    tpu.vector_store %arg9[%c24, %c0_6], %7 {strides = array<i32>} : memref<216x288xbf16, #tpu.memory_space<vmem>>, vector<8x288xbf16>,
    %9 = vector.extract_strided_slice %4 {offsets = [0, 2], sizes = [8, 288], strides = [1, 1]} : vector<8x384xbf16> to vector<8x288xbf16>
    %c48 = arith.constant 48 : index
    %c0_7 = arith.constant 0 : index
    %10 = vector.load %arg9[%c48, %c0_7] : memref<216x288xbf16, #tpu.memory_space<vmem>>, vector<8x288xbf16>
    tpu.vector_store %arg9[%c48, %c0_7], %9 {strides = array<i32>} : memref<216x288xbf16, #tpu.memory_space<vmem>>, vector<8x288xbf16>,
    %11 = vector.extract_strided_slice %4 {offsets = [0, 18], sizes = [8, 288], strides = [1, 1]} : vector<8x384xbf16> to vector<8x288xbf16>
    %c72 = arith.constant 72 : index
    %c0_8 = arith.constant 0 : index
    %12 = vector.load %arg9[%c72, %c0_8] : memref<216x288xbf16, #tpu.memory_space<vmem>>, vector<8x288xbf16>
    tpu.vector_store %arg9[%c72, %c0_8], %11 {strides = array<i32>} : memref<216x288xbf16, #tpu.memory_space<vmem>>, vector<8x288xbf16>,
    %13 = vector.extract_strided_slice %4 {offsets = [0, 19], sizes = [8, 288], strides = [1, 1]} : vector<8x384xbf16> to vector<8x288xbf16>
    %c96 = arith.constant 96 : index
    %c0_9 = arith.constant 0 : index
    %14 = vector.load %arg9[%c96, %c0_9] : memref<216x288xbf16, #tpu.memory_space<vmem>>, vector<8x288xbf16>
    tpu.vector_store %arg9[%c96, %c0_9], %13 {strides = array<i32>} : memref<216x288xbf16, #tpu.memory_space<vmem>>, vector<8x288xbf16>,
    %15 = vector.extract_strided_slice %4 {offsets = [0, 20], sizes = [8, 288], strides = [1, 1]} : vector<8x384xbf16> to vector<8x288xbf16>
    %c120 = arith.constant 120 : index
    %c0_10 = arith.constant 0 : index
    %16 = vector.load %arg9[%c120, %c0_10] : memref<216x288xbf16, #tpu.memory_space<vmem>>, vector<8x288xbf16>
    tpu.vector_store %arg9[%c120, %c0_10], %15 {strides = array<i32>} : memref<216x288xbf16, #tpu.memory_space<vmem>>, vector<8x288xbf16>,
    %17 = vector.extract_strided_slice %4 {offsets = [0, 36], sizes = [8, 288], strides = [1, 1]} : vector<8x384xbf16> to vector<8x288xbf16>
    %c144 = arith.constant 144 : index
    %c0_11 = arith.constant 0 : index
    %18 = vector.load %arg9[%c144, %c0_11] : memref<216x288xbf16, #tpu.memory_space<vmem>>, vector<8x288xbf16>
    tpu.vector_store %arg9[%c144, %c0_11], %17 {strides = array<i32>} : memref<216x288xbf16, #tpu.memory_space<vmem>>, vector<8x288xbf16>,
    %19 = vector.extract_strided_slice %4 {offsets = [0, 37], sizes = [8, 288], strides = [1, 1]} : vector<8x384xbf16> to vector<8x288xbf16>
    %c168 = arith.constant 168 : index
    %c0_12 = arith.constant 0 : index
    %20 = vector.load %arg9[%c168, %c0_12] : memref<216x288xbf16, #tpu.memory_space<vmem>>, vector<8x288xbf16>
    tpu.vector_store %arg9[%c168, %c0_12], %19 {strides = array<i32>} : memref<216x288xbf16, #tpu.memory_space<vmem>>, vector<8x288xbf16>,
    %21 = vector.extract_strided_slice %4 {offsets = [0, 38], sizes = [8, 288], strides = [1, 1]} : vector<8x384xbf16> to vector<8x288xbf16>
    %c192 = arith.constant 192 : index
    %c0_13 = arith.constant 0 : index
    %22 = vector.load %arg9[%c192, %c0_13] : memref<216x288xbf16, #tpu.memory_space<vmem>>, vector<8x288xbf16>
    tpu.vector_store %arg9[%c192, %c0_13], %21 {strides = array<i32>} : memref<216x288xbf16, #tpu.memory_space<vmem>>, vector<8x288xbf16>,
    %c0_14 = arith.constant 0 : index
    %c0_15 = arith.constant 0 : index
    %c0_16 = arith.constant 0 : index
    %c0_17 = arith.constant 0 : index
    %23 = vector.load %arg3[%c0_14, %c0_15, %c0_16, %c0_17] : memref<1x1x8x384xbf16, #tpu.memory_space<vmem>>, vector<1x1x8x384xbf16>
    %24 = vector.shape_cast %23 : vector<1x1x8x384xbf16> to vector<8x384xbf16>
    %25 = vector.extract_strided_slice %24 {offsets = [0, 0], sizes = [8, 288], strides = [1, 1]} : vector<8x384xbf16> to vector<8x288xbf16>
    %c8 = arith.constant 8 : index
    %c0_18 = arith.constant 0 : index
    %26 = vector.load %arg9[%c8, %c0_18] : memref<216x288xbf16, #tpu.memory_space<vmem>>, vector<8x288xbf16>
    tpu.vector_store %arg9[%c8, %c0_18], %25 {strides = array<i32>} : memref<216x288xbf16, #tpu.memory_space<vmem>>, vector<8x288xbf16>,
    %27 = vector.extract_strided_slice %24 {offsets = [0, 1], sizes = [8, 288], strides = [1, 1]} : vector<8x384xbf16> to vector<8x288xbf16>
    %c32 = arith.constant 32 : index
    %c0_19 = arith.constant 0 : index
    %28 = vector.load %arg9[%c32, %c0_19] : memref<216x288xbf16, #tpu.memory_space<vmem>>, vector<8x288xbf16>
    tpu.vector_store %arg9[%c32, %c0_19], %27 {strides = array<i32>} : memref<216x288xbf16, #tpu.memory_space<vmem>>, vector<8x288xbf16>,
    %29 = vector.extract_strided_slice %24 {offsets = [0, 2], sizes = [8, 288], strides = [1, 1]} : vector<8x384xbf16> to vector<8x288xbf16>
    %c56 = arith.constant 56 : index
    %c0_20 = arith.constant 0 : index
    %30 = vector.load %arg9[%c56, %c0_20] : memref<216x288xbf16, #tpu.memory_space<vmem>>, vector<8x288xbf16>
    tpu.vector_store %arg9[%c56, %c0_20], %29 {strides = array<i32>} : memref<216x288xbf16, #tpu.memory_space<vmem>>, vector<8x288xbf16>,
    %31 = vector.extract_strided_slice %24 {offsets = [0, 18], sizes = [8, 288], strides = [1, 1]} : vector<8x384xbf16> to vector<8x288xbf16>
    %c80 = arith.constant 80 : index
    %c0_21 = arith.constant 0 : index
    %32 = vector.load %arg9[%c80, %c0_21] : memref<216x288xbf16, #tpu.memory_space<vmem>>, vector<8x288xbf16>
    tpu.vector_store %arg9[%c80, %c0_21], %31 {strides = array<i32>} : memref<216x288xbf16, #tpu.memory_space<vmem>>, vector<8x288xbf16>,
    %33 = vector.extract_strided_slice %24 {offsets = [0, 19], sizes = [8, 288], strides = [1, 1]} : vector<8x384xbf16> to vector<8x288xbf16>
    %c104 = arith.constant 104 : index
    %c0_22 = arith.constant 0 : index
    %34 = vector.load %arg9[%c104, %c0_22] : memref<216x288xbf16, #tpu.memory_space<vmem>>, vector<8x288xbf16>
    tpu.vector_store %arg9[%c104, %c0_22], %33 {strides = array<i32>} : memref<216x288xbf16, #tpu.memory_space<vmem>>, vector<8x288xbf16>,
    %35 = vector.extract_strided_slice %24 {offsets = [0, 20], sizes = [8, 288], strides = [1, 1]} : vector<8x384xbf16> to vector<8x288xbf16>
    %c128 = arith.constant 128 : index
    %c0_23 = arith.constant 0 : index
    %36 = vector.load %arg9[%c128, %c0_23] : memref<216x288xbf16, #tpu.memory_space<vmem>>, vector<8x288xbf16>
    tpu.vector_store %arg9[%c128, %c0_23], %35 {strides = array<i32>} : memref<216x288xbf16, #tpu.memory_space<vmem>>, vector<8x288xbf16>,
    %37 = vector.extract_strided_slice %24 {offsets = [0, 36], sizes = [8, 288], strides = [1, 1]} : vector<8x384xbf16> to vector<8x288xbf16>
    %c152 = arith.constant 152 : index
    %c0_24 = arith.constant 0 : index
    %38 = vector.load %arg9[%c152, %c0_24] : memref<216x288xbf16, #tpu.memory_space<vmem>>, vector<8x288xbf16>
    tpu.vector_store %arg9[%c152, %c0_24], %37 {strides = array<i32>} : memref<216x288xbf16, #tpu.memory_space<vmem>>, vector<8x288xbf16>,
    %39 = vector.extract_strided_slice %24 {offsets = [0, 37], sizes = [8, 288], strides = [1, 1]} : vector<8x384xbf16> to vector<8x288xbf16>
    %c176 = arith.constant 176 : index
    %c0_25 = arith.constant 0 : index
    %40 = vector.load %arg9[%c176, %c0_25] : memref<216x288xbf16, #tpu.memory_space<vmem>>, vector<8x288xbf16>
    tpu.vector_store %arg9[%c176, %c0_25], %39 {strides = array<i32>} : memref<216x288xbf16, #tpu.memory_space<vmem>>, vector<8x288xbf16>,
    %41 = vector.extract_strided_slice %24 {offsets = [0, 38], sizes = [8, 288], strides = [1, 1]} : vector<8x384xbf16> to vector<8x288xbf16>
    %c200 = arith.constant 200 : index
    %c0_26 = arith.constant 0 : index
    %42 = vector.load %arg9[%c200, %c0_26] : memref<216x288xbf16, #tpu.memory_space<vmem>>, vector<8x288xbf16>
    tpu.vector_store %arg9[%c200, %c0_26], %41 {strides = array<i32>} : memref<216x288xbf16, #tpu.memory_space<vmem>>, vector<8x288xbf16>,
    %c0_27 = arith.constant 0 : index
    %c0_28 = arith.constant 0 : index
    %c0_29 = arith.constant 0 : index
    %c0_30 = arith.constant 0 : index
    %43 = vector.load %arg4[%c0_27, %c0_28, %c0_29, %c0_30] : memref<1x1x8x384xbf16, #tpu.memory_space<vmem>>, vector<1x1x8x384xbf16>
    %44 = vector.shape_cast %43 : vector<1x1x8x384xbf16> to vector<8x384xbf16>
    %45 = vector.extract_strided_slice %44 {offsets = [0, 0], sizes = [8, 288], strides = [1, 1]} : vector<8x384xbf16> to vector<8x288xbf16>
    %c16 = arith.constant 16 : index
    %c0_31 = arith.constant 0 : index
    %46 = vector.load %arg9[%c16, %c0_31] : memref<216x288xbf16, #tpu.memory_space<vmem>>, vector<8x288xbf16>
    tpu.vector_store %arg9[%c16, %c0_31], %45 {strides = array<i32>} : memref<216x288xbf16, #tpu.memory_space<vmem>>, vector<8x288xbf16>,
    %47 = vector.extract_strided_slice %44 {offsets = [0, 1], sizes = [8, 288], strides = [1, 1]} : vector<8x384xbf16> to vector<8x288xbf16>
    %c40 = arith.constant 40 : index
    %c0_32 = arith.constant 0 : index
    %48 = vector.load %arg9[%c40, %c0_32] : memref<216x288xbf16, #tpu.memory_space<vmem>>, vector<8x288xbf16>
    tpu.vector_store %arg9[%c40, %c0_32], %47 {strides = array<i32>} : memref<216x288xbf16, #tpu.memory_space<vmem>>, vector<8x288xbf16>,
    %49 = vector.extract_strided_slice %44 {offsets = [0, 2], sizes = [8, 288], strides = [1, 1]} : vector<8x384xbf16> to vector<8x288xbf16>
    %c64 = arith.constant 64 : index
    %c0_33 = arith.constant 0 : index
    %50 = vector.load %arg9[%c64, %c0_33] : memref<216x288xbf16, #tpu.memory_space<vmem>>, vector<8x288xbf16>
    tpu.vector_store %arg9[%c64, %c0_33], %49 {strides = array<i32>} : memref<216x288xbf16, #tpu.memory_space<vmem>>, vector<8x288xbf16>,
    %51 = vector.extract_strided_slice %44 {offsets = [0, 18], sizes = [8, 288], strides = [1, 1]} : vector<8x384xbf16> to vector<8x288xbf16>
    %c88 = arith.constant 88 : index
    %c0_34 = arith.constant 0 : index
    %52 = vector.load %arg9[%c88, %c0_34] : memref<216x288xbf16, #tpu.memory_space<vmem>>, vector<8x288xbf16>
    tpu.vector_store %arg9[%c88, %c0_34], %51 {strides = array<i32>} : memref<216x288xbf16, #tpu.memory_space<vmem>>, vector<8x288xbf16>,
    %53 = vector.extract_strided_slice %44 {offsets = [0, 19], sizes = [8, 288], strides = [1, 1]} : vector<8x384xbf16> to vector<8x288xbf16>
    %c112 = arith.constant 112 : index
    %c0_35 = arith.constant 0 : index
    %54 = vector.load %arg9[%c112, %c0_35] : memref<216x288xbf16, #tpu.memory_space<vmem>>, vector<8x288xbf16>
    tpu.vector_store %arg9[%c112, %c0_35], %53 {strides = array<i32>} : memref<216x288xbf16, #tpu.memory_space<vmem>>, vector<8x288xbf16>,
    %55 = vector.extract_strided_slice %44 {offsets = [0, 20], sizes = [8, 288], strides = [1, 1]} : vector<8x384xbf16> to vector<8x288xbf16>
    %c136 = arith.constant 136 : index
    %c0_36 = arith.constant 0 : index
    %56 = vector.load %arg9[%c136, %c0_36] : memref<216x288xbf16, #tpu.memory_space<vmem>>, vector<8x288xbf16>
    tpu.vector_store %arg9[%c136, %c0_36], %55 {strides = array<i32>} : memref<216x288xbf16, #tpu.memory_space<vmem>>, vector<8x288xbf16>,
    %57 = vector.extract_strided_slice %44 {offsets = [0, 36], sizes = [8, 288], strides = [1, 1]} : vector<8x384xbf16> to vector<8x288xbf16>
    %c160 = arith.constant 160 : index
    %c0_37 = arith.constant 0 : index
    %58 = vector.load %arg9[%c160, %c0_37] : memref<216x288xbf16, #tpu.memory_space<vmem>>, vector<8x288xbf16>
    tpu.vector_store %arg9[%c160, %c0_37], %57 {strides = array<i32>} : memref<216x288xbf16, #tpu.memory_space<vmem>>, vector<8x288xbf16>,
    %59 = vector.extract_strided_slice %44 {offsets = [0, 37], sizes = [8, 288], strides = [1, 1]} : vector<8x384xbf16> to vector<8x288xbf16>
    %c184 = arith.constant 184 : index
    %c0_38 = arith.constant 0 : index
    %60 = vector.load %arg9[%c184, %c0_38] : memref<216x288xbf16, #tpu.memory_space<vmem>>, vector<8x288xbf16>
    tpu.vector_store %arg9[%c184, %c0_38], %59 {strides = array<i32>} : memref<216x288xbf16, #tpu.memory_space<vmem>>, vector<8x288xbf16>,
    %61 = vector.extract_strided_slice %44 {offsets = [0, 38], sizes = [8, 288], strides = [1, 1]} : vector<8x384xbf16> to vector<8x288xbf16>
    %c208 = arith.constant 208 : index
    %c0_39 = arith.constant 0 : index
    %62 = vector.load %arg9[%c208, %c0_39] : memref<216x288xbf16, #tpu.memory_space<vmem>>, vector<8x288xbf16>
    tpu.vector_store %arg9[%c208, %c0_39], %61 {strides = array<i32>} : memref<216x288xbf16, #tpu.memory_space<vmem>>, vector<8x288xbf16>,
    %c0_40 = arith.constant 0 : index
    %c0_41 = arith.constant 0 : index
    %63 = vector.load %arg5[%c0_40, %c0_41] : memref<16x216xbf16, #tpu.memory_space<vmem>>, vector<16x216xbf16>
    %c0_42 = arith.constant 0 : index
    %c0_43 = arith.constant 0 : index
    %64 = vector.load %arg9[%c0_42, %c0_43] : memref<216x288xbf16, #tpu.memory_space<vmem>>, vector<216x288xbf16>
    %cst = arith.constant dense<0.000000e+00> : vector<16x288xf32>
    %65 = tpu.matmul %63, %64, %cst {dimension_numbers = #tpu.dot_dimension_numbers<[1], [0], [0], [1], [0, 0, 1, 1], [], []>} : vector<16x216xbf16>, vector<216x288xbf16>, vector<16x288xf32> -> vector<16x288xf32>
    %c0_44 = arith.constant 0 : index
    %c0_45 = arith.constant 0 : index
    %66 = vector.load %arg6[%c0_44, %c0_45] : memref<16x1xf32, #tpu.memory_space<vmem>>, vector<16x1xf32>
    %67 = vector.broadcast %66 : vector<16x1xf32> to vector<16x288xf32>
    %68 = arith.addf %65, %67 : vector<16x288xf32>
    %69 = vector.extract_strided_slice %68 {offsets = [0, 0], sizes = [8, 288], strides = [1, 1]} : vector<16x288xf32> to vector<8x288xf32>
    %cst_46 = arith.constant 0.000000e+00 : f32
    %70 = vector.broadcast %cst_46 : f32 to vector<8x288xf32>
    %71 = arith.maximumf %69, %70 : vector<8x288xf32>
    %72 = vector.extract_strided_slice %68 {offsets = [8, 0], sizes = [8, 288], strides = [1, 1]} : vector<16x288xf32> to vector<8x288xf32>
    %73 = arith.negf %72 : vector<8x288xf32>
    %74 = math.exp %73 : vector<8x288xf32>
    %cst_47 = arith.constant 1.000000e+00 : f32
    %75 = vector.broadcast %cst_47 : f32 to vector<8x288xf32>
    %76 = arith.addf %75, %74 : vector<8x288xf32>
    %77 = arith.divf %75, %76 : vector<8x288xf32>
    %c0_48 = arith.constant 0 : index
    %c0_49 = arith.constant 0 : index
    %78 = vector.load %arg10[%c0_48, %c0_49] : memref<8x288xf32, #tpu.memory_space<vmem>>, vector<8x288xf32>
    %79 = arith.subf %78, %71 : vector<8x288xf32>
    %80 = arith.mulf %77, %79 : vector<8x288xf32>
    %81 = arith.addf %71, %80 : vector<8x288xf32>
    %c0_50 = arith.constant 0 : index
    %c0_51 = arith.constant 0 : index
    %82 = vector.load %arg10[%c0_50, %c0_51] : memref<8x288xf32, #tpu.memory_space<vmem>>, vector<8x288xf32>
    tpu.vector_store %arg10[%c0_50, %c0_51], %81 {strides = array<i32>} : memref<8x288xf32, #tpu.memory_space<vmem>>, vector<8x288xf32>,
    %83 = tpu.iota {dimensions = array<i32: 1>} : vector<1x288xi32>
    %c18_i32 = arith.constant 18 : i32
    %c0_i32_52 = arith.constant 0 : i32
    %84 = arith.cmpi eq, %c18_i32, %c0_i32_52 : i32
    %c1_i32 = arith.constant 1 : i32
    %85 = arith.select %84, %c1_i32, %c18_i32 : i32
    %86 = vector.broadcast %85 : i32 to vector<1x288xi32>
    %87 = arith.remsi %83, %86 : vector<1x288xi32>
    %c0_i32_53 = arith.constant 0 : i32
    %88 = vector.broadcast %c0_i32_53 : i32 to vector<1x288xi32>
    %89 = arith.cmpi ne, %87, %88 : vector<1x288xi32>
    %c0_i32_54 = arith.constant 0 : i32
    %90 = vector.broadcast %c0_i32_54 : i32 to vector<1x288xi32>
    %91 = arith.cmpi slt, %87, %90 : vector<1x288xi32>
    %c0_i32_55 = arith.constant 0 : i32
    %92 = arith.cmpi slt, %85, %c0_i32_55 : i32
    %93 = vector.broadcast %92 : i1 to vector<1x288xi1>
    %94 = vector.broadcast %93 : vector<1x288xi1> to vector<1x288xi1>
    %95 = arith.xori %91, %94 : vector<1x288xi1>
    %96 = arith.andi %95, %89 : vector<1x288xi1>
    %97 = vector.broadcast %85 : i32 to vector<1x288xi32>
    %98 = arith.addi %87, %97 : vector<1x288xi32>
    %99 = arith.select %96, %98, %87 : vector<1x288xi1>, vector<1x288xi32>
    %c16_i32 = arith.constant 16 : i32
    %100 = vector.broadcast %c16_i32 : i32 to vector<1x288xi32>
    %101 = arith.cmpi slt, %99, %100 : vector<1x288xi32>
    %cst_56 = arith.constant 0.000000e+00 : f32
    %102 = vector.shape_cast %101 : vector<1x288xi1> to vector<1x288xi1>
    %103 = vector.broadcast %102 : vector<1x288xi1> to vector<8x288xi1>
    %104 = vector.broadcast %cst_56 : f32 to vector<8x288xf32>
    %105 = arith.select %103, %81, %104 : vector<8x288xi1>, vector<8x288xf32>
    %106 = arith.truncf %105 : vector<8x288xf32> to vector<8x288xbf16>
    %cst_57 = arith.constant 0.000000e+00 : bf16
    %107 = vector.broadcast %cst_57 : bf16 to vector<1x1x8x384xbf16>
    %c0_58 = arith.constant 0 : index
    %c0_59 = arith.constant 0 : index
    %c0_60 = arith.constant 0 : index
    %c0_61 = arith.constant 0 : index
    %108 = vector.load %arg8[%c0_58, %c0_59, %c0_60, %c0_61] : memref<1x1x8x384xbf16, #tpu.memory_space<vmem>>, vector<1x1x8x384xbf16>
    tpu.vector_store %arg8[%c0_58, %c0_59, %c0_60, %c0_61], %107 {strides = array<i32>} : memref<1x1x8x384xbf16, #tpu.memory_space<vmem>>, vector<1x1x8x384xbf16>,
    %c0_62 = arith.constant 0 : index
    %c0_63 = arith.constant 0 : index
    %c0_64 = arith.constant 0 : index
    %c19 = arith.constant 19 : index
    %109 = vector.load %arg8[%c0_62, %c0_63, %c0_64, %c19] : memref<1x1x8x384xbf16, #tpu.memory_space<vmem>>, vector<1x1x8x288xbf16>
    %110 = vector.shape_cast %109 : vector<1x1x8x288xbf16> to vector<8x288xbf16>
    %111 = vector.shape_cast %106 : vector<8x288xbf16> to vector<1x1x8x288xbf16>
    tpu.vector_store %arg8[%c0_62, %c0_63, %c0_64, %c19], %111 {strides = array<i32>} : memref<1x1x8x384xbf16, #tpu.memory_space<vmem>>, vector<1x1x8x288xbf16>,
    return
  }
  func.func @transform_0(%arg0: i32, %arg1: i32) -> (i32, i32, i32, i32) {
    %c0_i32 = arith.constant 0 : i32
    %0 = arith.addi %arg1, %c0_i32 : i32
    %c0_i32_0 = arith.constant 0 : i32
    %c0_i32_1 = arith.constant 0 : i32
    %c0_i32_2 = arith.constant 0 : i32
    return %arg0, %0, %c0_i32_0, %c0_i32_1 : i32, i32, i32, i32
  }
  func.func @transform_1(%arg0: i32, %arg1: i32) -> (i32, i32, i32, i32) {
    %c1_i32 = arith.constant 1 : i32
    %0 = arith.addi %arg1, %c1_i32 : i32
    %c0_i32 = arith.constant 0 : i32
    %c0_i32_0 = arith.constant 0 : i32
    %c0_i32_1 = arith.constant 0 : i32
    return %arg0, %0, %c0_i32, %c0_i32_0 : i32, i32, i32, i32
  }
  func.func @transform_2(%arg0: i32, %arg1: i32) -> (i32, i32, i32, i32) {
    %c2_i32 = arith.constant 2 : i32
    %0 = arith.addi %arg1, %c2_i32 : i32
    %c0_i32 = arith.constant 0 : i32
    %c0_i32_0 = arith.constant 0 : i32
    %c0_i32_1 = arith.constant 0 : i32
    return %arg0, %0, %c0_i32, %c0_i32_0 : i32, i32, i32, i32
  }
  func.func @transform_3(%arg0: i32, %arg1: i32) -> (i32, i32) {
    %c0_i32 = arith.constant 0 : i32
    %c0_i32_0 = arith.constant 0 : i32
    %c0_i32_1 = arith.constant 0 : i32
    return %c0_i32, %c0_i32_0 : i32, i32
  }
  func.func @transform_4(%arg0: i32, %arg1: i32) -> (i32, i32) {
    %c0_i32 = arith.constant 0 : i32
    %c0_i32_0 = arith.constant 0 : i32
    %c0_i32_1 = arith.constant 0 : i32
    return %c0_i32, %c0_i32_0 : i32, i32
  }
  func.func @transform_6(%arg0: i32, %arg1: i32) -> (i32, i32, i32, i32) {
    %c1_i32 = arith.constant 1 : i32
    %0 = arith.addi %arg1, %c1_i32 : i32
    %c0_i32 = arith.constant 0 : i32
    %c0_i32_0 = arith.constant 0 : i32
    %c0_i32_1 = arith.constant 0 : i32
    return %arg0, %0, %c0_i32, %c0_i32_0 : i32, i32, i32, i32
  }
}

module attributes {stable_mosaic.version = 11 : i64} {
  func.func @kernel(%arg0: i32, %arg1: i32, %arg2: memref<1x1x8x384xbf16, #tpu.memory_space<vmem>>, %arg3: memref<1x1x8x384xbf16, #tpu.memory_space<vmem>>, %arg4: memref<1x1x8x384xbf16, #tpu.memory_space<vmem>>, %arg5: memref<16x216xbf16, #tpu.memory_space<vmem>>, %arg6: memref<16x1xf32, #tpu.memory_space<vmem>>, %arg7: memref<1x1x8x384xbf16, #tpu.memory_space<vmem>>, %arg8: memref<8x8xbf16, #tpu.memory_space<vmem>>, %arg9: memref<8x1xf32, #tpu.memory_space<vmem>>, %arg10: memref<1x1x8x288xf32, #tpu.memory_space<vmem>>, %arg11: memref<216x288xbf16, #tpu.memory_space<vmem>>, %arg12: memref<8x288xf32, #tpu.memory_space<vmem>>) attributes {dimension_semantics = [#tpu.dimension_semantics<parallel>, #tpu.dimension_semantics<arbitrary>], iteration_bounds = array<i64: 2, 8>, scalar_prefetch = 0 : i64, scratch_operands = 2 : i64, tpu.core_type = #tpu.core_type<tc>, window_params = [{transform_indices = @transform_0, window_bounds = array<i64: 1, 1, 8, 384>}, {transform_indices = @transform_1, window_bounds = array<i64: 1, 1, 8, 384>}, {transform_indices = @transform_2, window_bounds = array<i64: 1, 1, 8, 384>}, {pipeline_mode = #tpu.pipeline_mode<synchronous>, transform_indices = @transform_3, window_bounds = array<i64: 16, 216>}, {pipeline_mode = #tpu.pipeline_mode<synchronous>, transform_indices = @transform_4, window_bounds = array<i64: 16, 1>}, {transform_indices = @transform_5, window_bounds = array<i64: 1, 1, 8, 384>}, {pipeline_mode = #tpu.pipeline_mode<synchronous>, transform_indices = @transform_6, window_bounds = array<i64: 8, 8>}, {pipeline_mode = #tpu.pipeline_mode<synchronous>, transform_indices = @transform_7, window_bounds = array<i64: 8, 1>}, {transform_indices = @transform_8, window_bounds = array<i64: 1, 1, 8, 288>}]} {
    %c0_i32 = arith.constant 0 : i32
    %0 = arith.cmpi eq, %arg1, %c0_i32 : i32
    %1 = arith.extui %0 : i1 to i32
    %c0_i32_0 = arith.constant 0 : i32
    %2 = arith.cmpi ne, %1, %c0_i32_0 : i32
    scf.if %2 {
      %cst_65 = arith.constant 0.000000e+00 : f32
      %95 = vector.broadcast %cst_65 : f32 to vector<8x288xf32>
      %c0_66 = arith.constant 0 : index
      %c0_67 = arith.constant 0 : index
      %96 = vector.load %arg12[%c0_66, %c0_67] : memref<8x288xf32, #tpu.memory_space<vmem>>, vector<8x288xf32>
      tpu.vector_store %arg12[%c0_66, %c0_67], %95 {strides = array<i32>} : memref<8x288xf32, #tpu.memory_space<vmem>>, vector<8x288xf32>,
    } else {
    }
    %c0 = arith.constant 0 : index
    %c0_1 = arith.constant 0 : index
    %c0_2 = arith.constant 0 : index
    %c0_3 = arith.constant 0 : index
    %3 = vector.load %arg2[%c0, %c0_1, %c0_2, %c0_3] : memref<1x1x8x384xbf16, #tpu.memory_space<vmem>>, vector<1x1x8x384xbf16>
    %4 = vector.shape_cast %3 : vector<1x1x8x384xbf16> to vector<8x384xbf16>
    %5 = vector.extract_strided_slice %4 {offsets = [0, 0], sizes = [8, 288], strides = [1, 1]} : vector<8x384xbf16> to vector<8x288xbf16>
    %c0_4 = arith.constant 0 : index
    %c0_5 = arith.constant 0 : index
    %6 = vector.load %arg11[%c0_4, %c0_5] : memref<216x288xbf16, #tpu.memory_space<vmem>>, vector<8x288xbf16>
    tpu.vector_store %arg11[%c0_4, %c0_5], %5 {strides = array<i32>} : memref<216x288xbf16, #tpu.memory_space<vmem>>, vector<8x288xbf16>,
    %7 = vector.extract_strided_slice %4 {offsets = [0, 1], sizes = [8, 288], strides = [1, 1]} : vector<8x384xbf16> to vector<8x288xbf16>
    %c24 = arith.constant 24 : index
    %c0_6 = arith.constant 0 : index
    %8 = vector.load %arg11[%c24, %c0_6] : memref<216x288xbf16, #tpu.memory_space<vmem>>, vector<8x288xbf16>
    tpu.vector_store %arg11[%c24, %c0_6], %7 {strides = array<i32>} : memref<216x288xbf16, #tpu.memory_space<vmem>>, vector<8x288xbf16>,
    %9 = vector.extract_strided_slice %4 {offsets = [0, 2], sizes = [8, 288], strides = [1, 1]} : vector<8x384xbf16> to vector<8x288xbf16>
    %c48 = arith.constant 48 : index
    %c0_7 = arith.constant 0 : index
    %10 = vector.load %arg11[%c48, %c0_7] : memref<216x288xbf16, #tpu.memory_space<vmem>>, vector<8x288xbf16>
    tpu.vector_store %arg11[%c48, %c0_7], %9 {strides = array<i32>} : memref<216x288xbf16, #tpu.memory_space<vmem>>, vector<8x288xbf16>,
    %11 = vector.extract_strided_slice %4 {offsets = [0, 18], sizes = [8, 288], strides = [1, 1]} : vector<8x384xbf16> to vector<8x288xbf16>
    %c72 = arith.constant 72 : index
    %c0_8 = arith.constant 0 : index
    %12 = vector.load %arg11[%c72, %c0_8] : memref<216x288xbf16, #tpu.memory_space<vmem>>, vector<8x288xbf16>
    tpu.vector_store %arg11[%c72, %c0_8], %11 {strides = array<i32>} : memref<216x288xbf16, #tpu.memory_space<vmem>>, vector<8x288xbf16>,
    %13 = vector.extract_strided_slice %4 {offsets = [0, 19], sizes = [8, 288], strides = [1, 1]} : vector<8x384xbf16> to vector<8x288xbf16>
    %c96 = arith.constant 96 : index
    %c0_9 = arith.constant 0 : index
    %14 = vector.load %arg11[%c96, %c0_9] : memref<216x288xbf16, #tpu.memory_space<vmem>>, vector<8x288xbf16>
    tpu.vector_store %arg11[%c96, %c0_9], %13 {strides = array<i32>} : memref<216x288xbf16, #tpu.memory_space<vmem>>, vector<8x288xbf16>,
    %15 = vector.extract_strided_slice %4 {offsets = [0, 20], sizes = [8, 288], strides = [1, 1]} : vector<8x384xbf16> to vector<8x288xbf16>
    %c120 = arith.constant 120 : index
    %c0_10 = arith.constant 0 : index
    %16 = vector.load %arg11[%c120, %c0_10] : memref<216x288xbf16, #tpu.memory_space<vmem>>, vector<8x288xbf16>
    tpu.vector_store %arg11[%c120, %c0_10], %15 {strides = array<i32>} : memref<216x288xbf16, #tpu.memory_space<vmem>>, vector<8x288xbf16>,
    %17 = vector.extract_strided_slice %4 {offsets = [0, 36], sizes = [8, 288], strides = [1, 1]} : vector<8x384xbf16> to vector<8x288xbf16>
    %c144 = arith.constant 144 : index
    %c0_11 = arith.constant 0 : index
    %18 = vector.load %arg11[%c144, %c0_11] : memref<216x288xbf16, #tpu.memory_space<vmem>>, vector<8x288xbf16>
    tpu.vector_store %arg11[%c144, %c0_11], %17 {strides = array<i32>} : memref<216x288xbf16, #tpu.memory_space<vmem>>, vector<8x288xbf16>,
    %19 = vector.extract_strided_slice %4 {offsets = [0, 37], sizes = [8, 288], strides = [1, 1]} : vector<8x384xbf16> to vector<8x288xbf16>
    %c168 = arith.constant 168 : index
    %c0_12 = arith.constant 0 : index
    %20 = vector.load %arg11[%c168, %c0_12] : memref<216x288xbf16, #tpu.memory_space<vmem>>, vector<8x288xbf16>
    tpu.vector_store %arg11[%c168, %c0_12], %19 {strides = array<i32>} : memref<216x288xbf16, #tpu.memory_space<vmem>>, vector<8x288xbf16>,
    %21 = vector.extract_strided_slice %4 {offsets = [0, 38], sizes = [8, 288], strides = [1, 1]} : vector<8x384xbf16> to vector<8x288xbf16>
    %c192 = arith.constant 192 : index
    %c0_13 = arith.constant 0 : index
    %22 = vector.load %arg11[%c192, %c0_13] : memref<216x288xbf16, #tpu.memory_space<vmem>>, vector<8x288xbf16>
    tpu.vector_store %arg11[%c192, %c0_13], %21 {strides = array<i32>} : memref<216x288xbf16, #tpu.memory_space<vmem>>, vector<8x288xbf16>,
    %c0_14 = arith.constant 0 : index
    %c0_15 = arith.constant 0 : index
    %c0_16 = arith.constant 0 : index
    %c0_17 = arith.constant 0 : index
    %23 = vector.load %arg3[%c0_14, %c0_15, %c0_16, %c0_17] : memref<1x1x8x384xbf16, #tpu.memory_space<vmem>>, vector<1x1x8x384xbf16>
    %24 = vector.shape_cast %23 : vector<1x1x8x384xbf16> to vector<8x384xbf16>
    %25 = vector.extract_strided_slice %24 {offsets = [0, 0], sizes = [8, 288], strides = [1, 1]} : vector<8x384xbf16> to vector<8x288xbf16>
    %c8 = arith.constant 8 : index
    %c0_18 = arith.constant 0 : index
    %26 = vector.load %arg11[%c8, %c0_18] : memref<216x288xbf16, #tpu.memory_space<vmem>>, vector<8x288xbf16>
    tpu.vector_store %arg11[%c8, %c0_18], %25 {strides = array<i32>} : memref<216x288xbf16, #tpu.memory_space<vmem>>, vector<8x288xbf16>,
    %27 = vector.extract_strided_slice %24 {offsets = [0, 1], sizes = [8, 288], strides = [1, 1]} : vector<8x384xbf16> to vector<8x288xbf16>
    %c32 = arith.constant 32 : index
    %c0_19 = arith.constant 0 : index
    %28 = vector.load %arg11[%c32, %c0_19] : memref<216x288xbf16, #tpu.memory_space<vmem>>, vector<8x288xbf16>
    tpu.vector_store %arg11[%c32, %c0_19], %27 {strides = array<i32>} : memref<216x288xbf16, #tpu.memory_space<vmem>>, vector<8x288xbf16>,
    %29 = vector.extract_strided_slice %24 {offsets = [0, 2], sizes = [8, 288], strides = [1, 1]} : vector<8x384xbf16> to vector<8x288xbf16>
    %c56 = arith.constant 56 : index
    %c0_20 = arith.constant 0 : index
    %30 = vector.load %arg11[%c56, %c0_20] : memref<216x288xbf16, #tpu.memory_space<vmem>>, vector<8x288xbf16>
    tpu.vector_store %arg11[%c56, %c0_20], %29 {strides = array<i32>} : memref<216x288xbf16, #tpu.memory_space<vmem>>, vector<8x288xbf16>,
    %31 = vector.extract_strided_slice %24 {offsets = [0, 18], sizes = [8, 288], strides = [1, 1]} : vector<8x384xbf16> to vector<8x288xbf16>
    %c80 = arith.constant 80 : index
    %c0_21 = arith.constant 0 : index
    %32 = vector.load %arg11[%c80, %c0_21] : memref<216x288xbf16, #tpu.memory_space<vmem>>, vector<8x288xbf16>
    tpu.vector_store %arg11[%c80, %c0_21], %31 {strides = array<i32>} : memref<216x288xbf16, #tpu.memory_space<vmem>>, vector<8x288xbf16>,
    %33 = vector.extract_strided_slice %24 {offsets = [0, 19], sizes = [8, 288], strides = [1, 1]} : vector<8x384xbf16> to vector<8x288xbf16>
    %c104 = arith.constant 104 : index
    %c0_22 = arith.constant 0 : index
    %34 = vector.load %arg11[%c104, %c0_22] : memref<216x288xbf16, #tpu.memory_space<vmem>>, vector<8x288xbf16>
    tpu.vector_store %arg11[%c104, %c0_22], %33 {strides = array<i32>} : memref<216x288xbf16, #tpu.memory_space<vmem>>, vector<8x288xbf16>,
    %35 = vector.extract_strided_slice %24 {offsets = [0, 20], sizes = [8, 288], strides = [1, 1]} : vector<8x384xbf16> to vector<8x288xbf16>
    %c128 = arith.constant 128 : index
    %c0_23 = arith.constant 0 : index
    %36 = vector.load %arg11[%c128, %c0_23] : memref<216x288xbf16, #tpu.memory_space<vmem>>, vector<8x288xbf16>
    tpu.vector_store %arg11[%c128, %c0_23], %35 {strides = array<i32>} : memref<216x288xbf16, #tpu.memory_space<vmem>>, vector<8x288xbf16>,
    %37 = vector.extract_strided_slice %24 {offsets = [0, 36], sizes = [8, 288], strides = [1, 1]} : vector<8x384xbf16> to vector<8x288xbf16>
    %c152 = arith.constant 152 : index
    %c0_24 = arith.constant 0 : index
    %38 = vector.load %arg11[%c152, %c0_24] : memref<216x288xbf16, #tpu.memory_space<vmem>>, vector<8x288xbf16>
    tpu.vector_store %arg11[%c152, %c0_24], %37 {strides = array<i32>} : memref<216x288xbf16, #tpu.memory_space<vmem>>, vector<8x288xbf16>,
    %39 = vector.extract_strided_slice %24 {offsets = [0, 37], sizes = [8, 288], strides = [1, 1]} : vector<8x384xbf16> to vector<8x288xbf16>
    %c176 = arith.constant 176 : index
    %c0_25 = arith.constant 0 : index
    %40 = vector.load %arg11[%c176, %c0_25] : memref<216x288xbf16, #tpu.memory_space<vmem>>, vector<8x288xbf16>
    tpu.vector_store %arg11[%c176, %c0_25], %39 {strides = array<i32>} : memref<216x288xbf16, #tpu.memory_space<vmem>>, vector<8x288xbf16>,
    %41 = vector.extract_strided_slice %24 {offsets = [0, 38], sizes = [8, 288], strides = [1, 1]} : vector<8x384xbf16> to vector<8x288xbf16>
    %c200 = arith.constant 200 : index
    %c0_26 = arith.constant 0 : index
    %42 = vector.load %arg11[%c200, %c0_26] : memref<216x288xbf16, #tpu.memory_space<vmem>>, vector<8x288xbf16>
    tpu.vector_store %arg11[%c200, %c0_26], %41 {strides = array<i32>} : memref<216x288xbf16, #tpu.memory_space<vmem>>, vector<8x288xbf16>,
    %c0_27 = arith.constant 0 : index
    %c0_28 = arith.constant 0 : index
    %c0_29 = arith.constant 0 : index
    %c0_30 = arith.constant 0 : index
    %43 = vector.load %arg4[%c0_27, %c0_28, %c0_29, %c0_30] : memref<1x1x8x384xbf16, #tpu.memory_space<vmem>>, vector<1x1x8x384xbf16>
    %44 = vector.shape_cast %43 : vector<1x1x8x384xbf16> to vector<8x384xbf16>
    %45 = vector.extract_strided_slice %44 {offsets = [0, 0], sizes = [8, 288], strides = [1, 1]} : vector<8x384xbf16> to vector<8x288xbf16>
    %c16 = arith.constant 16 : index
    %c0_31 = arith.constant 0 : index
    %46 = vector.load %arg11[%c16, %c0_31] : memref<216x288xbf16, #tpu.memory_space<vmem>>, vector<8x288xbf16>
    tpu.vector_store %arg11[%c16, %c0_31], %45 {strides = array<i32>} : memref<216x288xbf16, #tpu.memory_space<vmem>>, vector<8x288xbf16>,
    %47 = vector.extract_strided_slice %44 {offsets = [0, 1], sizes = [8, 288], strides = [1, 1]} : vector<8x384xbf16> to vector<8x288xbf16>
    %c40 = arith.constant 40 : index
    %c0_32 = arith.constant 0 : index
    %48 = vector.load %arg11[%c40, %c0_32] : memref<216x288xbf16, #tpu.memory_space<vmem>>, vector<8x288xbf16>
    tpu.vector_store %arg11[%c40, %c0_32], %47 {strides = array<i32>} : memref<216x288xbf16, #tpu.memory_space<vmem>>, vector<8x288xbf16>,
    %49 = vector.extract_strided_slice %44 {offsets = [0, 2], sizes = [8, 288], strides = [1, 1]} : vector<8x384xbf16> to vector<8x288xbf16>
    %c64 = arith.constant 64 : index
    %c0_33 = arith.constant 0 : index
    %50 = vector.load %arg11[%c64, %c0_33] : memref<216x288xbf16, #tpu.memory_space<vmem>>, vector<8x288xbf16>
    tpu.vector_store %arg11[%c64, %c0_33], %49 {strides = array<i32>} : memref<216x288xbf16, #tpu.memory_space<vmem>>, vector<8x288xbf16>,
    %51 = vector.extract_strided_slice %44 {offsets = [0, 18], sizes = [8, 288], strides = [1, 1]} : vector<8x384xbf16> to vector<8x288xbf16>
    %c88 = arith.constant 88 : index
    %c0_34 = arith.constant 0 : index
    %52 = vector.load %arg11[%c88, %c0_34] : memref<216x288xbf16, #tpu.memory_space<vmem>>, vector<8x288xbf16>
    tpu.vector_store %arg11[%c88, %c0_34], %51 {strides = array<i32>} : memref<216x288xbf16, #tpu.memory_space<vmem>>, vector<8x288xbf16>,
    %53 = vector.extract_strided_slice %44 {offsets = [0, 19], sizes = [8, 288], strides = [1, 1]} : vector<8x384xbf16> to vector<8x288xbf16>
    %c112 = arith.constant 112 : index
    %c0_35 = arith.constant 0 : index
    %54 = vector.load %arg11[%c112, %c0_35] : memref<216x288xbf16, #tpu.memory_space<vmem>>, vector<8x288xbf16>
    tpu.vector_store %arg11[%c112, %c0_35], %53 {strides = array<i32>} : memref<216x288xbf16, #tpu.memory_space<vmem>>, vector<8x288xbf16>,
    %55 = vector.extract_strided_slice %44 {offsets = [0, 20], sizes = [8, 288], strides = [1, 1]} : vector<8x384xbf16> to vector<8x288xbf16>
    %c136 = arith.constant 136 : index
    %c0_36 = arith.constant 0 : index
    %56 = vector.load %arg11[%c136, %c0_36] : memref<216x288xbf16, #tpu.memory_space<vmem>>, vector<8x288xbf16>
    tpu.vector_store %arg11[%c136, %c0_36], %55 {strides = array<i32>} : memref<216x288xbf16, #tpu.memory_space<vmem>>, vector<8x288xbf16>,
    %57 = vector.extract_strided_slice %44 {offsets = [0, 36], sizes = [8, 288], strides = [1, 1]} : vector<8x384xbf16> to vector<8x288xbf16>
    %c160 = arith.constant 160 : index
    %c0_37 = arith.constant 0 : index
    %58 = vector.load %arg11[%c160, %c0_37] : memref<216x288xbf16, #tpu.memory_space<vmem>>, vector<8x288xbf16>
    tpu.vector_store %arg11[%c160, %c0_37], %57 {strides = array<i32>} : memref<216x288xbf16, #tpu.memory_space<vmem>>, vector<8x288xbf16>,
    %59 = vector.extract_strided_slice %44 {offsets = [0, 37], sizes = [8, 288], strides = [1, 1]} : vector<8x384xbf16> to vector<8x288xbf16>
    %c184 = arith.constant 184 : index
    %c0_38 = arith.constant 0 : index
    %60 = vector.load %arg11[%c184, %c0_38] : memref<216x288xbf16, #tpu.memory_space<vmem>>, vector<8x288xbf16>
    tpu.vector_store %arg11[%c184, %c0_38], %59 {strides = array<i32>} : memref<216x288xbf16, #tpu.memory_space<vmem>>, vector<8x288xbf16>,
    %61 = vector.extract_strided_slice %44 {offsets = [0, 38], sizes = [8, 288], strides = [1, 1]} : vector<8x384xbf16> to vector<8x288xbf16>
    %c208 = arith.constant 208 : index
    %c0_39 = arith.constant 0 : index
    %62 = vector.load %arg11[%c208, %c0_39] : memref<216x288xbf16, #tpu.memory_space<vmem>>, vector<8x288xbf16>
    tpu.vector_store %arg11[%c208, %c0_39], %61 {strides = array<i32>} : memref<216x288xbf16, #tpu.memory_space<vmem>>, vector<8x288xbf16>,
    %c0_40 = arith.constant 0 : index
    %c0_41 = arith.constant 0 : index
    %63 = vector.load %arg5[%c0_40, %c0_41] : memref<16x216xbf16, #tpu.memory_space<vmem>>, vector<16x216xbf16>
    %c0_42 = arith.constant 0 : index
    %c0_43 = arith.constant 0 : index
    %64 = vector.load %arg11[%c0_42, %c0_43] : memref<216x288xbf16, #tpu.memory_space<vmem>>, vector<216x288xbf16>
    %cst = arith.constant dense<0.000000e+00> : vector<16x288xf32>
    %65 = tpu.matmul %63, %64, %cst {dimension_numbers = #tpu.dot_dimension_numbers<[1], [0], [0], [1], [0, 0, 1, 1], [], []>} : vector<16x216xbf16>, vector<216x288xbf16>, vector<16x288xf32> -> vector<16x288xf32>
    %c0_44 = arith.constant 0 : index
    %c0_45 = arith.constant 0 : index
    %66 = vector.load %arg6[%c0_44, %c0_45] : memref<16x1xf32, #tpu.memory_space<vmem>>, vector<16x1xf32>
    %67 = vector.broadcast %66 : vector<16x1xf32> to vector<16x288xf32>
    %68 = arith.addf %65, %67 : vector<16x288xf32>
    %69 = vector.extract_strided_slice %68 {offsets = [0, 0], sizes = [8, 288], strides = [1, 1]} : vector<16x288xf32> to vector<8x288xf32>
    %cst_46 = arith.constant 0.000000e+00 : f32
    %70 = vector.broadcast %cst_46 : f32 to vector<8x288xf32>
    %71 = arith.maximumf %69, %70 : vector<8x288xf32>
    %72 = vector.extract_strided_slice %68 {offsets = [8, 0], sizes = [8, 288], strides = [1, 1]} : vector<16x288xf32> to vector<8x288xf32>
    %73 = arith.negf %72 : vector<8x288xf32>
    %74 = math.exp %73 : vector<8x288xf32>
    %cst_47 = arith.constant 1.000000e+00 : f32
    %75 = vector.broadcast %cst_47 : f32 to vector<8x288xf32>
    %76 = arith.addf %75, %74 : vector<8x288xf32>
    %77 = arith.divf %75, %76 : vector<8x288xf32>
    %c0_48 = arith.constant 0 : index
    %c0_49 = arith.constant 0 : index
    %78 = vector.load %arg12[%c0_48, %c0_49] : memref<8x288xf32, #tpu.memory_space<vmem>>, vector<8x288xf32>
    %79 = arith.subf %78, %71 : vector<8x288xf32>
    %80 = arith.mulf %77, %79 : vector<8x288xf32>
    %81 = arith.addf %71, %80 : vector<8x288xf32>
    %c0_50 = arith.constant 0 : index
    %c0_51 = arith.constant 0 : index
    %82 = vector.load %arg12[%c0_50, %c0_51] : memref<8x288xf32, #tpu.memory_space<vmem>>, vector<8x288xf32>
    tpu.vector_store %arg12[%c0_50, %c0_51], %81 {strides = array<i32>} : memref<8x288xf32, #tpu.memory_space<vmem>>, vector<8x288xf32>,
    %c0_52 = arith.constant 0 : index
    %c0_53 = arith.constant 0 : index
    %c0_54 = arith.constant 0 : index
    %c0_55 = arith.constant 0 : index
    %83 = vector.load %arg7[%c0_52, %c0_53, %c0_54, %c0_55] : memref<1x1x8x384xbf16, #tpu.memory_space<vmem>>, vector<1x1x8x384xbf16>
    %84 = vector.shape_cast %83 : vector<1x1x8x384xbf16> to vector<8x384xbf16>
    %85 = vector.extract_strided_slice %84 {offsets = [0, 19], sizes = [8, 288], strides = [1, 1]} : vector<8x384xbf16> to vector<8x288xbf16>
    %c0_56 = arith.constant 0 : index
    %c0_57 = arith.constant 0 : index
    %86 = vector.load %arg8[%c0_56, %c0_57] : memref<8x8xbf16, #tpu.memory_space<vmem>>, vector<8x8xbf16>
    %cst_58 = arith.constant dense<0.000000e+00> : vector<8x288xf32>
    %87 = tpu.matmul %86, %85, %cst_58 {dimension_numbers = #tpu.dot_dimension_numbers<[1], [0], [0], [1], [0, 0, 1, 1], [], []>} : vector<8x8xbf16>, vector<8x288xbf16>, vector<8x288xf32> -> vector<8x288xf32>
    %c0_59 = arith.constant 0 : index
    %c0_60 = arith.constant 0 : index
    %88 = vector.load %arg9[%c0_59, %c0_60] : memref<8x1xf32, #tpu.memory_space<vmem>>, vector<8x1xf32>
    %89 = vector.broadcast %88 : vector<8x1xf32> to vector<8x288xf32>
    %90 = arith.addf %87, %89 : vector<8x288xf32>
    %91 = arith.addf %81, %90 : vector<8x288xf32>
    %c0_61 = arith.constant 0 : index
    %c0_62 = arith.constant 0 : index
    %c0_63 = arith.constant 0 : index
    %c0_64 = arith.constant 0 : index
    %92 = vector.load %arg10[%c0_61, %c0_62, %c0_63, %c0_64] : memref<1x1x8x288xf32, #tpu.memory_space<vmem>>, vector<1x1x8x288xf32>
    %93 = vector.shape_cast %92 : vector<1x1x8x288xf32> to vector<8x288xf32>
    %94 = vector.shape_cast %91 : vector<8x288xf32> to vector<1x1x8x288xf32>
    tpu.vector_store %arg10[%c0_61, %c0_62, %c0_63, %c0_64], %94 {strides = array<i32>} : memref<1x1x8x288xf32, #tpu.memory_space<vmem>>, vector<1x1x8x288xf32>,
    return
  }
  func.func @transform_0(%arg0: i32, %arg1: i32) -> (i32, i32, i32, i32) {
    %c7_i32 = arith.constant 7 : i32
    %0 = arith.subi %c7_i32, %arg1 : i32
    %c0_i32 = arith.constant 0 : i32
    %1 = arith.addi %0, %c0_i32 : i32
    %c0_i32_0 = arith.constant 0 : i32
    %c0_i32_1 = arith.constant 0 : i32
    %c0_i32_2 = arith.constant 0 : i32
    return %arg0, %1, %c0_i32_0, %c0_i32_1 : i32, i32, i32, i32
  }
  func.func @transform_1(%arg0: i32, %arg1: i32) -> (i32, i32, i32, i32) {
    %c7_i32 = arith.constant 7 : i32
    %0 = arith.subi %c7_i32, %arg1 : i32
    %c1_i32 = arith.constant 1 : i32
    %1 = arith.addi %0, %c1_i32 : i32
    %c0_i32 = arith.constant 0 : i32
    %c0_i32_0 = arith.constant 0 : i32
    %c0_i32_1 = arith.constant 0 : i32
    return %arg0, %1, %c0_i32, %c0_i32_0 : i32, i32, i32, i32
  }
  func.func @transform_2(%arg0: i32, %arg1: i32) -> (i32, i32, i32, i32) {
    %c7_i32 = arith.constant 7 : i32
    %0 = arith.subi %c7_i32, %arg1 : i32
    %c2_i32 = arith.constant 2 : i32
    %1 = arith.addi %0, %c2_i32 : i32
    %c0_i32 = arith.constant 0 : i32
    %c0_i32_0 = arith.constant 0 : i32
    %c0_i32_1 = arith.constant 0 : i32
    return %arg0, %1, %c0_i32, %c0_i32_0 : i32, i32, i32, i32
  }
  func.func @transform_3(%arg0: i32, %arg1: i32) -> (i32, i32) {
    %c0_i32 = arith.constant 0 : i32
    %c0_i32_0 = arith.constant 0 : i32
    %c0_i32_1 = arith.constant 0 : i32
    return %c0_i32, %c0_i32_0 : i32, i32
  }
  func.func @transform_4(%arg0: i32, %arg1: i32) -> (i32, i32) {
    %c0_i32 = arith.constant 0 : i32
    %c0_i32_0 = arith.constant 0 : i32
    %c0_i32_1 = arith.constant 0 : i32
    return %c0_i32, %c0_i32_0 : i32, i32
  }
  func.func @transform_5(%arg0: i32, %arg1: i32) -> (i32, i32, i32, i32) {
    %c7_i32 = arith.constant 7 : i32
    %0 = arith.subi %c7_i32, %arg1 : i32
    %c1_i32 = arith.constant 1 : i32
    %1 = arith.addi %0, %c1_i32 : i32
    %c0_i32 = arith.constant 0 : i32
    %c0_i32_0 = arith.constant 0 : i32
    %c0_i32_1 = arith.constant 0 : i32
    return %arg0, %1, %c0_i32, %c0_i32_0 : i32, i32, i32, i32
  }
  func.func @transform_6(%arg0: i32, %arg1: i32) -> (i32, i32) {
    %c0_i32 = arith.constant 0 : i32
    %c0_i32_0 = arith.constant 0 : i32
    %c0_i32_1 = arith.constant 0 : i32
    return %c0_i32, %c0_i32_0 : i32, i32
  }
  func.func @transform_7(%arg0: i32, %arg1: i32) -> (i32, i32) {
    %c0_i32 = arith.constant 0 : i32
    %c0_i32_0 = arith.constant 0 : i32
    %c0_i32_1 = arith.constant 0 : i32
    return %c0_i32, %c0_i32_0 : i32, i32
  }
  func.func @transform_8(%arg0: i32, %arg1: i32) -> (i32, i32, i32, i32) {
    %c7_i32 = arith.constant 7 : i32
    %0 = arith.subi %c7_i32, %arg1 : i32
    %c0_i32 = arith.constant 0 : i32
    %c0_i32_0 = arith.constant 0 : i32
    %c0_i32_1 = arith.constant 0 : i32
    return %arg0, %0, %c0_i32, %c0_i32_0 : i32, i32, i32, i32
  }
}

</mosaic_0001>

<bundles_post_ra>
// kernel: conv_block_forward.2
= control target key start
LH: loop header
LB: loop body
LE: loop exit
PB: predicated region body
PF: predicated region fallthrough
CT: control target
= control target key end

     0   :  { %s1800_s21 = smov 0   ;;  %s1802_s22 = smov 0   ;;  %s2214_s0 = inlined_call_operand.vmem [shape: bf16[2,10,8,384], index: 0, kind: input, shape index: {}, may-alias: {0,1,2}]   ;;  %s2215_s1 = inlined_call_operand.vmem [shape: bf16[2,10,8,384], index: 1, kind: input, shape index: {}, may-alias: {0,1,2}]   ;;  %s2216_s2 = inlined_call_operand.vmem [shape: bf16[2,10,8,384], index: 2, kind: input, shape index: {}, may-alias: {0,1,2}]   ;;  %s2217_s3 = inlined_call_operand.vmem [shape: bf16[16,216], index: 3, kind: input, shape index: {}]   ;;  %s2218_s4 = inlined_call_operand.vmem [shape: f32[16,1], index: 4, kind: input, shape index: {}]   ;;  %s2219_s5 = inlined_call_operand.vmem [shape: bf16[2,10,8,384], index: 5, kind: input, shape index: {}, may-alias: {5,6}]   ;;  %s2220_s6 = inlined_call_operand.vmem [shape: bf16[2,10,8,384], index: 6, kind: output, shape index: {}, may-alias: {5,6}]  }
   0x1   :  { %s1804_s23 = smov 0   ;;  %s1806_s24 = smov 0  }
   0x2   :  { %s1808_s25 = smov 0  }
   0x3 LB: > { %s25_s5 = sadd.s32 1, %s1744_s23  ;;  %s28_s26 = sadd.s32 1, %s1748_s24  ;;  %s1752_s25 = sphi %s1808_s25, %s16_s25   ;;  %s1748_s24 = sphi %s1806_s24, %s2230_s24   ;;  %s1744_s23 = sphi %s1804_s23, %s2229_s23   ;;  %s1740_s22 = sphi %s1802_s22, %s2228_s22   ;;  %s1736_s21 = sphi %s1800_s21, %s2227_s21  }
   0x4   : > { %p26_p0 = scmp.ge.s32.totalorder %s25_s5, 8  ;;  %p1426_p1 = scmp.ge.s32.totalorder %s1752_s25, 1 }
   0x5   : > { %p250_p2 = scmp.lt.s32.totalorder %s1752_s25, 17 }
   0x6   : > { %s2232_s5 = smov (%p26_p0, %s25_s5), 0  ;;  %s2234_s26 = smov (!%p26_p0, %s28_s26), %s1748_s24 }
   0x7   : > { %p251_p3 = pnand %p1426_p1, %p250_p2  ;;  %p30_p4 = scmp.ge.s32.totalorder %s2234_s26, 2 }
   0x8   : > { %p307_p5 = scmp.lt.s32.totalorder (!%p251_p3), %s1740_s22, 1  ;;  %p309_p6 = scmp.lt.s32.totalorder (!%p251_p3), %s1736_s21, 9 }
   0x9   : > { %s2236_s26 = smov (%p30_p4, %s2234_s26), 0  ;;  %254 = sbr.rel (%p251_p3) target bundleno = 592 (0x250), region = 40 }
   0xa   : > { %s316_s27 = sadd.s32 (!%p251_p3), 1, %s1736_s21  ;;  %s327_s7 = sadd.s32 (!%p251_p3), 2, %s1736_s21 }
   0xb   : > { %p319_p7 = scmp.lt.s32.totalorder (!%p251_p3), %s316_s27, 9  ;;  %p330_p8 = scmp.lt.s32.totalorder (!%p251_p3), %s327_s7, 9 }
   0xc   : > { %p1431_p9 = scmp.ne.s32.totalorder (!%p251_p3), %s1736_s21, 0 }
   0xe   : > { %s2238_s22 = smov (!%p307_p5, %s1740_s22), 1  ;;  %s2240_s27 = smov (!%p319_p7, %s316_s27), 9 }
   0xf   : > { %s310_s28 = scalar_select %p309_p6, %s1736_s21, 9 }
  0x10   : > { %s1646_s29 = smul.u32 30, %s2238_s22  ;;  %s2242_s7 = smov (!%p330_p8, %s327_s7), 9 }
  0x11   : > { %s1645_s30 = smul.u32 3, %s310_s28 }
  0x12   : > { %s1647_s10 = smul.u32 3, %s2240_s27 }
  0x13   : > { %s313_s8 = sadd.s32 %s1646_s29, %s1645_s30  ;;  %s1648_s27 = smul.u32 3, %s2242_s7 }
  0x14   : > { %s1427_s9 = sshll.u32 %s313_s8, 2  ;;  %s323_s14 = sadd.s32 %s1647_s10, %s1646_s29 }
  0x15   : > { %s1839_s13 = scalar_lea.vmem %s2214_s0, %s1427_s9  ;;  %s1428_s15 = sshll.u32 %s323_s14, 2 }
  0x16   : > { %s1844_s18 = scalar_lea.vmem %s2215_s1, %s1428_s15  ;;  %s1849_s22 = scalar_lea.vmem %s2220_s6, %s1428_s15 }
  0x17   : > { %s334_s28 = sadd.s32 %s1648_s27, %s1646_s29  ;;  %353 = sbr.rel (%p1431_p9) target bundleno = 32 (0x20), region = 44 }
  0x18   : > { %s1429_s30 = sshll.u32 %s334_s28, 2 }
  0x19   : > { %s336_s11 = scalar_lea.vmem %s2216_s2, %s1429_s30 }
  0x1c   : > { %vm356_vm0 = vcmask 261120   ;;  %v1754_v0 = vmov 0.0  }
  0x1d   : > { %354 = vst [vmem:[#allocation3] sm:$0xff] %v1754_v0 }
  0x1e   : > { %355 = vst [vmem:[#allocation3 + $0x8] sm:$0xff] %v1754_v0 }
  0x1f   : > { %357 = vst.msk [vmem:[#allocation3 + $0x10] sm:$0xff] %vm356_vm0, %v1754_v0 }
  0x20 PF: > { %v1855_v1 = vld [vmem:[%s336_s11] sm:$0xff]  ;;  %s1755_s29 = smov 90   ;;  %s1756_s21 = smov 108   ;;  %v1870_v4 = vld [vmem:[%s336_s11 + $0x8] sm:$0xf]  ;;  %vm361_vm1 = vcmask 257024  }
  0x21   : > { %v1858_v2 = vld [vmem:[%s1839_s13] sm:$0xff]  ;;  %662 = vrot.lane.b32.xlu0 %v1855_v1, %s1755_s29  ;;  %574 = vst [vmem:[#allocation2 + $0x18] sm:$0xff] %v1855_v1  ;;  %v1873_v5 = vld [vmem:[%s1839_s13 + $0x8] sm:$0xf]  ;;  %s1757_s7 = smov 109   ;;  %s1758_s10 = smov 91  }
  0x22   : > { %418 = vrot.lane.b32.xlu1 %v1858_v2, %s1756_s21  ;;  %360 = vst [vmem:[#allocation2] sm:$0xff] %v1858_v2  ;;  %457 = vrot.lane.b32.xlu2 %v1858_v2, %s1755_s29  ;;  %v1867_v3 = vld [vmem:[%s1844_s18] sm:$0xff]  ;;  %v471_v6 = vld [vmem:[%s1844_s18 + $0x8] sm:$0xf]  ;;  %s1759_s12 = smov 110   ;;  %s1760_s13 = smov 92  }
  0x23   : > { %472 = vst [vmem:[#allocation2 + $0xc] sm:$0xff] %v1867_v3  ;;  %s1761_s14 = smov 126   ;;  %vm371_vm2 = vcmask 1043456   ;;  %vm464_vm3 = vcmask 736256   ;;  %s1762_s15 = smov 127   ;;  %vm425_vm4 = vcmask 883712  }
  0x24   : > { %362 = vst.msk [vmem:[#allocation2 + $0x8] sm:$0xf] %vm361_vm1, %v1873_v5  ;;  %vm412_vm5 = vcmask 891904   ;;  %vm451_vm6 = vcmask 744448   ;;  %vm399_vm7 = vcmask 900096   ;;  %vm438_vm8 = vcmask 752640  }
  0x25   : > { %473 = vst.msk [vmem:[#allocation2 + $0x14] sm:$0xf] %vm361_vm1, %v471_v6  ;;  %vm386_vm9 = vcmask 1031168   ;;  %vm373_vm10 = vcmask 1039360   ;;  %vm967_vm11 = vcmask 719872  }
  0x26   : > { %575 = vst.msk [vmem:[#allocation2 + $0x20] sm:$0xf] %vm361_vm1, %v1870_v4 }
  0x29   : > { %664 = vrot.lane.b32.xlu0 %v1870_v4, %s1755_s29 }
  0x2a   : > { %420 = vrot.lane.b32.xlu1 %v1873_v5, %s1756_s21  ;;  %459 = vrot.lane.b32.xlu2 %v1873_v5, %s1755_s29 }
  0x31   : > { %560 = vrot.lane.b32.xlu0 %v1867_v3, %s1755_s29 }
  0x32   : > { %562 = vrot.lane.b32.xlu1 %v471_v6, %s1755_s29  ;;  %614 = vrot.lane.b32.xlu2 %v1855_v1, %s1757_s7 }
  0x39   : > { %616 = vrot.lane.b32.xlu0 %v1870_v4, %s1757_s7 }
  0x3a   : > { %405 = vrot.lane.b32.xlu1 %v1858_v2, %s1757_s7  ;;  %407 = vrot.lane.b32.xlu2 %v1873_v5, %s1757_s7 }
  0x41   : > { %512 = vrot.lane.b32.xlu0 %v1867_v3, %s1757_s7 }
  0x42   : > { %514 = vrot.lane.b32.xlu1 %v471_v6, %s1757_s7  ;;  %548 = vrot.lane.b32.xlu2 %v1867_v3, %s1758_s10 }
  0x49   : > { %550 = vrot.lane.b32.xlu0 %v471_v6, %s1758_s10 }
  0x4a   : > { %650 = vrot.lane.b32.xlu1 %v1855_v1, %s1758_s10  ;;  %652 = vrot.lane.b32.xlu2 %v1870_v4, %s1758_s10 }
  0x51   : > { %444 = vrot.lane.b32.xlu0 %v1858_v2, %s1758_s10 }
  0x52   : > { %446 = vrot.lane.b32.xlu1 %v1873_v5, %s1758_s10  ;;  %500 = vrot.lane.b32.xlu2 %v1867_v3, %s1759_s12 }
  0x59   : > { %502 = vrot.lane.b32.xlu0 %v471_v6, %s1759_s12 }
  0x5a   : > { %602 = vrot.lane.b32.xlu1 %v1855_v1, %s1759_s12  ;;  %604 = vrot.lane.b32.xlu2 %v1870_v4, %s1759_s12 }
  0x61   : > { %638 = vrot.lane.b32.xlu0 %v1855_v1, %s1760_s13 }
  0x62   : > { %640 = vrot.lane.b32.xlu1 %v1870_v4, %s1760_s13  ;;  %392 = vrot.lane.b32.xlu2 %v1858_v2, %s1759_s12 }
  0x69   : > { %394 = vrot.lane.b32.xlu0 %v1873_v5, %s1759_s12 }
  0x6a   : > { %431 = vrot.lane.b32.xlu1 %v1858_v2, %s1760_s13  ;;  %433 = vrot.lane.b32.xlu2 %v1873_v5, %s1760_s13 }
  0x71   : > { %536 = vrot.lane.b32.xlu0 %v1867_v3, %s1760_s13 }
  0x72   : > { %538 = vrot.lane.b32.xlu1 %v471_v6, %s1760_s13  ;;  %590 = vrot.lane.b32.xlu2 %v1855_v1, %s1761_s14 }
  0x79   : > { %592 = vrot.lane.b32.xlu0 %v1870_v4, %s1761_s14 }
  0x7a   : > { %379 = vrot.lane.b32.xlu1 %v1858_v2, %s1761_s14  ;;  %381 = vrot.lane.b32.xlu2 %v1873_v5, %s1761_s14 }
  0x7c   : > { %v458_v7 = vpop.permute.xlu2 %457 }
  0x7d   : > { %v461_v8 = vrot.slane %v458_v7, 4 }
  0x81   : > { %488 = vrot.lane.b32.xlu0 %v1867_v3, %s1761_s14 }
  0x82   : > { %490 = vrot.lane.b32.xlu1 %v471_v6, %s1761_s14  ;;  %524 = vrot.lane.b32.xlu2 %v1867_v3, %s1756_s21 }
  0x84   : > { %v460_v9 = vpop.permute.xlu2 %459 }
  0x85   : > { %v462_v10 = vrot.slane %v460_v9, 4  ;;  %469 = vst.msk [vmem:[#allocation2 + $0x128] sm:$0xf] %vm361_vm1, %v460_v9 }
  0x87   : > { %v463_v11 = vsel %vm371_vm2, %v461_v8, %v462_v10 }
  0x88   : > { %v465_v12 = vsel %vm464_vm3, %v458_v7, %v463_v11 }
  0x89   : > { %526 = vrot.lane.b32.xlu0 %v471_v6, %s1756_s21  ;;  %468 = vst [vmem:[#allocation2 + $0x120] sm:$0xff] %v465_v12 }
  0x8a   : > { %626 = vrot.lane.b32.xlu1 %v1855_v1, %s1756_s21  ;;  %628 = vrot.lane.b32.xlu2 %v1870_v4, %s1756_s21  ;;  %s1764_s21 = smov 19  }
  0x8c   : > { %v615_v13 = vpop.permute.xlu2 %614 }
  0x8d   : > { %v618_v44 = vrot.slane %v615_v13, 4 }
  0x90   : > { %v1586_v50 = vld [vmem:[#allocation2 + $0x120] sm:$0xf]  ;;  %v1642_v54 = vld [vmem:[#allocation2 + $0x124] sm:$0xf] }
  0x91   : > { %476 = vrot.lane.b32.xlu0 %v1867_v3, %s1762_s15 }
  0x92   : > { %478 = vrot.lane.b32.xlu1 %v471_v6, %s1762_s15  ;;  %578 = vrot.lane.b32.xlu2 %v1855_v1, %s1762_s15 }
  0x93   : > { %v663_v14 = vpop.permute.xlu0 %662 }
  0x94   : > { %v419_v15 = vpop.permute.xlu1 %418  ;;  %v408_v16 = vpop.permute.xlu2 %407  ;;  %v666_v19 = vrot.slane %v663_v14, 4 }
  0x95   : > { %417 = vst.msk [vmem:[#allocation2 + $0x98] sm:$0xf] %vm361_vm1, %v408_v16  ;;  %v422_v20 = vrot.slane %v419_v15, 4  ;;  %v410_v41 = vrot.slane %v408_v16, 4 }
  0x99   : > { %580 = vrot.lane.b32.xlu0 %v1870_v4, %s1762_s15 }
  0x9a   : > { %365 = vrot.lane.b32.xlu1 %v1858_v2, %s1762_s15  ;;  %367 = vrot.lane.b32.xlu2 %v1873_v5, %s1762_s15 }
  0x9b   : > { %v665_v17 = vpop.permute.xlu0 %664 }
  0x9c   : > { %v421_v18 = vpop.permute.xlu1 %420  ;;  %v667_v21 = vrot.slane %v665_v17, 4  ;;  %673 = vst.msk [vmem:[#allocation2 + $0x140] sm:$0xf] %vm361_vm1, %v665_v17  ;;  %v1928_v23 = vpop.permute.xlu2 %548 }
  0x9d   : > { %v423_v22 = vrot.slane %v421_v18, 4  ;;  %430 = vst.msk [vmem:[#allocation2 + $0xbc] sm:$0xf] %vm361_vm1, %v421_v18  ;;  %v552_v10 = vrot.slane %v1928_v23, 4 }
  0x9e   : > { %v668_v24 = vsel %vm371_vm2, %v666_v19, %v667_v21 }
  0x9f   : > { %v424_v25 = vsel %vm371_vm2, %v422_v20, %v423_v22  ;;  %v669_v26 = vsel %vm464_vm3, %v663_v14, %v668_v24 }
  0xa0   : > { %v426_v27 = vsel %vm425_vm4, %v419_v15, %v424_v25  ;;  %v883_v28 = vunpack.c.l.b16 %v669_v26  ;;  %v884_v29 = vunpack.c.h.b16 %v669_v26 }
  0xa1   : > { %429 = vst [vmem:[#allocation2 + $0xb4] sm:$0xff] %v426_v27 }
  0xa2   : > { %v925_v30 = vpack.c.b16 %v883_v28, %v883_v28  ;;  %v926_v31 = vpack.c.b16 %v884_v29, %v884_v29 }
  0xa3   : > { %v561_v32 = vpop.permute.xlu0 %560 }
  0xa4   : > { %v563_v33 = vpop.permute.xlu1 %562  ;;  %v564_v34 = vrot.slane %v561_v32, 4  ;;  %v973_v36 = vsel %vm371_vm2, %v925_v30, 0  ;;  %v976_v37 = vsel %vm371_vm2, %v926_v31, 0  ;;  %v653_v38 = vpop.permute.xlu2 %652 }
  0xa5   : > { %v565_v35 = vrot.slane %v563_v33, 4  ;;  %571 = vst.msk [vmem:[#allocation2 + $0x134] sm:$0xf] %vm361_vm1, %v563_v33  ;;  %997 = vmatpush.bf16.msra.mxu1 %v973_v36  ;;  %1025 = vmatpush.bf16.msra.mxu3 %v976_v37  ;;  %v655_v7 = vrot.slane %v653_v38, 4 }
  0xa6   : > { %661 = vst.msk [vmem:[#allocation2 + $0x11c] sm:$0xf] %vm361_vm1, %v653_v38 }
  0xa7   : > { %v566_v39 = vsel %vm371_vm2, %v564_v34, %v565_v35 }
  0xa8   : > { %v567_v40 = vsel %vm464_vm3, %v561_v32, %v566_v39  ;;  %v1628_v0 = vld [vmem:[#allocation2 + $0xb0] sm:$0xf0]  ;;  %v1528_v4 = vld [vmem:[#allocation2 + $0xb4] sm:$0xf0] }
  0xa9   : > { %570 = vst [vmem:[#allocation2 + $0x12c] sm:$0xff] %v567_v40 }
  0xab   : > { %v617_v42 = vpop.permute.xlu0 %616 }
  0xac   : > { %v406_v43 = vpop.permute.xlu1 %405  ;;  %v619_v45 = vrot.slane %v617_v42, 4  ;;  %625 = vst.msk [vmem:[#allocation2 + $0xb0] sm:$0xf] %vm361_vm1, %v617_v42  ;;  %v1942_v47 = vpop.permute.xlu2 %500 }
  0xad   : > { %v409_v46 = vrot.slane %v406_v43, 4  ;;  %v504_v40 = vrot.slane %v1942_v47, 4 }
  0xae   : > { %v620_v48 = vsel %vm371_vm2, %v618_v44, %v619_v45 }
  0xaf   : > { %v411_v49 = vsel %vm371_vm2, %v409_v46, %v410_v41  ;;  %v621_v51 = vsel %vm412_vm5, %v615_v13, %v620_v48 }
  0xb0   : > { %v413_v52 = vsel %vm412_vm5, %v406_v43, %v411_v49  ;;  %v1643_v53 = vld [vmem:[#allocation2 + $0x128] sm:$0xf0]  ;;  %v1588_v55 = vld [vmem:[#allocation2 + $0x12c] sm:$0xf0]  ;;  %624 = vst [vmem:[#allocation2 + $0xa8] sm:$0xff] %v621_v51 }
  0xb1   : > { %v1587_v56 = vor.u32 %v1643_v53, %v1586_v50  ;;  %v1591_v57 = vor.u32 %v1642_v54, %v1588_v55  ;;  %416 = vst [vmem:[#allocation2 + $0x90] sm:$0xff] %v413_v52 }
  0xb3   : > { %998 = vmatpush.bf16.msra.mxu1 %v1587_v56  ;;  %1026 = vmatpush.bf16.msra.mxu3 %v1591_v57  ;;  %v513_v58 = vpop.permute.xlu0 %512 }
  0xb4   : > { %v515_v59 = vpop.permute.xlu1 %514  ;;  %v516_v60 = vrot.slane %v513_v58, 4  ;;  %v1949_v62 = vpop.permute.xlu2 %604 }
  0xb5   : > { %v517_v61 = vrot.slane %v515_v59, 4  ;;  %523 = vst.msk [vmem:[#allocation2 + $0xa4] sm:$0xf] %vm361_vm1, %v515_v59  ;;  %v607_v37 = vrot.slane %v1949_v62, 4 }
  0xb6   : > { %613 = vst.msk [vmem:[#allocation2 + $0x8c] sm:$0xf] %vm361_vm1, %v1949_v62 }
  0xb7   : > { %v518_v63 = vsel %vm371_vm2, %v516_v60, %v517_v61  ;;  %v1526_v2 = vld [vmem:[#allocation2 + $0xa8] sm:$0xf]  ;;  %v1627_v3 = vld [vmem:[#allocation2 + $0xac] sm:$0xf] }
  0xb8   : > { %v519_v1 = vsel %vm412_vm5, %v513_v58, %v518_v63  ;;  %v1527_v5 = vor.u32 %v1628_v0, %v1526_v2  ;;  %v1531_v6 = vor.u32 %v1627_v3, %v1528_v4  ;;  %v1514_v16 = vld [vmem:[#allocation2 + $0x90] sm:$0xf]  ;;  %v1624_v20 = vld [vmem:[#allocation2 + $0x94] sm:$0xf] }
  0xb9   : > { %522 = vst [vmem:[#allocation2 + $0x9c] sm:$0xff] %v519_v1 }
  0xba   : > { %981 = vmatpush.bf16.msra.mxu0 %v1527_v5  ;;  %1009 = vmatpush.bf16.msra.mxu2 %v1531_v6 }
  0xbb   : > { %v551_v8 = vpop.permute.xlu0 %550 }
  0xbc   : > { %v651_v9 = vpop.permute.xlu1 %650  ;;  %v553_v11 = vrot.slane %v551_v8, 4  ;;  %559 = vst.msk [vmem:[#allocation2 + $0x110] sm:$0xf] %vm361_vm1, %v551_v8  ;;  %v1957_v13 = vpop.permute.xlu2 %392 }
  0xbd   : > { %v654_v12 = vrot.slane %v651_v9, 4  ;;  %v396_v0 = vrot.slane %v1957_v13, 4 }
  0xbe   : > { %v554_v14 = vsel %vm371_vm2, %v552_v10, %v553_v11 }
  0xbf   : > { %v656_v15 = vsel %vm371_vm2, %v654_v12, %v655_v7  ;;  %v555_v17 = vsel %vm451_vm6, %v1928_v23, %v554_v14 }
  0xc0   : > { %v657_v18 = vsel %vm451_vm6, %v651_v9, %v656_v15  ;;  %v1625_v19 = vld [vmem:[#allocation2 + $0x98] sm:$0xf0]  ;;  %v1516_v21 = vld [vmem:[#allocation2 + $0x9c] sm:$0xf0]  ;;  %558 = vst [vmem:[#allocation2 + $0x108] sm:$0xff] %v555_v17 }
  0xc1   : > { %v1515_v22 = vor.u32 %v1625_v19, %v1514_v16  ;;  %v1519_v24 = vor.u32 %v1624_v20, %v1516_v21  ;;  %660 = vst [vmem:[#allocation2 + $0x114] sm:$0xff] %v657_v18 }
  0xc3   : > { %982 = vmatpush.bf16.msra.mxu0 %v1515_v22  ;;  %1010 = vmatpush.bf16.msra.mxu2 %v1519_v24  ;;  %v445_v25 = vpop.permute.xlu0 %444 }
  0xc4   : > { %v447_v26 = vpop.permute.xlu1 %446  ;;  %v448_v27 = vrot.slane %v445_v25, 4  ;;  %v434_v29 = vpop.permute.xlu2 %433 }
  0xc5   : > { %v449_v28 = vrot.slane %v447_v26, 4  ;;  %456 = vst.msk [vmem:[#allocation2 + $0x104] sm:$0xf] %vm361_vm1, %v447_v26  ;;  %v436_v61 = vrot.slane %v434_v29, 4 }
  0xc6   : > { %443 = vst.msk [vmem:[#allocation2 + $0xe0] sm:$0xf] %vm361_vm1, %v434_v29 }
  0xc7   : > { %v450_v23 = vsel %vm371_vm2, %v448_v27, %v449_v28  ;;  %v1574_v31 = vld [vmem:[#allocation2 + $0x108] sm:$0xf]  ;;  %v1639_v32 = vld [vmem:[#allocation2 + $0x10c] sm:$0xf] }
  0xc8   : > { %v452_v30 = vsel %vm451_vm6, %v445_v25, %v450_v23  ;;  %v1640_v33 = vld [vmem:[#allocation2 + $0x110] sm:$0xf0]  ;;  %v1576_v34 = vld [vmem:[#allocation2 + $0x114] sm:$0xf0] }
  0xc9   : > { %455 = vst [vmem:[#allocation2 + $0xfc] sm:$0xff] %v452_v30  ;;  %v1575_v35 = vor.u32 %v1640_v33, %v1574_v31  ;;  %v1579_v36 = vor.u32 %v1639_v32, %v1576_v34 }
  0xcb   : > { %999 = vmatpush.bf16.msra.mxu1 %v1575_v35  ;;  %1027 = vmatpush.bf16.msra.mxu3 %v1579_v36  ;;  %v503_v38 = vpop.permute.xlu0 %502 }
  0xcc   : > { %v603_v39 = vpop.permute.xlu1 %602  ;;  %v505_v41 = vrot.slane %v503_v38, 4  ;;  %511 = vst.msk [vmem:[#allocation2 + $0x80] sm:$0xf] %vm361_vm1, %v503_v38  ;;  %v1971_v43 = vpop.permute.xlu2 %590 }
  0xcd   : > { %v606_v42 = vrot.slane %v603_v39, 4  ;;  %v594_v25 = vrot.slane %v1971_v43, 4 }
  0xce   : > { %v506_v44 = vsel %vm371_vm2, %v504_v40, %v505_v41 }
  0xcf   : > { %v608_v45 = vsel %vm371_vm2, %v606_v42, %v607_v37  ;;  %v507_v46 = vsel %vm399_vm7, %v1942_v47, %v506_v44 }
  0xd0   : > { %v609_v48 = vsel %vm399_vm7, %v603_v39, %v608_v45  ;;  %510 = vst [vmem:[#allocation2 + $0x78] sm:$0xff] %v507_v46  ;;  %v1637_v6 = vld [vmem:[#allocation2 + $0xf8] sm:$0xf0]  ;;  %v1564_v11 = vld [vmem:[#allocation2 + $0xfc] sm:$0xf0] }
  0xd1   : > { %612 = vst [vmem:[#allocation2 + $0x84] sm:$0xff] %v609_v48 }
  0xd3   : > { %v639_v49 = vpop.permute.xlu0 %638 }
  0xd4   : > { %v641_v50 = vpop.permute.xlu1 %640  ;;  %v642_v51 = vrot.slane %v639_v49, 4  ;;  %v382_v53 = vpop.permute.xlu2 %381 }
  0xd5   : > { %v643_v52 = vrot.slane %v641_v50, 4  ;;  %649 = vst.msk [vmem:[#allocation2 + $0xf8] sm:$0xf] %vm361_vm1, %v641_v50  ;;  %v384_v21 = vrot.slane %v382_v53, 4 }
  0xd6   : > { %391 = vst.msk [vmem:[#allocation2 + $0x50] sm:$0xf] %vm361_vm1, %v382_v53 }
  0xd7   : > { %v644_v54 = vsel %vm371_vm2, %v642_v51, %v643_v52  ;;  %v1502_v55 = vld [vmem:[#allocation2 + $0x78] sm:$0xf]  ;;  %v1621_v56 = vld [vmem:[#allocation2 + $0x7c] sm:$0xf] }
  0xd8   : > { %v645_v47 = vsel %vm438_vm8, %v639_v49, %v644_v54  ;;  %v1622_v57 = vld [vmem:[#allocation2 + $0x80] sm:$0xf0]  ;;  %v1504_v58 = vld [vmem:[#allocation2 + $0x84] sm:$0xf0] }
  0xd9   : > { %648 = vst [vmem:[#allocation2 + $0xf0] sm:$0xff] %v645_v47  ;;  %v1503_v59 = vor.u32 %v1622_v57, %v1502_v55  ;;  %v1507_v60 = vor.u32 %v1621_v56, %v1504_v58 }
  0xdb   : > { %983 = vmatpush.bf16.msra.mxu0 %v1503_v59  ;;  %1011 = vmatpush.bf16.msra.mxu2 %v1507_v60  ;;  %v395_v62 = vpop.permute.xlu0 %394 }
  0xdc   : > { %v432_v63 = vpop.permute.xlu1 %431  ;;  %v397_v1 = vrot.slane %v395_v62, 4  ;;  %404 = vst.msk [vmem:[#allocation2 + $0x74] sm:$0xf] %vm361_vm1, %v395_v62  ;;  %v1984_v3 = vpop.permute.xlu2 %524 }
  0xdd   : > { %v435_v2 = vrot.slane %v432_v63, 4  ;;  %v528_v55 = vrot.slane %v1984_v3, 4 }
  0xde   : > { %v398_v4 = vsel %vm371_vm2, %v396_v0, %v397_v1 }
  0xdf   : > { %v437_v5 = vsel %vm371_vm2, %v435_v2, %v436_v61  ;;  %v400_v7 = vsel %vm399_vm7, %v1957_v13, %v398_v4  ;;  %v729_v4 = vld [vmem:[#allocation2 + $0x140] sm:$0xf] }
  0xe0   : > { %v439_v8 = vsel %vm438_vm8, %v432_v63, %v437_v5  ;;  %v1562_v9 = vld [vmem:[#allocation2 + $0xf0] sm:$0xf]  ;;  %v1636_v10 = vld [vmem:[#allocation2 + $0xf4] sm:$0xf]  ;;  %403 = vst [vmem:[#allocation2 + $0x6c] sm:$0xff] %v400_v7  ;;  %v885_v7 = vunpack.c.l.b16 %v729_v4 }
  0xe1   : > { %v1563_v12 = vor.u32 %v1637_v6, %v1562_v9  ;;  %v1567_v14 = vor.u32 %v1636_v10, %v1564_v11  ;;  %442 = vst [vmem:[#allocation2 + $0xd8] sm:$0xff] %v439_v8  ;;  %v1534_v10 = vld [vmem:[#allocation2 + $0xb0] sm:$0xf]  ;;  %v1604_v11 = vld [vmem:[%s2217_s3 + $0x4] sm:$0xf] }
  0xe3   : > { %1000 = vmatpush.bf16.msra.mxu1 %v1563_v12  ;;  %1028 = vmatpush.bf16.msra.mxu3 %v1567_v14  ;;  %v537_v15 = vpop.permute.xlu0 %536 }
  0xe4   : > { %v539_v16 = vpop.permute.xlu1 %538  ;;  %v540_v17 = vrot.slane %v537_v15, 4  ;;  %v629_v19 = vpop.permute.xlu2 %628 }
  0xe5   : > { %v541_v18 = vrot.slane %v539_v16, 4  ;;  %547 = vst.msk [vmem:[#allocation2 + $0xec] sm:$0xf] %vm361_vm1, %v539_v16  ;;  %v631_v52 = vrot.slane %v629_v19, 4  ;;  %v1436_v16 = vld [vmem:[%s2217_s3 + $0x8] sm:$0xf0] }
  0xe6   : > { %637 = vst.msk [vmem:[#allocation2 + $0xd4] sm:$0xf] %vm361_vm1, %v629_v19 }
  0xe7   : > { %v542_v13 = vsel %vm371_vm2, %v540_v17, %v541_v18  ;;  %v1619_v44 = vld [vmem:[#allocation2 + $0x68] sm:$0xf0]  ;;  %v1492_v49 = vld [vmem:[#allocation2 + $0x6c] sm:$0xf0] }
  0xe8   : > { %v543_v20 = vsel %vm438_vm8, %v537_v15, %v542_v13  ;;  %v1550_v30 = vld [vmem:[#allocation2 + $0xd8] sm:$0xf]  ;;  %v1633_v34 = vld [vmem:[#allocation2 + $0xdc] sm:$0xf]  ;;  %v927_v15 = vpack.c.b16 %v885_v7, %v885_v7 }
  0xe9   : > { %546 = vst [vmem:[#allocation2 + $0xe4] sm:$0xff] %v543_v20 }
  0xeb   : > { %v593_v22 = vpop.permute.xlu0 %592 }
  0xec   : > { %v380_v24 = vpop.permute.xlu1 %379  ;;  %v595_v26 = vrot.slane %v593_v22, 4  ;;  %601 = vst.msk [vmem:[#allocation2 + $0x68] sm:$0xf] %vm361_vm1, %v593_v22  ;;  %v1997_v28 = vpop.permute.xlu2 %578 }
  0xed   : > { %v383_v27 = vrot.slane %v380_v24, 4  ;;  %v582_v22 = vrot.slane %v1997_v28, 4 }
  0xee   : > { %v596_v29 = vsel %vm371_vm2, %v594_v25, %v595_v26  ;;  %v2028_v25 = vor.u32 %v1604_v11, %v1436_v16 }
  0xef   : > { %v385_v23 = vsel %vm371_vm2, %v383_v27, %v384_v21  ;;  %v597_v31 = vsel %vm386_vm9, %v1971_v43, %v596_v29  ;;  %v1629_v21 = vld [vmem:[#allocation2 + $0xb8] sm:$0xf0]  ;;  %v1594_v27 = vld [vmem:[#allocation2 + $0x128] sm:$0xf]  ;;  %v1644_v29 = vld [vmem:[#allocation2 + $0x130] sm:$0xf0] }
  0xf0   : > { %v387_v32 = vsel %vm386_vm9, %v380_v24, %v385_v23  ;;  %v1634_v33 = vld [vmem:[#allocation2 + $0xe0] sm:$0xf0]  ;;  %v1552_v35 = vld [vmem:[#allocation2 + $0xe4] sm:$0xf0]  ;;  %600 = vst [vmem:[#allocation2 + $0x60] sm:$0xff] %v597_v31  ;;  %v1535_v24 = vor.u32 %v1629_v21, %v1534_v10 }
  0xf1   : > { %v1551_v36 = vor.u32 %v1634_v33, %v1550_v30  ;;  %v1555_v37 = vor.u32 %v1633_v34, %v1552_v35  ;;  %390 = vst [vmem:[#allocation2 + $0x48] sm:$0xff] %v387_v32  ;;  %v979_v30 = vsel %vm371_vm2, %v927_v15, 0  ;;  %v1626_v31 = vld [vmem:[#allocation2 + $0xa0] sm:$0xf0]  ;;  %v1607_v15 = vld [vmem:[#allocation2 + $0x8] sm:$0xf0] }
  0xf2   : > { %v730_v35 = vld [vmem:[%s2218_s4] sm:$0xff] }
  0xf3   : > { %1001 = vmatpush.bf16.msra.mxu1 %v1551_v36  ;;  %1029 = vmatpush.bf16.msra.mxu3 %v1555_v37  ;;  %v489_v38 = vpop.permute.xlu0 %488  ;;  %v731_v36 = vld [vmem:[%s2218_s4 + $0x8] sm:$0xff]  ;;  %v1522_v37 = vld [vmem:[#allocation2 + $0x98] sm:$0xf] }
  0xf4   : > { %v491_v39 = vpop.permute.xlu1 %490  ;;  %v492_v40 = vrot.slane %v489_v38, 4  ;;  %v2005_v42 = vpop.permute.xlu2 %367 }
  0xf5   : > { %v493_v41 = vrot.slane %v491_v39, 4  ;;  %499 = vst.msk [vmem:[#allocation2 + $0x5c] sm:$0xf] %vm361_vm1, %v491_v39  ;;  %v370_v26 = vrot.slane %v2005_v42, 4  ;;  %v1763_v39 = vmov 0  }
  0xf6   : > { %378 = vst.msk [vmem:[#allocation2 + $0x2c] sm:$0xf] %vm361_vm1, %v2005_v42  ;;  %1701 = vset.pattern.permute.xlu1 %v1763_v39  ;;  %1700 = vset.pattern.permute.xlu0 %v1763_v39 }
  0xf7   : > { %v494_v43 = vsel %vm371_vm2, %v492_v40, %v493_v41  ;;  %v1490_v46 = vld [vmem:[#allocation2 + $0x60] sm:$0xf]  ;;  %v1618_v48 = vld [vmem:[#allocation2 + $0x64] sm:$0xf]  ;;  %1261 = vst [vmem:[%s1849_s22] sm:$0xff] %v1763_v39  ;;  %v1523_v41 = vor.u32 %v1626_v31, %v1522_v37  ;;  %734 = vperm.xlu1 %1701, %v730_v35   ;;  %739 = vperm.xlu0 %1700, %v731_v36   ;;  %v1608_v31 = vld [vmem:[#allocation2 + $0x10] sm:$0xf0] }
  0xf8   : > { %v495_v45 = vsel %vm386_vm9, %v489_v38, %v494_v43  ;;  %v1491_v50 = vor.u32 %v1619_v44, %v1490_v46  ;;  %v1495_v51 = vor.u32 %v1618_v48, %v1492_v49  ;;  %v1478_v59 = vld [vmem:[#allocation2 + $0x48] sm:$0xf]  ;;  %v1615_v63 = vld [vmem:[#allocation2 + $0x4c] sm:$0xf]  ;;  %v1595_v38 = vor.u32 %v1644_v29, %v1594_v27  ;;  %v1641_v43 = vld [vmem:[#allocation2 + $0x118] sm:$0xf0] }
  0xf9   : > { %498 = vst [vmem:[#allocation2 + $0x54] sm:$0xff] %v495_v45  ;;  %v1510_v46 = vld [vmem:[#allocation2 + $0x80] sm:$0xf]  ;;  %v1623_v48 = vld [vmem:[#allocation2 + $0x88] sm:$0xf0] }
  0xfa   : > { %984 = vmatpush.bf16.msra.mxu0 %v1491_v50  ;;  %1012 = vmatpush.bf16.msra.mxu2 %v1495_v51  ;;  %1262 = vst [vmem:[%s1849_s22 + $0x8] sm:$0xf] %v1763_v39  ;;  %v1582_v49 = vld [vmem:[#allocation2 + $0x110] sm:$0xf]  ;;  %v1511_v50 = vor.u32 %v1623_v48, %v1510_v46  ;;  %v1605_v27 = vld [vmem:[%s2217_s3 + $0x4] sm:$0xf0] }
  0xfb   : > { %v527_v53 = vpop.permute.xlu0 %526  ;;  %v1583_v51 = vor.u32 %v1641_v43, %v1582_v49 }
  0xfc   : > { %v627_v54 = vpop.permute.xlu1 %626  ;;  %v529_v56 = vrot.slane %v527_v53, 4  ;;  %535 = vst.msk [vmem:[#allocation2 + $0xc8] sm:$0xf] %vm361_vm1, %v527_v53  ;;  %v1570_v53 = vld [vmem:[#allocation2 + $0xf8] sm:$0xf] }
  0xfd   : > { %v630_v47 = vrot.slane %v627_v54, 4 }
  0xfe   : > { %v530_v57 = vsel %vm371_vm2, %v528_v55, %v529_v56  ;;  %v1620_v55 = vld [vmem:[#allocation2 + $0x70] sm:$0xf0]  ;;  %v1635_v56 = vld [vmem:[#allocation2 + $0xe8] sm:$0xf0] }
  0xff   : > { %v632_v58 = vsel %vm371_vm2, %v630_v47, %v631_v52  ;;  %v531_v60 = vsel %vm425_vm4, %v1984_v3, %v530_v57  ;;  %v1498_v52 = vld [vmem:[#allocation2 + $0x68] sm:$0xf] }
 0x100   : > { %v633_v61 = vsel %vm425_vm4, %v627_v54, %v632_v58  ;;  %v1616_v62 = vld [vmem:[#allocation2 + $0x50] sm:$0xf0]  ;;  %v1480_v0 = vld [vmem:[#allocation2 + $0x54] sm:$0xf0]  ;;  %534 = vst [vmem:[#allocation2 + $0xc0] sm:$0xff] %v531_v60  ;;  %v1499_v47 = vor.u32 %v1620_v55, %v1498_v52 }
 0x101   : > { %v1479_v1 = vor.u32 %v1616_v62, %v1478_v59  ;;  %v1483_v2 = vor.u32 %v1615_v63, %v1480_v0  ;;  %636 = vst [vmem:[#allocation2 + $0xcc] sm:$0xff] %v633_v61  ;;  %v1638_v54 = vld [vmem:[#allocation2 + $0x100] sm:$0xf0]  ;;  %v1454_v59 = vld [vmem:[#allocation2 + $0x18] sm:$0xf] }
 0x102   : > { %v1571_v57 = vor.u32 %v1638_v54, %v1570_v53  ;;  %v1609_v60 = vld [vmem:[#allocation2 + $0x1c] sm:$0xf] }
 0x103   : > { %985 = vmatpush.bf16.msra.mxu0 %v1479_v1  ;;  %1013 = vmatpush.bf16.msra.mxu2 %v1483_v2  ;;  %v477_v5 = vpop.permute.xlu0 %476  ;;  %v1558_v2 = vld [vmem:[#allocation2 + $0xe0] sm:$0xf]  ;;  %v1546_v16 = vld [vmem:[#allocation2 + $0xc8] sm:$0xf] }
 0x104   : > { %v479_v6 = vpop.permute.xlu1 %478  ;;  %v480_v8 = vrot.slane %v477_v5, 4  ;;  %v1559_v7 = vor.u32 %v1635_v56, %v1558_v2 }
 0x105   : > { %v481_v9 = vrot.slane %v479_v6, 4  ;;  %487 = vst.msk [vmem:[#allocation2 + $0x38] sm:$0xf] %vm361_vm1, %v479_v6  ;;  %v1486_v6 = vld [vmem:[#allocation2 + $0x50] sm:$0xf] }
 0x107   : > { %v482_v3 = vsel %vm371_vm2, %v480_v8, %v481_v9  ;;  %v1538_v12 = vld [vmem:[#allocation2 + $0xc0] sm:$0xf]  ;;  %v1630_v14 = vld [vmem:[#allocation2 + $0xc4] sm:$0xf] }
 0x108   : > { %v483_v17 = vsel %vm373_vm10, %v477_v5, %v482_v3  ;;  %v1631_v18 = vld [vmem:[#allocation2 + $0xc8] sm:$0xf0]  ;;  %v1540_v19 = vld [vmem:[#allocation2 + $0xcc] sm:$0xf0] }
 0x109   : > { %486 = vst [vmem:[#allocation2 + $0x30] sm:$0xff] %v483_v17  ;;  %v1539_v13 = vor.u32 %v1631_v18, %v1538_v12  ;;  %v1543_v20 = vor.u32 %v1630_v14, %v1540_v19  ;;  %v1632_v12 = vld [vmem:[#allocation2 + $0xd0] sm:$0xf0]  ;;  %v1442_v14 = vld [vmem:[#allocation2] sm:$0xf] }
 0x10a   : > { %v1606_v17 = vld [vmem:[#allocation2 + $0x4] sm:$0xf]  ;;  %v1444_v18 = vld [vmem:[#allocation2 + $0xc] sm:$0xf0]  ;;  %v1547_v21 = vor.u32 %v1632_v12, %v1546_v16 }
 0x10b   : > { %1002 = vmatpush.bf16.msra.mxu1 %v1539_v13  ;;  %1030 = vmatpush.bf16.msra.mxu3 %v1543_v20  ;;  %v581_v23 = vpop.permute.xlu0 %580  ;;  %v1462_v13 = vld [vmem:[#allocation2 + $0x20] sm:$0xf]  ;;  %v1611_v20 = vld [vmem:[#allocation2 + $0x28] sm:$0xf0] }
 0x10c   : > { %v366_v32 = vpop.permute.xlu1 %365  ;;  %v583_v33 = vrot.slane %v581_v23, 4  ;;  %589 = vst.msk [vmem:[#allocation2 + $0x44] sm:$0xf] %vm361_vm1, %v581_v23  ;;  %v1474_v8 = vld [vmem:[#allocation2 + $0x38] sm:$0xf]  ;;  %v1463_v29 = vor.u32 %v1611_v20, %v1462_v13 }
 0x10d   : > { %v369_v34 = vrot.slane %v366_v32, 4 }
 0x10e   : > { %v584_v40 = vsel %vm371_vm2, %v582_v22, %v583_v33  ;;  %1597 = vmatmul.msk.bf16.vlgmr.msra.gmra.mxu3 %vm967_vm11, %v2028_v25  ;;  %1596 = vmatmul.msk.bf16.vlgmr.msra.gmra.mxu1 %vm967_vm11, %v2028_v25  ;;  %v1443_v22 = vor.u32 %v1607_v15, %v1442_v14  ;;  %v1141_v33 = vlaneseq }
 0x10f   : > { %1037 = vmatpush.bf16.msrb.mxu1 %v1535_v24  ;;  %1053 = vmatpush.bf16.msrb.mxu3 %v979_v30  ;;  %v372_v42 = vsel %vm371_vm2, %v369_v34, %v370_v26  ;;  %v585_v44 = vsel %vm373_vm10, %v1997_v28, %v584_v40  ;;  %v1617_v28 = vld [vmem:[#allocation2 + $0x58] sm:$0xf0]  ;;  %v1447_v24 = vor.u32 %v1606_v17, %v1444_v18  ;;  %v1434_v26 = vld [vmem:[%s2217_s3] sm:$0xf]  ;;  %v1450_v30 = vld [vmem:[#allocation2 + $0x8] sm:$0xf] }
 0x110   : > { %v374_v45 = vsel %vm373_vm10, %v366_v32, %v372_v42  ;;  %588 = vst [vmem:[#allocation2 + $0x3c] sm:$0xff] %v585_v44  ;;  %v1466_v58 = vld [vmem:[#allocation2 + $0x30] sm:$0xf]  ;;  %v1612_v62 = vld [vmem:[#allocation2 + $0x34] sm:$0xf]  ;;  %v1487_v3 = vor.u32 %v1617_v28, %v1486_v6  ;;  %v1435_v23 = vor.u32 %v1605_v27, %v1434_v26  ;;  %v1451_v32 = vor.u32 %v1608_v31, %v1450_v30 }
 0x111   : > { %377 = vst [vmem:[#allocation2 + $0x24] sm:$0xff] %v374_v45  ;;  %v2064_v35 = vand.u32 127, %v1141_v33 }
 0x113   : > { %1038 = vmatpush.bf16.msrb.mxu1 %v1523_v41  ;;  %1054 = vmatpush.bf16.msrb.mxu3 %v1595_v38  ;;  %v1614_v9 = vld [vmem:[#allocation2 + $0x40] sm:$0xf0]  ;;  %v1148_v37 = vand.u32 65535, %v2064_v35  ;;  %v2070_v38 = vadd.s32 256, %v2064_v35  ;;  %v1149_v40 = vshrl.u32 %v2064_v35, 16 }
 0x114   : > { %v1475_v19 = vor.u32 %v1614_v9, %v1474_v8 }
 0x115   : > { %v2076_v41 = vmul.u32 58254, %v1148_v37  ;;  %v1206_v42 = vand.u32 65535, %v2070_v38  ;;  %v1207_v43 = vshrl.u32 %v2070_v38, 16  ;;  %v1151_v48 = vmul.u32 14564, %v1148_v37 }
 0x116   : > { %v2085_v49 = vmul.u32 14564, %v1149_v40 }
 0x117   : > { %1039 = vmatpush.bf16.msrb.mxu1 %v1511_v50  ;;  %1055 = vmatpush.bf16.msrb.mxu3 %v1583_v51  ;;  %v1613_v61 = vld [vmem:[#allocation2 + $0x38] sm:$0xf0]  ;;  %v1468_v63 = vld [vmem:[#allocation2 + $0x3c] sm:$0xf0]  ;;  %v2080_v44 = vmul.u32 58254, %v1206_v42  ;;  %v1155_v50 = vshll.u32 %v2076_v41, 16 }
 0x118   : > { %v1467_v0 = vor.u32 %v1613_v61, %v1466_v58  ;;  %v1471_v1 = vor.u32 %v1612_v62, %v1468_v63  ;;  %v1610_v4 = vld [vmem:[#allocation2 + $0x20] sm:$0xf0]  ;;  %v1456_v5 = vld [vmem:[#allocation2 + $0x24] sm:$0xf0]  ;;  %v1209_v52 = vmul.u32 14564, %v1206_v42  ;;  %v2088_v53 = vmul.u32 14564, %v1207_v43 }
 0x119   : > { %v1455_v10 = vor.u32 %v1610_v4, %v1454_v59  ;;  %v1459_v11 = vor.u32 %v1609_v60, %v1456_v5  ;;  %v1213_v54 = vshll.u32 %v2080_v44, 16  ;;  %vm1159_vm12 = vc.u32 %v1151_v48, %v1155_v50 }
 0x11a   : > { %986 = vmatpush.bf16.msra.mxu0 %v1467_v0  ;;  %1014 = vmatpush.bf16.msra.mxu2 %v1471_v1  ;;  %v1215_v59 = vshll.u32 %v2088_v53, 16  ;;  %v1154_v62 = vmul.u32 58254, %v1149_v40  ;;  %v1212_v0 = vmul.u32 58254, %v1207_v43  ;;  %v1160_v1 = vsel %vm1159_vm12, 1, %v1763_v39 }
 0x11b   : > { %1040 = vmatpush.bf16.msrb.mxu1 %v1499_v47  ;;  %1056 = vmatpush.bf16.msrb.mxu3 %v1571_v57  ;;  %v1157_v47 = vshll.u32 %v2085_v49, 16  ;;  %v1161_v57 = vadd.s32 %v1155_v50, %v1151_v48  ;;  %vm1217_vm13 = vc.u32 %v1209_v52, %v1213_v54  ;;  %v1219_v60 = vadd.s32 %v1213_v54, %v1209_v52 }
 0x11c   : > { %v1218_v6 = vsel %vm1217_vm13, 1, %v1763_v39  ;;  %v1156_v13 = vshrl.u32 %v2076_v41, 16  ;;  %v1216_v41 = vshrl.u32 %v2088_v53, 16 }
 0x11d   : > { %vm1163_vm14 = vc.u32 %v1161_v57, %v1157_v47  ;;  %vm1221_vm0 = vc.u32 %v1219_v60, %v1215_v59  ;;  %v1220_v14 = vadd.s32 %v1218_v6, %v1212_v0 }
 0x11e   : > { %987 = vmatpush.bf16.msra.mxu0 %v1455_v10  ;;  %1015 = vmatpush.bf16.msra.mxu2 %v1459_v11  ;;  %v1162_v10 = vadd.s32 %v1160_v1, %v1154_v62  ;;  %v1164_v15 = vsel %vm1163_vm14, 1, %v1763_v39  ;;  %v1222_v17 = vsel %vm1221_vm0, 1, %v1763_v39 }
 0x11f   : > { %1041 = vmatpush.bf16.msrb.mxu1 %v1487_v3  ;;  %1057 = vmatpush.bf16.msrb.mxu3 %v1559_v7 }
 0x120   : > { %v1166_v20 = vadd.s32 %v1164_v15, %v1162_v10 }
 0x122   : > { %988 = vmatpush.bf16.msra.mxu0 %v1443_v22  ;;  %1016 = vmatpush.bf16.msra.mxu2 %v1447_v24  ;;  %v1214_v22 = vshrl.u32 %v2080_v44, 16  ;;  %v1224_v24 = vadd.s32 %v1222_v17, %v1220_v14  ;;  %v1167_v37 = vadd.s32 %v1166_v20, %v1156_v13 }
 0x123   : > { %1042 = vmatpush.bf16.msrb.mxu1 %v1475_v19  ;;  %1058 = vmatpush.bf16.msrb.mxu3 %v1547_v21 }
 0x124   : > { %v1225_v42 = vadd.s32 %v1224_v24, %v1214_v22 }
 0x125   : > { %989 = vmatmul.bf16.vlgmr.msra.gmra.mxu0 %v1435_v23  ;;  %1017 = vmatmul.bf16.vlgmr.msra.gmra.mxu2 %v1435_v23 }
 0x126   : > { %1598 = vmatmul.msk.bf16.vlgmr.msrb.gmra.mxu3 %vm967_vm11, %v2028_v25  ;;  %v2073_v25 = vadd.s32 128, %v2064_v35 }
 0x127   : > { %1043 = vmatpush.bf16.msrb.mxu1 %v1463_v29 }
 0x128   : > { %v1177_v45 = vand.u32 65535, %v2073_v25  ;;  %v1178_v55 = vshrl.u32 %v2073_v25, 16 }
 0x12a   : > { %v1181_v28 = vmul.u32 58254, %v1177_v45  ;;  %v1180_v58 = vmul.u32 14564, %v1177_v45  ;;  %v1182_v61 = vmul.u32 14564, %v1178_v55  ;;  %v1183_v9 = vmul.u32 58254, %v1178_v55 }
 0x12b   : > { %1044 = vmatpush.bf16.msrb.mxu1 %v1451_v32 }
 0x12c   : > { %v1184_v63 = vshll.u32 %v1181_v28, 16  ;;  %v1186_v2 = vshll.u32 %v1182_v61, 16  ;;  %v1185_v30 = vshrl.u32 %v1181_v28, 16  ;;  %v1187_v44 = vshrl.u32 %v1182_v61, 16 }
 0x12e   : > { %1045 = vmatmul.bf16.vlgmr.msrb.gmra.mxu1 %v1435_v23  ;;  %vm1188_vm15 = vc.u32 %v1180_v58, %v1184_v63  ;;  %v1190_v3 = vadd.s32 %v1184_v63, %v1180_v58  ;;  %v1158_v23 = vshrl.u32 %v2085_v49, 16  ;;  %v1226_v49 = vadd.s32 %v1225_v42, %v1216_v41 }
 0x12f   : > { %v1189_v11 = vsel %vm1188_vm15, 1, %v1763_v39 }
 0x130   : > { %vm1192_vm1 = vc.u32 %v1190_v3, %v1186_v2  ;;  %v1191_v18 = vadd.s32 %v1189_v11, %v1183_v9  ;;  %v1168_v52 = vadd.s32 %v1167_v37, %v1158_v23  ;;  %v1227_v58 = vshrl.u32 %v1226_v49, 4  ;;  %v1127_v11 = vld [vmem:[#allocation3 + $0x10] sm:$0xff] }
 0x131   : > { %v1193_v21 = vsel %vm1192_vm1, 1, %v1763_v39 }
 0x132   : > { %v1195_v31 = vadd.s32 %v1193_v21, %v1191_v18  ;;  %v1169_v57 = vshrl.u32 %v1168_v52, 4 }
 0x134   : > { %v1196_v45 = vadd.s32 %v1195_v31, %v1185_v30  ;;  %v1170_v62 = vmul.u32 18, %v1169_v57 }
 0x136   : > { %v1197_v47 = vadd.s32 %v1196_v45, %v1187_v44 }
 0x138   : > { %v1198_v60 = vshrl.u32 %v1197_v47, 4 }
 0x169   : > { %v740_v5 = vpop.permute.xlu0 %739  ;;  %v735_v48 = vpop.permute.xlu1 %734 }
 0x18b   : > { %v2066_v36 = vpop.f32.mrf.mxu1 }
 0x191   : > { %v2062_v34 = vpop.f32.mrf.mxu3 }
 0x193   : > { %v1006_v51 = vpop.f32.mrf.mxu1 }
 0x199   : > { %v2083_v46 = vpop.f32.mrf.mxu3 }
 0x1a2   : > { %v2092_v56 = vpop.f32.mrf.mxu0 }
 0x1a3   : > { %v991_v55 = vadd.f32 %v2092_v56, %v735_v48  ;;  %v1228_v56 = vmul.u32 18, %v1227_v58 }
 0x1a5   : > { %v2131_v10 = vsub.s32 %v2070_v38, %v1228_v56 }
 0x1a7   : > { %vm1234_vm4 = vcmp.ne.s32.totalorder %v2131_v10, 0  ;;  %vm1237_vm6 = vcmp.lt.s32.totalorder %v2131_v10, 0  ;;  %v1243_v22 = vadd.s32 18, %v2131_v10 }
 0x1a8   : > { %v1018_v8 = vpop.f32.mrf.mxu2  ;;  %vm2165_vm14 = vmand %vm1237_vm6, %vm1234_vm4 }
 0x1a9   : > { %v2097_v4 = vpop.f32.mrf.mxu3  ;;  %v1019_v59 = vadd.f32 %v1018_v8, %v735_v48  ;;  %v1125_v8 = vld [vmem:[#allocation3] sm:$0xff] }
 0x1aa   : > { %v992_v12 = vpop.f32.mrf.mxu0 }
 0x1ab   : > { %v1046_v7 = vpop.f32.mrf.mxu1  ;;  %v993_v16 = vadd.f32 %v992_v12, %v740_v5 }
 0x1ac   : > { %v1047_v53 = vadd.f32 %v1046_v7, %v735_v48  ;;  %v2122_v7 = vadd.f32 %v2062_v34, %v1019_v59 }
 0x1ad   : > { %v1007_v19 = vadd.f32 %v1006_v51, %v993_v16 }
 0x1ae   : > { %v2114_v0 = vadd.f32 %v2097_v4, %v1047_v53  ;;  %v2127_v4 = vsub.s32 %v2064_v35, %v1170_v62  ;;  %v1066_v34 = vmax.f32 %v2122_v7, 0.0 }
 0x1af   : > { %v1599_v26 = vmul.f32 -1.442695, %v1007_v19 }
 0x1b0   : > { %v1020_v29 = vpop.f32.mrf.mxu2  ;;  %v1067_v3 = vmax.f32 %v2114_v0, 0.0  ;;  %vm1232_vm3 = vcmp.ne.s32.totalorder %v2127_v4, 0  ;;  %vm1235_vm5 = vcmp.lt.s32.totalorder %v2127_v4, 0  ;;  %v1241_v38 = vadd.s32 18, %v2127_v4 }
 0x1b1   : > { %1702 = vpow2.f32 %v1599_v26  ;;  %v1021_v33 = vadd.f32 %v1020_v29, %v740_v5  ;;  %v1062_v40 = vpop.f32.mrf.mxu3  ;;  %v1126_v29 = vld [vmem:[#allocation3 + $0x8] sm:$0xff]  ;;  %vm2157_vm13 = vmand %vm1235_vm5, %vm1232_vm3 }
 0x1b2   : > { %v1130_v19 = vsub.f32 %v1127_v11, %v1067_v3  ;;  %v1129_v45 = vsub.f32 %v1126_v29, %v1066_v34 }
 0x1b3   : > { %v1048_v27 = vpop.f32.mrf.mxu1  ;;  %v1035_v39 = vadd.f32 %v2083_v46, %v1021_v33  ;;  %v2111_v46 = vadd.f32 %v2066_v36, %v991_v55  ;;  %v1199_v36 = vmul.u32 18, %v1198_v60 }
 0x1b4   : > { %v1049_v32 = vadd.f32 %v1048_v27, %v740_v5 }
 0x1b5   : > { %v1600_v51 = vmul.f32 -1.442695, %v1035_v39  ;;  %v1065_v6 = vmax.f32 %v2111_v46, 0.0  ;;  %v2135_v16 = vsub.s32 %v2073_v25, %v1199_v36 }
 0x1b6   : > { %v1063_v43 = vadd.f32 %v1062_v40, %v1049_v32 }
 0x1b7   : > { %v1703_v54 = vpop.eup %1702  ;;  %v1128_v14 = vsub.f32 %v1125_v8, %v1065_v6  ;;  %vm1233_vm9 = vcmp.ne.s32.totalorder %v2135_v16, 0  ;;  %vm1236_vm11 = vcmp.lt.s32.totalorder %v2135_v16, 0  ;;  %v1242_v44 = vadd.s32 18, %v2135_v16 }
 0x1b8   : > { %v1601_v50 = vmul.f32 -1.442695, %v1063_v43  ;;  %v1077_v28 = vadd.f32 1.0, %v1703_v54  ;;  %vm2178_vm1 = vmand %vm1236_vm11, %vm1233_vm9  ;;  %v1244_v54 = vsel %vm2157_vm13, %v1241_v38, %v2127_v4  ;;  %vm1275_vm11 = vcmask 1043608  }
 0x1b9   : > { %v1245_v58 = vsel %vm2178_vm1, %v1242_v44, %v2135_v16  ;;  %vm1247_vm9 = vcmp.lt.s32.totalorder %v1244_v54, 16  ;;  %vm1270_vm13 = vcmask 154624  }
 0x1ba   : > { %1704 = vpow2.f32 %v1601_v50  ;;  %v1091_v15 = vand.u32 2147483648, %v1077_v28  ;;  %v1089_v18 = vand.u32 2147483647, %v1077_v28  ;;  %vm1085_vm7 = vweird.f32 %v1077_v28 }
 0x1bb   : > { %1706 = vpow2.f32 %v1600_v51 }
 0x1bc   : > { %1708 = vrcp.f32 %v1077_v28  ;;  %v1092_v24 = vor.u32 1.1754944e-38, %v1091_v15  ;;  %vm1090_vm10 = vcmp.eq.f32.partialorder %v1089_v18, 8.507059e+37 }
 0x1c0   : > { %v1705_v61 = vpop.eup %1704 }
 0x1c1   : > { %v1707_v63 = vpop.eup %1706  ;;  %v2116_v1 = vadd.f32 1.0, %v1705_v61 }
 0x1c2   : > { %v2118_v2 = vadd.f32 1.0, %v1707_v63  ;;  %v1709_v5 = vpop.eup %1708 }
 0x1c3   : > { %1710 = vrcp.f32 %v2116_v1  ;;  %v1081_v9 = vmul.f32 %v1709_v5, %v1077_v28  ;;  %vm1086_vm2 = vweird.f32 %v1709_v5  ;;  %v1119_v30 = vand.u32 2147483647, %v2116_v1 }
 0x1c4   : > { %1712 = vrcp.f32 %v2118_v2  ;;  %vm1087_vm8 = vmor %vm1085_vm7, %vm1086_vm2  ;;  %v1121_v31 = vand.u32 2147483648, %v2116_v1  ;;  %v1106_v37 = vand.u32 2147483648, %v2118_v2  ;;  %v1104_v39 = vand.u32 2147483647, %v2118_v2 }
 0x1c5   : > { %v1082_v12 = vsub.f32 1.0, %v1081_v9  ;;  %vm1115_vm0 = vweird.f32 %v2116_v1  ;;  %vm1100_vm3 = vweird.f32 %v2118_v2  ;;  %vm1120_vm4 = vcmp.eq.f32.partialorder %v1119_v30, 8.507059e+37 }
 0x1c6   : > { %v1122_v52 = vor.u32 1.1754944e-38, %v1121_v31  ;;  %v1246_v28 = vsel %vm2165_vm14, %v1243_v22, %v2131_v10  ;;  %v1107_v47 = vor.u32 1.1754944e-38, %v1106_v37  ;;  %vm1105_vm6 = vcmp.eq.f32.partialorder %v1104_v39, 8.507059e+37 }
 0x1c7   : > { %v1083_v17 = vmul.f32 %v1709_v5, %v1082_v12  ;;  %vm1139_vm7 = vcmask 261120  }
 0x1c9   : > { %v1711_v35 = vpop.eup %1710  ;;  %v1084_v25 = vadd.f32 %v1709_v5, %v1083_v17 }
 0x1ca   : > { %v1713_v13 = vpop.eup %1712  ;;  %v1111_v20 = vmul.f32 %v1711_v35, %v2116_v1  ;;  %vm1116_vm12 = vweird.f32 %v1711_v35 }
 0x1cb   : > { %v1096_v21 = vmul.f32 %v1713_v13, %v2118_v2  ;;  %v1088_v27 = vsel %vm1087_vm8, %v1709_v5, %v1084_v25  ;;  %vm1101_vm15 = vweird.f32 %v1713_v13  ;;  %vm1117_vm2 = vmor %vm1115_vm0, %vm1116_vm12  ;;  %vm1249_vm8 = vcmp.lt.s32.totalorder %v1246_v28, 16 }
 0x1cc   : > { %v1112_v26 = vsub.f32 1.0, %v1111_v20  ;;  %v1093_v32 = vsel %vm1090_vm10, %v1092_v24, %v1088_v27  ;;  %vm1102_vm5 = vmor %vm1100_vm3, %vm1101_vm15  ;;  %vm1248_vm10 = vcmp.lt.s32.totalorder %v1245_v58, 16  ;;  %vm1276_vm12 = vcmask 1047556  }
 0x1cd   : > { %v1097_v23 = vsub.f32 1.0, %v1096_v21  ;;  %v1131_v40 = vmul.f32 %v1128_v14, %v1093_v32  ;;  %vm1277_vm14 = vmor %vm1276_vm12, %vm1275_vm11  ;;  %vm1279_vm15 = vcmask 412672  }
 0x1ce   : > { %v1113_v33 = vmul.f32 %v1711_v35, %v1112_v26 }
 0x1cf   : > { %v1098_v43 = vmul.f32 %v1713_v13, %v1097_v23  ;;  %v1134_v50 = vadd.f32 %v1131_v40, %v1065_v6 }
 0x1d0   : > { %v1114_v48 = vadd.f32 %v1711_v35, %v1113_v33 }
 0x1d1   : > { %v1099_v49 = vadd.f32 %v1713_v13, %v1098_v43  ;;  %1137 = vst [vmem:[#allocation3] sm:$0xff] %v1134_v50  ;;  %v1256_v56 = vsel %vm1247_vm9, %v1134_v50, 0.0 }
 0x1d2   : > { %v1118_v55 = vsel %vm1117_vm2, %v1711_v35, %v1114_v48 }
 0x1d3   : > { %v1123_v57 = vsel %vm1120_vm4, %v1122_v52, %v1118_v55  ;;  %v1103_v53 = vsel %vm1102_vm5, %v1713_v13, %v1099_v49 }
 0x1d4   : > { %v1133_v46 = vmul.f32 %v1130_v19, %v1123_v57  ;;  %v1108_v59 = vsel %vm1105_vm6, %v1107_v47, %v1103_v53 }
 0x1d5   : > { %v1132_v60 = vmul.f32 %v1129_v45, %v1108_v59 }
 0x1d6   : > { %v1136_v61 = vadd.f32 %v1133_v46, %v1067_v3 }
 0x1d7   : > { %v1135_v62 = vadd.f32 %v1132_v60, %v1066_v34 }
 0x1d8   : > { %v1258_v63 = vsel %vm1249_vm8, %v1136_v61, 0.0  ;;  %1140 = vst.msk [vmem:[#allocation3 + $0x10] sm:$0xff] %vm1139_vm7, %v1136_v61 }
 0x1d9   : > { %v1260_v1 = vpack.c.bf16 %v1258_v63, %v1258_v63  ;;  %v1257_v2 = vsel %vm1248_vm10, %v1135_v62, 0.0  ;;  %1138 = vst [vmem:[#allocation3 + $0x8] sm:$0xff] %v1135_v62 }
 0x1da   : > { %v1259_v5 = vpack.c.bf16 %v1257_v2, %v1256_v56 }
 0x1db   : > { %1267 = vrot.lane.b32.xlu1 %v1260_v1, %s1764_s21 }
 0x1dc   : > { %1265 = vrot.lane.b32.xlu2 %v1259_v5, %s1764_s21 }
 0x236   : > { %v1266_v0 = vpop.permute.xlu2 %1265 }
 0x237   : > { %v1269_v6 = vrot.slane %v1266_v0, 4 }
 0x239   : > { %v1271_v7 = vsel %vm1270_vm13, %v1269_v6, %v1266_v0 }
 0x23a   : > { %1278 = vst.msk [vmem:[%s1849_s22] sm:$0xff] %vm1277_vm14, %v1271_v7 }
 0x24d   : > { %v1268_v36 = vpop.permute.xlu1 %1267 }
 0x24e   : > { %v1272_v8 = vsel %vm1270_vm13, %v1269_v6, %v1268_v36 }
 0x24f   : > { %1280 = vst.msk [vmem:[%s1849_s22 + $0x8] sm:$0xf] %vm1279_vm15, %v1272_v8 }
 0x250 PF: > { %s16_s25 = sadd.s32 1, %s1752_s25   ;;  %s2227_s21 = smov %s1744_s23 }
 0x251   : > { %p13_p10 = scmp.ge.s32.totalorder %s16_s25, 18   ;;  %s2228_s22 = smov %s1748_s24 }
 0x252   : > { %s2229_s23 = smov %s2232_s5  ;;  %s2230_s24 = smov %s2236_s26 }
 0x253   :  { %15 = sbr.rel (!%p13_p10) target bundleno = 3 (0x3), region = 80 }

// kernel: conv_block_forward.3
= control target key start
LH: loop header
LB: loop body
LE: loop exit
PB: predicated region body
PF: predicated region fallthrough
CT: control target
= control target key end

     0   :  { %s1907_s27 = smov 0   ;;  %s1909_s28 = smov 0   ;;  %s2241_s0 = inlined_call_operand.vmem [shape: bf16[2,10,8,384], index: 0, kind: input, shape index: {}, may-alias: {0,1,2}]   ;;  %s2242_s1 = inlined_call_operand.vmem [shape: bf16[2,10,8,384], index: 1, kind: input, shape index: {}, may-alias: {0,1,2}]   ;;  %s2243_s2 = inlined_call_operand.vmem [shape: bf16[2,10,8,384], index: 2, kind: input, shape index: {}, may-alias: {0,1,2}]   ;;  %s2244_s3 = inlined_call_operand.vmem [shape: bf16[16,216], index: 3, kind: input, shape index: {}]   ;;  %s2245_s4 = inlined_call_operand.vmem [shape: f32[16,1], index: 4, kind: input, shape index: {}]   ;;  %s2246_s5 = inlined_call_operand.vmem [shape: bf16[2,10,8,384], index: 5, kind: input, shape index: {}]   ;;  %s2247_s6 = inlined_call_operand.vmem [shape: bf16[8,8], index: 6, kind: input, shape index: {}]   ;;  %s2248_s7 = inlined_call_operand.vmem [shape: f32[8,1], index: 7, kind: input, shape index: {}]   ;;  %s2249_s8 = inlined_call_operand.vmem [shape: f32[2,8,8,288], index: 8, kind: output, shape index: {}]  }
   0x1   :  { %2252 = sst [smem:[#allocation8_spill]] %s2241_s0  ;;  %s1911_s29 = smov 0  }
   0x2   :  { %2253 = sst [smem:[#allocation9_spill]] %s2242_s1  ;;  %s1913_s30 = smov 0  }
   0x3   :  { %s1915_s9 = smov 0  }
   0x4 LB: > { %2254 = sst [smem:[#allocation4_spill]] %s1842_s29  ;;  %s27_s10 = sadd.s32 1, %s1842_s29  ;;  %s1850_s9 = sphi %s1915_s9, %s18_s9   ;;  %s1846_s30 = sphi %s1913_s30, %s2263_s30   ;;  %s1842_s29 = sphi %s1911_s29, %s2262_s29   ;;  %s1838_s28 = sphi %s1909_s28, %s2261_s28   ;;  %s1834_s27 = sphi %s1907_s27, %s2260_s27  }
   0x5   : > { %2255 = sst [smem:[#allocation5_spill]] %s1846_s30  ;;  %s30_s11 = sadd.s32 1, %s1846_s30 }
   0x6   : > { %p28_p0 = scmp.ge.s32.totalorder %s27_s10, 8  ;;  %p1518_p1 = scmp.ge.s32.totalorder %s1850_s9, 1 }
   0x7   : > { %p348_p2 = scmp.lt.s32.totalorder %s1850_s9, 17 }
   0x8   : > { %s2265_s10 = smov (%p28_p0, %s27_s10), 0  ;;  %s2267_s11 = smov (!%p28_p0, %s30_s11), %s1846_s30 }
   0x9   : > { %2256 = sst [smem:[#allocation6_spill]] %s2265_s10  ;;  %p349_p3 = pnand %p1518_p1, %p348_p2 }
   0xa   : > { %p32_p4 = scmp.ge.s32.totalorder %s2267_s11, 2  ;;  %s422_s12 = ssub.s32 (!%p349_p3), 7, %s1834_s27 }
   0xb   : > { %352 = sbr.rel (%p349_p3) target bundleno = 482 (0x1e2), region = 52  ;;  %p423_p5 = scmp.lt.s32.totalorder (!%p349_p3), %s1838_s28, 1 }
   0xc   : > { %s2269_s11 = smov (%p32_p4, %s2267_s11), 0  ;;  %p425_p6 = scmp.lt.s32.totalorder (!%p349_p3), %s422_s12, 9 }
   0xd   : > { %2257 = sst [smem:[#allocation7_spill]] %s2269_s11  ;;  %s433_s13 = ssub.s32 (!%p349_p3), 8, %s1834_s27 }
   0xe   : > { %p436_p7 = scmp.lt.s32.totalorder (!%p349_p3), %s433_s13, 9  ;;  %s444_s17 = ssub.s32 (!%p349_p3), 9, %s1834_s27 }
   0xf   : > { %s2258_s0 = sld [smem:[#allocation8_spill]] (!%p349_p3)  ;;  %p447_p8 = scmp.lt.s32.totalorder (!%p349_p3), %s444_s17, 9 }
  0x10   : > { %s2271_s28 = smov (!%p423_p5, %s1838_s28), 1  ;;  %s2273_s13 = smov (!%p436_p7, %s433_s13), 9 }
  0x11   : > { %s426_s14 = scalar_select %p425_p6, %s422_s12, 9 }
  0x12   : > { %s1742_s15 = smul.u32 30, %s2271_s28  ;;  %p469_p9 = scmp.lt.s32.totalorder %s422_s12, 7 }
  0x13   : > { %s1741_s16 = smul.u32 3, %s426_s14  ;;  %s2259_s1 = sld [smem:[#allocation9_spill]] }
  0x14   : > { %s1743_s20 = smul.u32 3, %s2273_s13  ;;  %s2275_s17 = smov (!%p447_p8, %s444_s17), 9 }
  0x15   : > { %s429_s18 = sadd.s32 %s1742_s15, %s1741_s16  ;;  %s1746_s26 = smul.u32 24, %s2271_s28 }
  0x16   : > { %s1519_s19 = sshll.u32 %s429_s18, 2  ;;  %s440_s24 = sadd.s32 %s1743_s20, %s1742_s15 }
  0x17   : > { %s1945_s23 = scalar_lea.vmem %s2258_s0, %s1519_s19  ;;  %s1520_s25 = sshll.u32 %s440_s24, 2 }
  0x18   : > { %s1955_s16 = scalar_lea.vmem %s2246_s5, %s1520_s25  ;;  %s2277_s12 = smov (!%p469_p9, %s422_s12), 7 }
  0x19   : > { %s1950_s30 = scalar_lea.vmem %s2259_s1, %s1520_s25  ;;  %s1744_s13 = smul.u32 3, %s2275_s17 }
  0x1a   : > { %s1745_s18 = smul.u32 3, %s2277_s12  ;;  %p1524_p10 = scmp.ne.s32.totalorder %s1834_s27, 0 }
  0x1b   : > { %s451_s19 = sadd.s32 %s1744_s13, %s1742_s15 }
  0x1c   : > { %s1521_s21 = sshll.u32 %s451_s19, 2  ;;  %s473_s20 = sadd.s32 %s1746_s26, %s1745_s18 }
  0x1d   : > { %s453_s28 = scalar_lea.vmem %s2243_s2, %s1521_s21  ;;  %s1523_s0 = sshll.u32 %s473_s20, 3 }
  0x1e   : > { %s1963_s1 = scalar_lea.vmem %s2249_s8, %s1523_s0  ;;  %481 = sbr.rel (%p1524_p10) target bundleno = 39 (0x27), region = 56 }
  0x23   : > { %vm484_vm0 = vcmask 261120   ;;  %v1852_v0 = vmov 0.0  }
  0x24   : > { %482 = vst [vmem:[#allocation3] sm:$0xff] %v1852_v0 }
  0x25   : > { %483 = vst [vmem:[#allocation3 + $0x8] sm:$0xff] %v1852_v0 }
  0x26   : > { %485 = vst.msk [vmem:[#allocation3 + $0x10] sm:$0xff] %vm484_vm0, %v1852_v0 }
  0x27 PF: > { %v1966_v1 = vld [vmem:[%s453_s28] sm:$0xff]  ;;  %s1853_s29 = smov 90   ;;  %v1980_v4 = vld [vmem:[%s453_s28 + $0x8] sm:$0xf]  ;;  %s1854_s0 = smov 108   ;;  %vm489_vm1 = vcmask 257024  }
  0x28   : > { %v1969_v2 = vld [vmem:[%s1945_s23] sm:$0xff]  ;;  %790 = vrot.lane.b32.xlu0 %v1966_v1, %s1853_s29  ;;  %702 = vst [vmem:[#allocation2 + $0x18] sm:$0xff] %v1966_v1  ;;  %v1983_v5 = vld [vmem:[%s1945_s23 + $0x8] sm:$0xf]  ;;  %s1855_s27 = smov 109   ;;  %s1857_s12 = smov 92  }
  0x29   : > { %585 = vrot.lane.b32.xlu1 %v1969_v2, %s1853_s29  ;;  %v1975_v3 = vld [vmem:[%s1950_s30] sm:$0xff]  ;;  %488 = vst [vmem:[#allocation2] sm:$0xff] %v1969_v2  ;;  %v599_v6 = vld [vmem:[%s1950_s30 + $0x8] sm:$0xf]  ;;  %s1856_s30 = smov 91   ;;  %s1858_s15 = smov 110  }
  0x2a   : > { %688 = vrot.lane.b32.xlu2 %v1975_v3, %s1853_s29  ;;  %600 = vst [vmem:[#allocation2 + $0xc] sm:$0xff] %v1975_v3  ;;  %s1859_s17 = smov 126   ;;  %vm499_vm2 = vcmask 1043456   ;;  %vm592_vm3 = vcmask 736256   ;;  %s1860_s23 = smov 127   ;;  %v1269_v26 = vld [vmem:[%s1955_s16] sm:$0xff] }
  0x2b   : > { %490 = vst.msk [vmem:[#allocation2 + $0x8] sm:$0xf] %vm489_vm1, %v1983_v5  ;;  %v1280_v29 = vunpack.c.l.b16 %v1269_v26  ;;  %v1281_v30 = vunpack.c.h.b16 %v1269_v26  ;;  %vm553_vm4 = vcmask 883712   ;;  %vm540_vm5 = vcmask 891904  }
  0x2c   : > { %601 = vst.msk [vmem:[#allocation2 + $0x14] sm:$0xf] %vm489_vm1, %v599_v6  ;;  %vm579_vm6 = vcmask 744448   ;;  %vm566_vm7 = vcmask 752640   ;;  %vm527_vm8 = vcmask 900096   ;;  %vm514_vm9 = vcmask 1031168  }
  0x2d   : > { %703 = vst.msk [vmem:[#allocation2 + $0x20] sm:$0xf] %vm489_vm1, %v1980_v4  ;;  %v1283_v33 = vpack.c.b16 %v1280_v29, %v1280_v29  ;;  %v1284_v34 = vpack.c.b16 %v1281_v30, %v1281_v30  ;;  %vm1095_vm10 = vcmask 719872   ;;  %vm501_vm11 = vcmask 1039360  }
  0x2e   : > { %vm1294_vm12 = vcmask 64512  }
  0x30   : > { %792 = vrot.lane.b32.xlu0 %v1980_v4, %s1853_s29 }
  0x31   : > { %587 = vrot.lane.b32.xlu1 %v1983_v5, %s1853_s29 }
  0x32   : > { %690 = vrot.lane.b32.xlu2 %v599_v6, %s1853_s29 }
  0x38   : > { %546 = vrot.lane.b32.xlu0 %v1969_v2, %s1854_s0 }
  0x39   : > { %548 = vrot.lane.b32.xlu1 %v1983_v5, %s1854_s0 }
  0x3a   : > { %742 = vrot.lane.b32.xlu2 %v1966_v1, %s1855_s27 }
  0x40   : > { %744 = vrot.lane.b32.xlu0 %v1980_v4, %s1855_s27 }
  0x41   : > { %676 = vrot.lane.b32.xlu1 %v1975_v3, %s1856_s30 }
  0x42   : > { %678 = vrot.lane.b32.xlu2 %v599_v6, %s1856_s30 }
  0x48   : > { %778 = vrot.lane.b32.xlu0 %v1966_v1, %s1856_s30 }
  0x49   : > { %780 = vrot.lane.b32.xlu1 %v1980_v4, %s1856_s30 }
  0x4a   : > { %533 = vrot.lane.b32.xlu2 %v1969_v2, %s1855_s27 }
  0x50   : > { %535 = vrot.lane.b32.xlu0 %v1983_v5, %s1855_s27 }
  0x51   : > { %640 = vrot.lane.b32.xlu1 %v1975_v3, %s1855_s27 }
  0x52   : > { %642 = vrot.lane.b32.xlu2 %v599_v6, %s1855_s27 }
  0x58   : > { %572 = vrot.lane.b32.xlu0 %v1969_v2, %s1856_s30 }
  0x59   : > { %574 = vrot.lane.b32.xlu1 %v1983_v5, %s1856_s30 }
  0x5a   : > { %766 = vrot.lane.b32.xlu2 %v1966_v1, %s1857_s12 }
  0x60   : > { %768 = vrot.lane.b32.xlu0 %v1980_v4, %s1857_s12 }
  0x61   : > { %628 = vrot.lane.b32.xlu1 %v1975_v3, %s1858_s15 }
  0x62   : > { %630 = vrot.lane.b32.xlu2 %v599_v6, %s1858_s15 }
  0x68   : > { %730 = vrot.lane.b32.xlu0 %v1966_v1, %s1858_s15 }
  0x69   : > { %732 = vrot.lane.b32.xlu1 %v1980_v4, %s1858_s15 }
  0x6a   : > { %559 = vrot.lane.b32.xlu2 %v1969_v2, %s1857_s12 }
  0x70   : > { %561 = vrot.lane.b32.xlu0 %v1983_v5, %s1857_s12 }
  0x71   : > { %664 = vrot.lane.b32.xlu1 %v1975_v3, %s1857_s12 }
  0x72   : > { %666 = vrot.lane.b32.xlu2 %v599_v6, %s1857_s12 }
  0x78   : > { %520 = vrot.lane.b32.xlu0 %v1969_v2, %s1858_s15 }
  0x79   : > { %522 = vrot.lane.b32.xlu1 %v1983_v5, %s1858_s15 }
  0x7a   : > { %718 = vrot.lane.b32.xlu2 %v1966_v1, %s1859_s17 }
  0x80   : > { %720 = vrot.lane.b32.xlu0 %v1980_v4, %s1859_s17 }
  0x81   : > { %652 = vrot.lane.b32.xlu1 %v1975_v3, %s1854_s0 }
  0x82   : > { %654 = vrot.lane.b32.xlu2 %v599_v6, %s1854_s0 }
  0x84   : > { %v689_v7 = vpop.permute.xlu2 %688 }
  0x85   : > { %v692_v8 = vrot.slane %v689_v7, 4 }
  0x88   : > { %754 = vrot.lane.b32.xlu0 %v1966_v1, %s1854_s0 }
  0x89   : > { %756 = vrot.lane.b32.xlu1 %v1980_v4, %s1854_s0 }
  0x8a   : > { %507 = vrot.lane.b32.xlu2 %v1969_v2, %s1859_s17 }
  0x8c   : > { %v691_v9 = vpop.permute.xlu2 %690 }
  0x8d   : > { %v693_v10 = vrot.slane %v691_v9, 4  ;;  %699 = vst.msk [vmem:[#allocation2 + $0x134] sm:$0xf] %vm489_vm1, %v691_v9 }
  0x8f   : > { %v694_v11 = vsel %vm499_vm2, %v692_v8, %v693_v10 }
  0x90   : > { %v695_v12 = vsel %vm592_vm3, %v689_v7, %v694_v11  ;;  %509 = vrot.lane.b32.xlu0 %v1983_v5, %s1859_s17 }
  0x91   : > { %616 = vrot.lane.b32.xlu1 %v1975_v3, %s1859_s17  ;;  %698 = vst [vmem:[#allocation2 + $0x12c] sm:$0xff] %v695_v12  ;;  %v1270_v12 = vld [vmem:[%s1955_s16 + $0x8] sm:$0xf] }
  0x92   : > { %618 = vrot.lane.b32.xlu2 %v599_v6, %s1859_s17 }
  0x94   : > { %v2038_v13 = vpop.permute.xlu2 %742 }
  0x95   : > { %v746_v55 = vrot.slane %v2038_v13, 4 }
  0x98   : > { %604 = vrot.lane.b32.xlu0 %v1975_v3, %s1860_s23  ;;  %v1739_v46 = vld [vmem:[#allocation2 + $0x128] sm:$0xf0]  ;;  %v1681_v47 = vld [vmem:[#allocation2 + $0x12c] sm:$0xf0] }
  0x99   : > { %606 = vrot.lane.b32.xlu1 %v599_v6, %s1860_s23 }
  0x9a   : > { %706 = vrot.lane.b32.xlu2 %v1966_v1, %s1860_s23  ;;  %v791_v14 = vpop.permute.xlu0 %790 }
  0x9b   : > { %v586_v15 = vpop.permute.xlu1 %585  ;;  %v794_v19 = vrot.slane %v791_v14, 4 }
  0x9c   : > { %v2042_v16 = vpop.permute.xlu2 %678  ;;  %v589_v20 = vrot.slane %v586_v15, 4 }
  0x9d   : > { %687 = vst.msk [vmem:[#allocation2 + $0x110] sm:$0xf] %vm489_vm1, %v2042_v16  ;;  %v681_v52 = vrot.slane %v2042_v16, 4 }
  0xa0   : > { %708 = vrot.lane.b32.xlu0 %v1980_v4, %s1860_s23 }
  0xa1   : > { %493 = vrot.lane.b32.xlu1 %v1969_v2, %s1860_s23 }
  0xa2   : > { %495 = vrot.lane.b32.xlu2 %v1983_v5, %s1860_s23  ;;  %v793_v17 = vpop.permute.xlu0 %792 }
  0xa3   : > { %v588_v18 = vpop.permute.xlu1 %587  ;;  %v795_v21 = vrot.slane %v793_v17, 4  ;;  %801 = vst.msk [vmem:[#allocation2 + $0x140] sm:$0xf] %vm489_vm1, %v793_v17 }
  0xa4   : > { %v590_v22 = vrot.slane %v588_v18, 4  ;;  %v2050_v23 = vpop.permute.xlu2 %533  ;;  %597 = vst.msk [vmem:[#allocation2 + $0x128] sm:$0xf] %vm489_vm1, %v588_v18 }
  0xa5   : > { %v796_v24 = vsel %vm499_vm2, %v794_v19, %v795_v21  ;;  %v537_v17 = vrot.slane %v2050_v23, 4 }
  0xa6   : > { %v591_v25 = vsel %vm499_vm2, %v589_v20, %v590_v22  ;;  %v797_v27 = vsel %vm592_vm3, %v791_v14, %v796_v24  ;;  %v1282_v14 = vunpack.c.l.b16 %v1270_v12 }
  0xa7   : > { %v593_v28 = vsel %vm592_vm3, %v586_v15, %v591_v25  ;;  %v1011_v31 = vunpack.c.l.b16 %v797_v27  ;;  %v1012_v32 = vunpack.c.h.b16 %v797_v27 }
  0xa8   : > { %596 = vst [vmem:[#allocation2 + $0x120] sm:$0xff] %v593_v28  ;;  %1286 = vrot.lane.b32.xlu0 %v1283_v33, %s1855_s27  ;;  %v1285_v21 = vpack.c.b16 %v1282_v14, %v1282_v14 }
  0xa9   : > { %v1053_v35 = vpack.c.b16 %v1011_v31, %v1011_v31  ;;  %v1054_v36 = vpack.c.b16 %v1012_v32, %v1012_v32  ;;  %1288 = vrot.lane.b32.xlu1 %v1284_v34, %s1855_s27 }
  0xaa   : > { %v547_v37 = vpop.permute.xlu0 %546  ;;  %1290 = vrot.lane.b32.xlu2 %v1285_v21, %s1855_s27 }
  0xab   : > { %v549_v38 = vpop.permute.xlu1 %548  ;;  %v550_v39 = vrot.slane %v547_v37, 4  ;;  %v1101_v41 = vsel %vm499_vm2, %v1053_v35, 0  ;;  %v1104_v42 = vsel %vm499_vm2, %v1054_v36, 0 }
  0xac   : > { %v551_v40 = vrot.slane %v549_v38, 4  ;;  %558 = vst.msk [vmem:[#allocation2 + $0xbc] sm:$0xf] %vm489_vm1, %v549_v38  ;;  %v2063_v43 = vpop.permute.xlu2 %642  ;;  %1125 = vmatpush.bf16.msra.mxu1 %v1101_v41  ;;  %1153 = vmatpush.bf16.msra.mxu3 %v1104_v42 }
  0xad   : > { %651 = vst.msk [vmem:[#allocation2 + $0xa4] sm:$0xf] %vm489_vm1, %v2063_v43 }
  0xae   : > { %v552_v44 = vsel %vm499_vm2, %v550_v39, %v551_v40 }
  0xaf   : > { %v554_v45 = vsel %vm553_vm4, %v547_v37, %v552_v44  ;;  %v1679_v48 = vld [vmem:[#allocation2 + $0x120] sm:$0xf]  ;;  %v1738_v49 = vld [vmem:[#allocation2 + $0x124] sm:$0xf] }
  0xb0   : > { %557 = vst [vmem:[#allocation2 + $0xb4] sm:$0xff] %v554_v45  ;;  %v1680_v50 = vor.u32 %v1739_v46, %v1679_v48  ;;  %v1684_v51 = vor.u32 %v1738_v49, %v1681_v47 }
  0xb2   : > { %v745_v53 = vpop.permute.xlu0 %744  ;;  %1126 = vmatpush.bf16.msra.mxu1 %v1680_v50  ;;  %1154 = vmatpush.bf16.msra.mxu3 %v1684_v51 }
  0xb3   : > { %v677_v54 = vpop.permute.xlu1 %676  ;;  %v747_v56 = vrot.slane %v745_v53, 4  ;;  %753 = vst.msk [vmem:[#allocation2 + $0xb0] sm:$0xf] %vm489_vm1, %v745_v53 }
  0xb4   : > { %v680_v57 = vrot.slane %v677_v54, 4  ;;  %v2072_v58 = vpop.permute.xlu2 %766 }
  0xb5   : > { %v748_v59 = vsel %vm499_vm2, %v746_v55, %v747_v56  ;;  %v770_v48 = vrot.slane %v2072_v58, 4 }
  0xb6   : > { %v682_v60 = vsel %vm499_vm2, %v680_v57, %v681_v52  ;;  %v749_v61 = vsel %vm540_vm5, %v2038_v13, %v748_v59  ;;  %v645_v13 = vrot.slane %v2063_v43, 4 }
  0xb7   : > { %v683_v62 = vsel %vm579_vm6, %v677_v54, %v682_v60  ;;  %752 = vst [vmem:[#allocation2 + $0xa8] sm:$0xff] %v749_v61  ;;  %v1724_v5 = vld [vmem:[#allocation2 + $0xb0] sm:$0xf0]  ;;  %v1621_v9 = vld [vmem:[#allocation2 + $0xb4] sm:$0xf0] }
  0xb8   : > { %686 = vst [vmem:[#allocation2 + $0x108] sm:$0xff] %v683_v62 }
  0xba   : > { %v779_v63 = vpop.permute.xlu0 %778 }
  0xbb   : > { %v781_v0 = vpop.permute.xlu1 %780  ;;  %v782_v1 = vrot.slane %v779_v63, 4 }
  0xbc   : > { %v783_v2 = vrot.slane %v781_v0, 4  ;;  %789 = vst.msk [vmem:[#allocation2 + $0x11c] sm:$0xf] %vm489_vm1, %v781_v0  ;;  %v2080_v3 = vpop.permute.xlu2 %630 }
  0xbd   : > { %639 = vst.msk [vmem:[#allocation2 + $0x80] sm:$0xf] %vm489_vm1, %v2080_v3  ;;  %v633_v45 = vrot.slane %v2080_v3, 4 }
  0xbe   : > { %v784_v4 = vsel %vm499_vm2, %v782_v1, %v783_v2  ;;  %v1619_v7 = vld [vmem:[#allocation2 + $0xa8] sm:$0xf]  ;;  %v1723_v8 = vld [vmem:[#allocation2 + $0xac] sm:$0xf] }
  0xbf   : > { %v785_v6 = vsel %vm579_vm6, %v779_v63, %v784_v4  ;;  %v1620_v10 = vor.u32 %v1724_v5, %v1619_v7  ;;  %v1624_v11 = vor.u32 %v1723_v8, %v1621_v9  ;;  %v1667_v25 = vld [vmem:[#allocation2 + $0x108] sm:$0xf]  ;;  %v1735_v29 = vld [vmem:[#allocation2 + $0x10c] sm:$0xf] }
  0xc0   : > { %788 = vst [vmem:[#allocation2 + $0x114] sm:$0xff] %v785_v6 }
  0xc1   : > { %1109 = vmatpush.bf16.msra.mxu0 %v1620_v10  ;;  %1137 = vmatpush.bf16.msra.mxu2 %v1624_v11 }
  0xc2   : > { %v536_v15 = vpop.permute.xlu0 %535 }
  0xc3   : > { %v641_v16 = vpop.permute.xlu1 %640  ;;  %v538_v18 = vrot.slane %v536_v15, 4  ;;  %545 = vst.msk [vmem:[#allocation2 + $0x98] sm:$0xf] %vm489_vm1, %v536_v15 }
  0xc4   : > { %v644_v19 = vrot.slane %v641_v16, 4  ;;  %v2090_v20 = vpop.permute.xlu2 %559 }
  0xc5   : > { %v539_v22 = vsel %vm499_vm2, %v537_v17, %v538_v18  ;;  %v563_v8 = vrot.slane %v2090_v20, 4 }
  0xc6   : > { %v646_v24 = vsel %vm499_vm2, %v644_v19, %v645_v13  ;;  %v541_v26 = vsel %vm540_vm5, %v2050_v23, %v539_v22 }
  0xc7   : > { %v647_v27 = vsel %vm540_vm5, %v641_v16, %v646_v24  ;;  %v1736_v28 = vld [vmem:[#allocation2 + $0x110] sm:$0xf0]  ;;  %v1669_v30 = vld [vmem:[#allocation2 + $0x114] sm:$0xf0]  ;;  %544 = vst [vmem:[#allocation2 + $0x90] sm:$0xff] %v541_v26 }
  0xc8   : > { %v1668_v31 = vor.u32 %v1736_v28, %v1667_v25  ;;  %v1672_v32 = vor.u32 %v1735_v29, %v1669_v30  ;;  %650 = vst [vmem:[#allocation2 + $0x9c] sm:$0xff] %v647_v27 }
  0xca   : > { %1127 = vmatpush.bf16.msra.mxu1 %v1668_v31  ;;  %1155 = vmatpush.bf16.msra.mxu3 %v1672_v32  ;;  %v573_v33 = vpop.permute.xlu0 %572 }
  0xcb   : > { %v575_v34 = vpop.permute.xlu1 %574  ;;  %v576_v35 = vrot.slane %v573_v33, 4 }
  0xcc   : > { %v577_v36 = vrot.slane %v575_v34, 4  ;;  %584 = vst.msk [vmem:[#allocation2 + $0x104] sm:$0xf] %vm489_vm1, %v575_v34  ;;  %v667_v37 = vpop.permute.xlu2 %666 }
  0xcd   : > { %675 = vst.msk [vmem:[#allocation2 + $0xec] sm:$0xf] %vm489_vm1, %v667_v37  ;;  %v669_v5 = vrot.slane %v667_v37, 4 }
  0xce   : > { %v578_v23 = vsel %vm499_vm2, %v576_v35, %v577_v36  ;;  %v1607_v39 = vld [vmem:[#allocation2 + $0x90] sm:$0xf]  ;;  %v1720_v40 = vld [vmem:[#allocation2 + $0x94] sm:$0xf] }
  0xcf   : > { %v580_v38 = vsel %vm579_vm6, %v573_v33, %v578_v23  ;;  %v1721_v41 = vld [vmem:[#allocation2 + $0x98] sm:$0xf0]  ;;  %v1609_v42 = vld [vmem:[#allocation2 + $0x9c] sm:$0xf0] }
  0xd0   : > { %583 = vst [vmem:[#allocation2 + $0xfc] sm:$0xff] %v580_v38  ;;  %v1608_v43 = vor.u32 %v1721_v41, %v1607_v39  ;;  %v1612_v44 = vor.u32 %v1720_v40, %v1609_v42 }
  0xd2   : > { %1110 = vmatpush.bf16.msra.mxu0 %v1608_v43  ;;  %1138 = vmatpush.bf16.msra.mxu2 %v1612_v44  ;;  %v769_v46 = vpop.permute.xlu0 %768 }
  0xd3   : > { %v629_v47 = vpop.permute.xlu1 %628  ;;  %v771_v49 = vrot.slane %v769_v46, 4  ;;  %777 = vst.msk [vmem:[#allocation2 + $0xf8] sm:$0xf] %vm489_vm1, %v769_v46 }
  0xd4   : > { %v632_v50 = vrot.slane %v629_v47, 4  ;;  %v2105_v51 = vpop.permute.xlu2 %718 }
  0xd5   : > { %v772_v52 = vsel %vm499_vm2, %v770_v48, %v771_v49  ;;  %v722_v38 = vrot.slane %v2105_v51, 4 }
  0xd6   : > { %v634_v53 = vsel %vm499_vm2, %v632_v50, %v633_v45  ;;  %v773_v54 = vsel %vm566_vm7, %v2072_v58, %v772_v52 }
  0xd7   : > { %v635_v55 = vsel %vm527_vm8, %v629_v47, %v634_v53  ;;  %776 = vst [vmem:[#allocation2 + $0xf0] sm:$0xff] %v773_v54  ;;  %v1733_v63 = vld [vmem:[#allocation2 + $0xf8] sm:$0xf0]  ;;  %v1657_v2 = vld [vmem:[#allocation2 + $0xfc] sm:$0xf0] }
  0xd8   : > { %638 = vst [vmem:[#allocation2 + $0x78] sm:$0xff] %v635_v55  ;;  %v857_v54 = vld [vmem:[#allocation2 + $0x140] sm:$0xf] }
  0xda   : > { %v731_v56 = vpop.permute.xlu0 %730 }
  0xdb   : > { %v733_v57 = vpop.permute.xlu1 %732  ;;  %v734_v59 = vrot.slane %v731_v56, 4 }
  0xdc   : > { %v735_v60 = vrot.slane %v733_v57, 4  ;;  %741 = vst.msk [vmem:[#allocation2 + $0x8c] sm:$0xf] %vm489_vm1, %v733_v57  ;;  %v2113_v61 = vpop.permute.xlu2 %654 }
  0xdd   : > { %663 = vst.msk [vmem:[#allocation2 + $0xc8] sm:$0xf] %vm489_vm1, %v2113_v61  ;;  %v657_v36 = vrot.slane %v2113_v61, 4 }
  0xde   : > { %v736_v62 = vsel %vm499_vm2, %v734_v59, %v735_v60  ;;  %v1655_v0 = vld [vmem:[#allocation2 + $0xf0] sm:$0xf]  ;;  %v1732_v1 = vld [vmem:[#allocation2 + $0xf4] sm:$0xf] }
  0xdf   : > { %v737_v58 = vsel %vm527_vm8, %v731_v56, %v736_v62  ;;  %v1656_v3 = vor.u32 %v1733_v63, %v1655_v0  ;;  %v1660_v4 = vor.u32 %v1732_v1, %v1657_v2  ;;  %v1595_v14 = vld [vmem:[#allocation2 + $0x78] sm:$0xf]  ;;  %v1717_v18 = vld [vmem:[#allocation2 + $0x7c] sm:$0xf]  ;;  %v1013_v62 = vunpack.c.l.b16 %v857_v54 }
  0xe0   : > { %740 = vst [vmem:[#allocation2 + $0x84] sm:$0xff] %v737_v58 }
  0xe1   : > { %1128 = vmatpush.bf16.msra.mxu1 %v1656_v3  ;;  %1156 = vmatpush.bf16.msra.mxu3 %v1660_v4  ;;  %v1627_v3 = vld [vmem:[#allocation2 + $0xb0] sm:$0xf] }
  0xe2   : > { %v562_v6 = vpop.permute.xlu0 %561 }
  0xe3   : > { %v665_v7 = vpop.permute.xlu1 %664  ;;  %v564_v9 = vrot.slane %v562_v6, 4  ;;  %571 = vst.msk [vmem:[#allocation2 + $0xe0] sm:$0xf] %vm489_vm1, %v562_v6 }
  0xe4   : > { %v668_v10 = vrot.slane %v665_v7, 4  ;;  %v2121_v11 = vpop.permute.xlu2 %507 }
  0xe5   : > { %v565_v12 = vsel %vm499_vm2, %v563_v8, %v564_v9  ;;  %v511_v0 = vrot.slane %v2121_v11, 4  ;;  %v1700_v8 = vld [vmem:[%s2244_s3 + $0x4] sm:$0xf]  ;;  %v1529_v9 = vld [vmem:[%s2244_s3 + $0x8] sm:$0xf0] }
  0xe6   : > { %v670_v13 = vsel %vm499_vm2, %v668_v10, %v669_v5  ;;  %v567_v15 = vsel %vm566_vm7, %v2090_v20, %v565_v12 }
  0xe7   : > { %v671_v16 = vsel %vm566_vm7, %v665_v7, %v670_v13  ;;  %v1718_v17 = vld [vmem:[#allocation2 + $0x80] sm:$0xf0]  ;;  %v1597_v19 = vld [vmem:[#allocation2 + $0x84] sm:$0xf0]  ;;  %570 = vst [vmem:[#allocation2 + $0xd8] sm:$0xff] %v567_v15  ;;  %v1055_v7 = vpack.c.b16 %v1013_v62, %v1013_v62 }
  0xe8   : > { %v1596_v21 = vor.u32 %v1718_v17, %v1595_v14  ;;  %v1600_v22 = vor.u32 %v1717_v18, %v1597_v19  ;;  %674 = vst [vmem:[#allocation2 + $0xe4] sm:$0xff] %v671_v16  ;;  %v1725_v18 = vld [vmem:[#allocation2 + $0xb8] sm:$0xf0] }
  0xe9   : > { %v1628_v19 = vor.u32 %v1725_v18, %v1627_v3 }
  0xea   : > { %1111 = vmatpush.bf16.msra.mxu0 %v1596_v21  ;;  %1139 = vmatpush.bf16.msra.mxu2 %v1600_v22  ;;  %v521_v24 = vpop.permute.xlu0 %520  ;;  %v1687_v21 = vld [vmem:[#allocation2 + $0x128] sm:$0xf]  ;;  %v1740_v22 = vld [vmem:[#allocation2 + $0x130] sm:$0xf0] }
  0xeb   : > { %v523_v25 = vpop.permute.xlu1 %522  ;;  %v524_v26 = vrot.slane %v521_v24, 4 }
  0xec   : > { %v525_v27 = vrot.slane %v523_v25, 4  ;;  %532 = vst.msk [vmem:[#allocation2 + $0x74] sm:$0xf] %vm489_vm1, %v523_v25  ;;  %v619_v28 = vpop.permute.xlu2 %618  ;;  %v1107_v25 = vsel %vm499_vm2, %v1055_v7, 0 }
  0xed   : > { %627 = vst.msk [vmem:[#allocation2 + $0x5c] sm:$0xf] %vm489_vm1, %v619_v28  ;;  %v621_v61 = vrot.slane %v619_v28, 4 }
  0xee   : > { %v526_v20 = vsel %vm499_vm2, %v524_v26, %v525_v27  ;;  %v1643_v30 = vld [vmem:[#allocation2 + $0xd8] sm:$0xf]  ;;  %v1729_v31 = vld [vmem:[#allocation2 + $0xdc] sm:$0xf]  ;;  %v1722_v26 = vld [vmem:[#allocation2 + $0xa0] sm:$0xf0] }
  0xef   : > { %v528_v29 = vsel %vm527_vm8, %v521_v24, %v526_v20  ;;  %v1730_v32 = vld [vmem:[#allocation2 + $0xe0] sm:$0xf0]  ;;  %v1645_v33 = vld [vmem:[#allocation2 + $0xe4] sm:$0xf0]  ;;  %v2162_v24 = vor.u32 %v1700_v8, %v1529_v9 }
  0xf0   : > { %531 = vst [vmem:[#allocation2 + $0x6c] sm:$0xff] %v528_v29  ;;  %v1644_v34 = vor.u32 %v1730_v32, %v1643_v30  ;;  %v1648_v35 = vor.u32 %v1729_v31, %v1645_v33  ;;  %v1688_v31 = vor.u32 %v1740_v22, %v1687_v21  ;;  %v858_v32 = vld [vmem:[%s2245_s4] sm:$0xff]  ;;  %v859_v33 = vld [vmem:[%s2245_s4 + $0x8] sm:$0xff] }
  0xf2   : > { %1129 = vmatpush.bf16.msra.mxu1 %v1644_v34  ;;  %1157 = vmatpush.bf16.msra.mxu3 %v1648_v35  ;;  %v721_v37 = vpop.permute.xlu0 %720  ;;  %v1737_v35 = vld [vmem:[#allocation2 + $0x118] sm:$0xf0] }
  0xf3   : > { %v653_v23 = vpop.permute.xlu1 %652  ;;  %v723_v39 = vrot.slane %v721_v37, 4  ;;  %729 = vst.msk [vmem:[#allocation2 + $0x68] sm:$0xf] %vm489_vm1, %v721_v37 }
  0xf4   : > { %v656_v40 = vrot.slane %v653_v23, 4  ;;  %v2135_v41 = vpop.permute.xlu2 %706  ;;  %v1713_v3 = vld [vmem:[#allocation2 + $0x58] sm:$0xf0] }
  0xf5   : > { %v724_v42 = vsel %vm499_vm2, %v722_v38, %v723_v39  ;;  %v1719_v38 = vld [vmem:[#allocation2 + $0x88] sm:$0xf0] }
  0xf6   : > { %v658_v43 = vsel %vm499_vm2, %v656_v40, %v657_v36  ;;  %v725_v44 = vsel %vm514_vm9, %v2105_v51, %v724_v42  ;;  %v1861_v36 = vmov 0  }
  0xf7   : > { %v659_v45 = vsel %vm553_vm4, %v653_v23, %v658_v43  ;;  %728 = vst [vmem:[#allocation2 + $0x60] sm:$0xff] %v725_v44  ;;  %v1715_v53 = vld [vmem:[#allocation2 + $0x68] sm:$0xf0]  ;;  %v1585_v57 = vld [vmem:[#allocation2 + $0x6c] sm:$0xf0]  ;;  %1798 = vset.pattern.permute.xlu1 %v1861_v36  ;;  %1797 = vset.pattern.permute.xlu0 %v1861_v36 }
  0xf8   : > { %662 = vst [vmem:[#allocation2 + $0xc0] sm:$0xff] %v659_v45  ;;  %862 = vperm.xlu1 %1798, %v858_v32   ;;  %867 = vperm.xlu0 %1797, %v859_v33   ;;  %v1603_v45 = vld [vmem:[#allocation2 + $0x80] sm:$0xf]  ;;  %v1703_v32 = vld [vmem:[#allocation2 + $0x8] sm:$0xf0] }
  0xf9   : > { %1799 = vset.pattern.permute.xlu2 %v1861_v36  ;;  %v1702_v33 = vld [vmem:[#allocation2 + $0x4] sm:$0xf] }
  0xfa   : > { %v755_v46 = vpop.permute.xlu0 %754  ;;  %v1591_v54 = vld [vmem:[#allocation2 + $0x68] sm:$0xf] }
  0xfb   : > { %v757_v47 = vpop.permute.xlu1 %756  ;;  %v758_v48 = vrot.slane %v755_v46, 4 }
  0xfc   : > { %v759_v49 = vrot.slane %v757_v47, 4  ;;  %765 = vst.msk [vmem:[#allocation2 + $0xd4] sm:$0xf] %vm489_vm1, %v757_v47  ;;  %v2143_v50 = vpop.permute.xlu2 %495  ;;  %v1604_v47 = vor.u32 %v1719_v38, %v1603_v45  ;;  %v1527_v38 = vld [vmem:[%s2244_s3] sm:$0xf] }
  0xfd   : > { %506 = vst.msk [vmem:[#allocation2 + $0x2c] sm:$0xf] %vm489_vm1, %v2143_v50 }
  0xfe   : > { %v760_v52 = vsel %vm499_vm2, %v758_v48, %v759_v49  ;;  %v1583_v55 = vld [vmem:[#allocation2 + $0x60] sm:$0xf]  ;;  %v1714_v56 = vld [vmem:[#allocation2 + $0x64] sm:$0xf]  ;;  %v498_v49 = vrot.slane %v2143_v50, 4 }
  0xff   : > { %v761_v51 = vsel %vm553_vm4, %v755_v46, %v760_v52  ;;  %v1584_v59 = vor.u32 %v1715_v53, %v1583_v55  ;;  %v1588_v60 = vor.u32 %v1714_v56, %v1585_v57  ;;  %v1631_v6 = vld [vmem:[#allocation2 + $0xc0] sm:$0xf]  ;;  %v1726_v14 = vld [vmem:[#allocation2 + $0xc4] sm:$0xf]  ;;  %v1675_v46 = vld [vmem:[#allocation2 + $0x110] sm:$0xf] }
 0x100   : > { %764 = vst [vmem:[#allocation2 + $0xcc] sm:$0xff] %v761_v51  ;;  %v1676_v48 = vor.u32 %v1737_v35, %v1675_v46  ;;  %v1663_v51 = vld [vmem:[#allocation2 + $0xf8] sm:$0xf]  ;;  %v710_v55 = vrot.slane %v2135_v41, 4 }
 0x101   : > { %1112 = vmatpush.bf16.msra.mxu0 %v1584_v59  ;;  %1140 = vmatpush.bf16.msra.mxu2 %v1588_v60  ;;  %v1716_v59 = vld [vmem:[#allocation2 + $0x70] sm:$0xf0]  ;;  %v1734_v60 = vld [vmem:[#allocation2 + $0x100] sm:$0xf0] }
 0x102   : > { %v510_v63 = vpop.permute.xlu0 %509  ;;  %v1592_v62 = vor.u32 %v1716_v59, %v1591_v54 }
 0x103   : > { %v617_v58 = vpop.permute.xlu1 %616  ;;  %v512_v1 = vrot.slane %v510_v63, 4  ;;  %519 = vst.msk [vmem:[#allocation2 + $0x50] sm:$0xf] %vm489_vm1, %v510_v63  ;;  %v1664_v63 = vor.u32 %v1734_v60, %v1663_v51  ;;  %v1728_v9 = vld [vmem:[#allocation2 + $0xd0] sm:$0xf0] }
 0x104   : > { %v620_v2 = vrot.slane %v617_v58, 4  ;;  %v1291_v35 = vpop.permute.xlu2 %1290 }
 0x105   : > { %v513_v4 = vsel %vm499_vm2, %v511_v0, %v512_v1 }
 0x106   : > { %v622_v5 = vsel %vm499_vm2, %v620_v2, %v621_v61  ;;  %v515_v10 = vsel %vm514_vm9, %v2121_v11, %v513_v4  ;;  %v1615_v11 = vld [vmem:[#allocation2 + $0x98] sm:$0xf]  ;;  %v1651_v4 = vld [vmem:[#allocation2 + $0xe0] sm:$0xf] }
 0x107   : > { %v623_v12 = vsel %vm514_vm9, %v617_v58, %v622_v5  ;;  %v1727_v13 = vld [vmem:[#allocation2 + $0xc8] sm:$0xf0]  ;;  %v1633_v15 = vld [vmem:[#allocation2 + $0xcc] sm:$0xf0]  ;;  %518 = vst [vmem:[#allocation2 + $0x48] sm:$0xff] %v515_v10  ;;  %v1616_v30 = vor.u32 %v1722_v26, %v1615_v11 }
 0x108   : > { %v1632_v16 = vor.u32 %v1727_v13, %v1631_v6  ;;  %v1636_v17 = vor.u32 %v1726_v14, %v1633_v15  ;;  %626 = vst [vmem:[#allocation2 + $0x54] sm:$0xff] %v623_v12  ;;  %v1731_v58 = vld [vmem:[#allocation2 + $0xe8] sm:$0xf0]  ;;  %v1639_v12 = vld [vmem:[#allocation2 + $0xc8] sm:$0xf] }
 0x109   : > { %v1652_v6 = vor.u32 %v1731_v58, %v1651_v4  ;;  %v1555_v13 = vld [vmem:[#allocation2 + $0x20] sm:$0xf]  ;;  %v1640_v14 = vor.u32 %v1728_v9, %v1639_v12  ;;  %v1705_v11 = vld [vmem:[#allocation2 + $0x1c] sm:$0xf]  ;;  %v1543_v26 = vld [vmem:[#allocation2 + $0x8] sm:$0xf] }
 0x10a   : > { %1130 = vmatpush.bf16.msra.mxu1 %v1632_v16  ;;  %1158 = vmatpush.bf16.msra.mxu3 %v1636_v17  ;;  %v605_v27 = vpop.permute.xlu0 %604  ;;  %v1579_v2 = vld [vmem:[#allocation2 + $0x50] sm:$0xf] }
 0x10b   : > { %v607_v28 = vpop.permute.xlu1 %606  ;;  %v608_v20 = vrot.slane %v605_v27, 4  ;;  %v1580_v5 = vor.u32 %v1713_v3, %v1579_v2 }
 0x10c   : > { %v609_v29 = vrot.slane %v607_v28, 4  ;;  %615 = vst.msk [vmem:[#allocation2 + $0x38] sm:$0xf] %vm489_vm1, %v607_v28 }
 0x10d   : > { %1690 = vmatmul.msk.bf16.vlgmr.msra.gmra.mxu3 %vm1095_vm10, %v2162_v24  ;;  %1689 = vmatmul.msk.bf16.vlgmr.msra.gmra.mxu1 %vm1095_vm10, %v2162_v24 }
 0x10e   : > { %1165 = vmatpush.bf16.msrb.mxu1 %v1628_v19  ;;  %1181 = vmatpush.bf16.msrb.mxu3 %v1107_v25  ;;  %v610_v34 = vsel %vm499_vm2, %v608_v20, %v609_v29  ;;  %v1571_v37 = vld [vmem:[#allocation2 + $0x48] sm:$0xf]  ;;  %v1711_v23 = vld [vmem:[#allocation2 + $0x4c] sm:$0xf]  ;;  %v1547_v25 = vld [vmem:[#allocation2 + $0x18] sm:$0xf] }
 0x10f   : > { %v611_v39 = vsel %vm501_vm11, %v605_v27, %v610_v34  ;;  %v1712_v40 = vld [vmem:[#allocation2 + $0x50] sm:$0xf0]  ;;  %v1573_v42 = vld [vmem:[#allocation2 + $0x54] sm:$0xf0]  ;;  %v1535_v29 = vld [vmem:[#allocation2] sm:$0xf] }
 0x110   : > { %614 = vst [vmem:[#allocation2 + $0x30] sm:$0xff] %v611_v39  ;;  %v1572_v43 = vor.u32 %v1712_v40, %v1571_v37  ;;  %v1576_v44 = vor.u32 %v1711_v23, %v1573_v42  ;;  %v1704_v20 = vld [vmem:[#allocation2 + $0x10] sm:$0xf0]  ;;  %v1537_v34 = vld [vmem:[#allocation2 + $0xc] sm:$0xf0] }
 0x111   : > { %v1544_v23 = vor.u32 %v1704_v20, %v1543_v26  ;;  %v1701_v39 = vld [vmem:[%s2244_s3 + $0x4] sm:$0xf0]  ;;  %v1540_v42 = vor.u32 %v1702_v33, %v1537_v34  ;;  %v1255_v20 = vld [vmem:[#allocation3 + $0x10] sm:$0xff] }
 0x112   : > { %1166 = vmatpush.bf16.msrb.mxu1 %v1616_v30  ;;  %1182 = vmatpush.bf16.msrb.mxu3 %v1688_v31  ;;  %v709_v52 = vpop.permute.xlu0 %708 }
 0x113   : > { %1113 = vmatpush.bf16.msra.mxu0 %v1572_v43  ;;  %1141 = vmatpush.bf16.msra.mxu2 %v1576_v44  ;;  %v494_v53 = vpop.permute.xlu1 %493  ;;  %v711_v56 = vrot.slane %v709_v52, 4  ;;  %717 = vst.msk [vmem:[#allocation2 + $0x44] sm:$0xf] %vm489_vm1, %v709_v52  ;;  %v1567_v7 = vld [vmem:[#allocation2 + $0x38] sm:$0xf]  ;;  %v1528_v44 = vor.u32 %v1701_v39, %v1527_v38 }
 0x114   : > { %v497_v57 = vrot.slane %v494_v53, 4 }
 0x115   : > { %v712_v61 = vsel %vm499_vm2, %v710_v55, %v711_v56 }
 0x116   : > { %1167 = vmatpush.bf16.msrb.mxu1 %v1604_v47  ;;  %1183 = vmatpush.bf16.msrb.mxu3 %v1676_v48  ;;  %v500_v50 = vsel %vm499_vm2, %v497_v57, %v498_v49  ;;  %v713_v0 = vsel %vm501_vm11, %v2135_v41, %v712_v61  ;;  %v1707_v41 = vld [vmem:[#allocation2 + $0x28] sm:$0xf0]  ;;  %v1305_v47 = vsel %vm499_vm2, %v1291_v35, 0  ;;  %v1272_v48 = vld [vmem:[%s2248_s7] sm:$0xff] }
 0x117   : > { %v502_v1 = vsel %vm501_vm11, %v494_v53, %v500_v50  ;;  %716 = vst [vmem:[#allocation2 + $0x3c] sm:$0xff] %v713_v0  ;;  %v1559_v15 = vld [vmem:[#allocation2 + $0x30] sm:$0xf]  ;;  %v1708_v17 = vld [vmem:[#allocation2 + $0x34] sm:$0xf]  ;;  %v1556_v22 = vor.u32 %v1707_v41, %v1555_v13  ;;  %1275 = vperm.xlu2 %1799, %v1272_v48  }
 0x118   : > { %505 = vst [vmem:[#allocation2 + $0x24] sm:$0xff] %v502_v1  ;;  %v1271_v49 = vld [vmem:[%s2247_s6] sm:$0xf] }
 0x11a   : > { %1168 = vmatpush.bf16.msrb.mxu1 %v1592_v62  ;;  %1184 = vmatpush.bf16.msrb.mxu3 %v1664_v63  ;;  %v1710_v8 = vld [vmem:[#allocation2 + $0x40] sm:$0xf0]  ;;  %v1287_v30 = vpop.permute.xlu0 %1286 }
 0x11b   : > { %v1568_v10 = vor.u32 %v1710_v8, %v1567_v7  ;;  %v1289_v31 = vpop.permute.xlu1 %1288 }
 0x11c   : > { %v1292_v40 = vsel %vm540_vm5, %v1287_v30, %v1289_v31  ;;  %v1293_v43 = vsel %vm540_vm5, %v1289_v31, %v1291_v35  ;;  %v1253_v35 = vld [vmem:[#allocation3] sm:$0xff]  ;;  %vm1267_vm5 = vcmask 261120  }
 0x11d   : > { %v1299_v45 = vsel %vm499_vm2, %v1292_v40, 0  ;;  %v1302_v46 = vsel %vm499_vm2, %v1293_v43, 0 }
 0x11e   : > { %1169 = vmatpush.bf16.msrb.mxu1 %v1580_v5  ;;  %1185 = vmatpush.bf16.msrb.mxu3 %v1652_v6  ;;  %v1709_v16 = vld [vmem:[#allocation2 + $0x38] sm:$0xf0]  ;;  %v1561_v18 = vld [vmem:[#allocation2 + $0x3c] sm:$0xf0] }
 0x11f   : > { %v1560_v19 = vor.u32 %v1709_v16, %v1559_v15  ;;  %v1564_v21 = vor.u32 %v1708_v17, %v1561_v18  ;;  %v1706_v27 = vld [vmem:[#allocation2 + $0x20] sm:$0xf0]  ;;  %v1549_v28 = vld [vmem:[#allocation2 + $0x24] sm:$0xf0] }
 0x120   : > { %v1548_v36 = vor.u32 %v1706_v27, %v1547_v25  ;;  %v1552_v37 = vor.u32 %v1705_v11, %v1549_v28 }
 0x121   : > { %1114 = vmatpush.bf16.msra.mxu0 %v1560_v19  ;;  %1142 = vmatpush.bf16.msra.mxu2 %v1564_v21 }
 0x122   : > { %1170 = vmatpush.bf16.msrb.mxu1 %v1568_v10  ;;  %1186 = vmatpush.bf16.msrb.mxu3 %v1640_v14 }
 0x125   : > { %1691 = vmatmul.msk.bf16.vlgmr.msrb.gmra.mxu3 %vm1095_vm10, %v2162_v24  ;;  %1115 = vmatpush.bf16.msra.mxu0 %v1548_v36  ;;  %v1536_v24 = vor.u32 %v1703_v32, %v1535_v29 }
 0x126   : > { %1171 = vmatpush.bf16.msrb.mxu1 %v1556_v22  ;;  %1143 = vmatpush.bf16.msra.mxu2 %v1552_v37 }
 0x129   : > { %1116 = vmatpush.bf16.msra.mxu0 %v1536_v24 }
 0x12a   : > { %1172 = vmatpush.bf16.msrb.mxu1 %v1544_v23  ;;  %1144 = vmatpush.bf16.msra.mxu2 %v1540_v42 }
 0x12c   : > { %1117 = vmatmul.bf16.vlgmr.msra.gmra.mxu0 %v1528_v44 }
 0x12d   : > { %1173 = vmatmul.bf16.vlgmr.msrb.gmra.mxu1 %v1528_v44  ;;  %1314 = vmatpush.bf16.msrb.mxu0 %v1299_v45 }
 0x12e   : > { %1327 = vmatpush.bf16.msrb.mxu2 %v1302_v46 }
 0x12f   : > { %1145 = vmatmul.bf16.vlgmr.msra.gmra.mxu2 %v1528_v44 }
 0x131   : > { %1340 = vmatpush.bf16.msra.mxu0 %v1305_v47 }
 0x13c   : > { %1695 = vmatmul.msk.bf16.vlgmr.msrb.gmra.mxu0 %vm1294_vm12, %v1271_v49 }
 0x13f   : > { %1696 = vmatmul.msk.bf16.vlgmr.msrb.gmra.mxu2 %vm1294_vm12, %v1271_v49 }
 0x14c   : > { %1697 = vmatmul.msk.bf16.vlgmr.msra.gmra.mxu0 %vm1294_vm12, %v1271_v49 }
 0x16a   : > { %v868_v59 = vpop.permute.xlu0 %867  ;;  %v863_v13 = vpop.permute.xlu1 %862 }
 0x18a   : > { %v1132_v53 = vpop.f32.mrf.mxu1 }
 0x190   : > { %v2205_v52 = vpop.f32.mrf.mxu3 }
 0x192   : > { %v1134_v51 = vpop.f32.mrf.mxu1 }
 0x198   : > { %v1162_v54 = vpop.f32.mrf.mxu3 }
 0x1a8   : > { %v1188_v55 = vpop.f32.mrf.mxu3 }
 0x1a9   : > { %v1118_v57 = vpop.f32.mrf.mxu0 }
 0x1aa   : > { %v1174_v56 = vpop.f32.mrf.mxu1  ;;  %v1119_v16 = vadd.f32 %v1118_v57, %v863_v13 }
 0x1ab   : > { %v1175_v41 = vadd.f32 %v1174_v56, %v863_v13 }
 0x1ac   : > { %v1133_v22 = vadd.f32 %v1132_v53, %v1119_v16  ;;  %v1276_v53 = vpop.permute.xlu2 %1275 }
 0x1ad   : > { %v1189_v18 = vadd.f32 %v1188_v55, %v1175_v41 }
 0x1ae   : > { %v1193_v31 = vmax.f32 %v1133_v22, 0.0 }
 0x1af   : > { %v1195_v27 = vmax.f32 %v1189_v18, 0.0 }
 0x1b0   : > { %v1190_v60 = vpop.f32.mrf.mxu3  ;;  %v1256_v44 = vsub.f32 %v1253_v35, %v1193_v31 }
 0x1b1   : > { %v1120_v63 = vpop.f32.mrf.mxu0  ;;  %v1258_v38 = vsub.f32 %v1255_v20, %v1195_v27 }
 0x1b2   : > { %v1176_v61 = vpop.f32.mrf.mxu1  ;;  %v1146_v50 = vpop.f32.mrf.mxu2  ;;  %v1121_v0 = vadd.f32 %v1120_v63, %v868_v59 }
 0x1b3   : > { %v1177_v62 = vadd.f32 %v1176_v61, %v868_v59  ;;  %v1147_v32 = vadd.f32 %v1146_v50, %v863_v13 }
 0x1b4   : > { %v1135_v2 = vadd.f32 %v1134_v51, %v1121_v0 }
 0x1b5   : > { %v1191_v58 = vadd.f32 %v1190_v60, %v1177_v62  ;;  %v1161_v45 = vadd.f32 %v2205_v52, %v1147_v32 }
 0x1b6   : > { %v1692_v3 = vmul.f32 -1.442695, %v1135_v2 }
 0x1b7   : > { %v1694_v1 = vmul.f32 -1.442695, %v1191_v58  ;;  %v1194_v60 = vmax.f32 %v1161_v45, 0.0 }
 0x1b9   : > { %1800 = vpow2.f32 %v1694_v1  ;;  %v2207_v6 = vpop.f32.mrf.mxu0  ;;  %v1254_v1 = vld [vmem:[#allocation3 + $0x8] sm:$0xff] }
 0x1ba   : > { %v1148_v4 = vpop.f32.mrf.mxu2  ;;  %1802 = vpow2.f32 %v1692_v3  ;;  %v1317_v2 = vadd.f32 %v2207_v6, %v1276_v53 }
 0x1bb   : > { %v1149_v5 = vadd.f32 %v1148_v4, %v868_v59 }
 0x1bd   : > { %v1163_v7 = vadd.f32 %v1162_v54, %v1149_v5 }
 0x1bf   : > { %v1801_v8 = vpop.eup %1800  ;;  %v1693_v9 = vmul.f32 -1.442695, %v1163_v7 }
 0x1c0   : > { %v1207_v10 = vadd.f32 1.0, %v1801_v8  ;;  %v1803_v12 = vpop.eup %1802  ;;  %v1257_v8 = vsub.f32 %v1254_v1, %v1194_v60 }
 0x1c1   : > { %1804 = vpow2.f32 %v1693_v9  ;;  %v1205_v14 = vadd.f32 1.0, %v1803_v12  ;;  %v1318_v17 = vpop.f32.mrf.mxu0 }
 0x1c2   : > { %1806 = vrcp.f32 %v1207_v10  ;;  %v2209_v15 = vpop.f32.mrf.mxu2  ;;  %v1249_v33 = vand.u32 2147483648, %v1207_v10  ;;  %v1247_v23 = vand.u32 2147483647, %v1207_v10  ;;  %vm1243_vm15 = vweird.f32 %v1207_v10 }
 0x1c3   : > { %1808 = vrcp.f32 %v1205_v14  ;;  %v1217_v39 = vand.u32 2147483647, %v1205_v14  ;;  %v1219_v40 = vand.u32 2147483648, %v1205_v14  ;;  %vm1213_vm0 = vweird.f32 %v1205_v14 }
 0x1c4   : > { %v1250_v46 = vor.u32 1.1754944e-38, %v1249_v33  ;;  %vm1248_vm2 = vcmp.eq.f32.partialorder %v1247_v23, 8.507059e+37  ;;  %v1330_v41 = vadd.f32 %v2209_v15, %v1276_v53 }
 0x1c5   : > { %vm1218_vm4 = vcmp.eq.f32.partialorder %v1217_v39, 8.507059e+37  ;;  %v1220_v54 = vor.u32 1.1754944e-38, %v1219_v40 }
 0x1c7   : > { %v1805_v19 = vpop.eup %1804 }
 0x1c8   : > { %v1807_v21 = vpop.eup %1806  ;;  %v2211_v25 = vadd.f32 1.0, %v1805_v19 }
 0x1c9   : > { %v1239_v11 = vmul.f32 %v1807_v21, %v1207_v10  ;;  %v1809_v26 = vpop.eup %1808  ;;  %v1342_v34 = vpop.f32.mrf.mxu0  ;;  %vm1244_vm13 = vweird.f32 %v1807_v21 }
 0x1ca   : > { %1810 = vrcp.f32 %v2211_v25  ;;  %v1331_v28 = vpop.f32.mrf.mxu2  ;;  %v1209_v30 = vmul.f32 %v1809_v26, %v1205_v14  ;;  %vm1214_vm14 = vweird.f32 %v1809_v26  ;;  %vm1245_vm1 = vmor %vm1243_vm15, %vm1244_vm13  ;;  %v1343_v59 = vadd.f32 %v1342_v34, %v1276_v53 }
 0x1cb   : > { %v1240_v29 = vsub.f32 1.0, %v1239_v11  ;;  %vm1215_vm3 = vmor %vm1213_vm0, %vm1214_vm14  ;;  %v1232_v61 = vand.u32 2147483647, %v2211_v25  ;;  %v1234_v50 = vand.u32 2147483648, %v2211_v25  ;;  %vm1228_vm7 = vweird.f32 %v2211_v25 }
 0x1cc   : > { %v1210_v36 = vsub.f32 1.0, %v1209_v30 }
 0x1cd   : > { %v1241_v37 = vmul.f32 %v1807_v21, %v1240_v29  ;;  %v1235_v7 = vor.u32 1.1754944e-38, %v1234_v50  ;;  %vm1233_vm9 = vcmp.eq.f32.partialorder %v1232_v61, 8.507059e+37 }
 0x1ce   : > { %v1211_v24 = vmul.f32 %v1809_v26, %v1210_v36 }
 0x1cf   : > { %v1242_v42 = vadd.f32 %v1807_v21, %v1241_v37 }
 0x1d0   : > { %v1811_v43 = vpop.eup %1810  ;;  %v1212_v48 = vadd.f32 %v1809_v26, %v1211_v24 }
 0x1d1   : > { %v1224_v47 = vmul.f32 %v1811_v43, %v2211_v25  ;;  %v1246_v49 = vsel %vm1245_vm1, %v1807_v21, %v1242_v42  ;;  %v1344_v62 = vpop.f32.mrf.mxu0  ;;  %vm1229_vm6 = vweird.f32 %v1811_v43 }
 0x1d2   : > { %v1251_v51 = vsel %vm1248_vm2, %v1250_v46, %v1246_v49  ;;  %v1216_v55 = vsel %vm1215_vm3, %v1809_v26, %v1212_v48  ;;  %vm1230_vm8 = vmor %vm1228_vm7, %vm1229_vm6 }
 0x1d3   : > { %v1225_v56 = vsub.f32 1.0, %v1224_v47  ;;  %v1261_v57 = vmul.f32 %v1258_v38, %v1251_v51  ;;  %v1221_v52 = vsel %vm1218_vm4, %v1220_v54, %v1216_v55 }
 0x1d4   : > { %v1259_v63 = vmul.f32 %v1256_v44, %v1221_v52 }
 0x1d5   : > { %v1226_v58 = vmul.f32 %v1811_v43, %v1225_v56  ;;  %v1264_v0 = vadd.f32 %v1261_v57, %v1195_v27 }
 0x1d6   : > { %v1262_v3 = vadd.f32 %v1259_v63, %v1193_v31 }
 0x1d7   : > { %v1227_v4 = vadd.f32 %v1811_v43, %v1226_v58  ;;  %1268 = vst.msk [vmem:[#allocation3 + $0x10] sm:$0xff] %vm1267_vm5, %v1264_v0  ;;  %v1348_v5 = vadd.f32 %v1343_v59, %v1264_v0 }
 0x1d8   : > { %1265 = vst [vmem:[#allocation3] sm:$0xff] %v1262_v3  ;;  %v1346_v9 = vadd.f32 %v1317_v2, %v1262_v3 }
 0x1d9   : > { %v1231_v10 = vsel %vm1230_vm8, %v1811_v43, %v1227_v4  ;;  %1351 = vst.msk [vmem:[%s1963_s1 + $0x10] sm:$0xff] %vm1267_vm5, %v1348_v5 }
 0x1da   : > { %v1236_v12 = vsel %vm1233_vm9, %v1235_v7, %v1231_v10  ;;  %1349 = vst [vmem:[%s1963_s1] sm:$0xff] %v1346_v9 }
 0x1db   : > { %v1260_v6 = vmul.f32 %v1257_v8, %v1236_v12 }
 0x1dd   : > { %v1263_v13 = vadd.f32 %v1260_v6, %v1194_v60 }
 0x1df   : > { %1266 = vst [vmem:[#allocation3 + $0x8] sm:$0xff] %v1263_v13  ;;  %v1347_v14 = vadd.f32 %v1330_v41, %v1263_v13 }
 0x1e1   : > { %1350 = vst [vmem:[%s1963_s1 + $0x8] sm:$0xff] %v1347_v14 }
 0x1e2 PF: > { %s18_s9 = sadd.s32 1, %s1850_s9   ;;  %s2260_s27 = sld [smem:[#allocation4_spill]] }
 0x1e3   : > { %p15_p11 = scmp.ge.s32.totalorder %s18_s9, 18   ;;  %s2261_s28 = sld [smem:[#allocation5_spill]] }
 0x1e4   : > { %s2262_s29 = sld [smem:[#allocation6_spill]] }
 0x1e5   : > { %s2263_s30 = sld [smem:[#allocation7_spill]]  ;;  %17 = sbr.rel (!%p15_p11) target bundleno = 4 (0x4), region = 95 }

</bundles_post_ra>
